<compile_context>
chip_gen: v7x
topology: tpu7x:2x2x1
jax: 0.10.0
libtpu: 0.0.40
codegen_flags: <defaults>
</compile_context>

<pallas_src>
import functools

import jax
import jax.numpy as jnp
import numpy as np
from jax.experimental import pallas as pl
from jax.experimental.pallas import tpu as pltpu


# ----------------------------------------------------------------------------
# Model hyper-parameters (scaled-down stand-ins, same as the previous version)
# ----------------------------------------------------------------------------
IN_CH = 3            # RGB input
BASE = 16
FC_DIM = 32          # stand-in for fc_dim=512
PPM_DIM = 16
NUM_CLASS = 8        # stand-in for num_class=150
HUMAN_CLASSES = 2
PPM_SCALES = (1, 2)
CAT_DIM = FC_DIM + PPM_DIM * len(PPM_SCALES)   # 64
HS_IN = IN_CH + NUM_CLASS                      # 11


# ----------------------------------------------------------------------------
# Constant matrices (numpy at trace time; small, per-image, no kron(eye(n)))
# ----------------------------------------------------------------------------

def _bilinear_matrix(src, dst):
    """(dst, src) half-pixel bilinear interpolation matrix (align_corners=False)."""
    m = np.zeros((dst, src), np.float32)
    for i in range(dst):
        c = (i + 0.5) * src / dst - 0.5
        c = min(max(c, 0.0), src - 1.0)
        lo = int(np.floor(c))
        hi = min(lo + 1, src - 1)
        f = c - lo
        m[i, lo] += 1.0 - f
        m[i, hi] += f
    return m


def _shift_masks(h, w):
    """(9, h*w) validity masks for the 9 taps of a 3x3 / pad-1 window."""
    m = np.zeros((9, h * w), np.float32)
    for ki in range(3):
        for kj in range(3):
            dh, dw = ki - 1, kj - 1
            for hh in range(h):
                for ww in range(w):
                    if 0 <= hh + dh < h and 0 <= ww + dw < w:
                        m[ki * 3 + kj, hh * w + ww] = 1.0
    return m


def _stride2_select(h, w):
    """(h*w, fh*fw) selection matrix picking the even-even pixels (stride-2)."""
    fh, fw = h // 2, w // 2
    m = np.zeros((h * w, fh * fw), np.float32)
    for oh in range(fh):
        for ow in range(fw):
            m[(2 * oh) * w + 2 * ow, oh * fw + ow] = 1.0
    return m


def _pool_matrix(fh, fw):
    """(fh*fw, 5): column 0 = global average, columns 1..4 = 2x2 adaptive pool."""
    m = fh * fw
    a = np.zeros((m, 5), np.float32)
    a[:, 0] = 1.0 / m
    bh, bw = fh // 2, fw // 2
    for i in range(2):
        for j in range(2):
            for hh in range(i * bh, (i + 1) * bh):
                for ww in range(j * bw, (j + 1) * bw):
                    a[hh * fw + ww, 1 + i * 2 + j] = 1.0 / (bh * bw)
    return a


def _up2_matrix(fh, fw):
    """(4, fh*fw): bilinear upsample of a 2x2 map to (fh, fw), transposed."""
    rh, rw = _bilinear_matrix(2, fh), _bilinear_matrix(2, fw)      # (fh,2), (fw,2)
    u = np.einsum('ha,wb->hwab', rh, rw).reshape(fh * fw, 4)
    return np.ascontiguousarray(u.T)


def _cls_up_matrix(fh, fw, h, w):
    """(fh*fw, h*w): bilinear upsample of a (fh, fw) map to (h, w), transposed."""
    rh, rw = _bilinear_matrix(fh, h), _bilinear_matrix(fw, w)      # (h,fh), (w,fw)
    u = np.einsum('ha,wb->hwab', rh, rw).reshape(h * w, fh * fw)
    return np.ascontiguousarray(u.T)


# ----------------------------------------------------------------------------
# The fused Pallas kernel: the whole CoreSegModel forward for one image
# ----------------------------------------------------------------------------

def _core_seg_kernel(
        x_ref,                       # (1, IN_CH, h*w)
        mask_f_ref, mask_e_ref,      # (9, h*w), (9, fh*fw)
        dsel_ref,                    # (h*w, fh*fw) bf16
        e1w_ref, e1b_ref,
        e2w_ref, e2b_ref,
        poolm_ref, ppmw_ref, ppmb_ref, up2m_ref, upcls_ref,
        decw_ref, decb_ref, clsw_ref, clsb_ref,
        hwimg_ref, hwprob_ref, h1b_ref,
        h2w_ref, h2b_ref,
        out_ref,                     # (1, HUMAN_CLASSES, h*w)
        *, h, w):
    fh, fw = h // 2, w // 2
    hwe = fh * fw
    bf16 = jnp.bfloat16

    def mm(a, b):
        return jnp.dot(a, b, preferred_element_type=jnp.float32)

    def relu(v):
        return jnp.maximum(v, 0.0)

    def patches(x, masks, wdim):
        """Channels-first im2col: x (Cin, H*W) -> (9*Cin, H*W) bf16 patch matrix."""
        cols = []
        for ki in range(3):
            for kj in range(3):
                dh, dw = ki - 1, kj - 1
                if dh == 0 and dw == 0:
                    cols.append(x)                                  # center tap: mask is all-ones
                else:
                    shifted = jnp.roll(x, -(dh * wdim + dw), axis=1)
                    cols.append(shifted * masks[ki * 3 + kj:ki * 3 + kj + 1, :])
        return jnp.concatenate(cols, axis=0).astype(bf16)

    x = x_ref[0]                                                    # (IN_CH, h*w) f32
    mask_f = mask_f_ref[...]
    mask_e = mask_e_ref[...]

    # ---- encoder conv1: 3x3 / stride 2 / pad 1 (full-res im2col + even-pixel select) ----
    p_img = patches(x, mask_f, w)                                   # (27, h*w) bf16 (reused below)
    p1 = mm(p_img, dsel_ref[...]).astype(bf16)                      # (27, fh*fw)
    f1 = relu(mm(e1w_ref[...], p1) + e1b_ref[...])                  # (BASE, fh*fw) f32

    # ---- encoder conv2: 3x3 / stride 1 / pad 1 ----
    f2 = relu(mm(e2w_ref[...], patches(f1, mask_e, fw)) + e2b_ref[...])   # (FC_DIM, fh*fw)

    # ---- PPM: adaptive pools (1, 2x2), merged 1x1 convs, upsample, concat ----
    pooled = mm(f2.astype(bf16), poolm_ref[...])                    # (FC_DIM, 5)
    proj = relu(mm(ppmw_ref[...], pooled.astype(bf16)) + ppmb_ref[...])   # (2*PPM_DIM, 5)
    up1 = jnp.broadcast_to(proj[0:PPM_DIM, 0:1], (PPM_DIM, hwe))          # scale-1 branch
    up2 = mm(proj[PPM_DIM:2 * PPM_DIM, 1:5].astype(bf16), up2m_ref[...])  # scale-2 branch
    cat = jnp.concatenate([f2, up1, up2], axis=0)                   # (CAT_DIM, fh*fw), 8-aligned

    # ---- decoder 3x3 conv + classifier 1x1 + bilinear upsample + softmax ----
    y = relu(mm(decw_ref[...], patches(cat, mask_e, fw)) + decb_ref[...])  # (FC_DIM, fh*fw)
    logits = mm(clsw_ref[...], y.astype(bf16)) + clsb_ref[...]             # (NUM_CLASS, fh*fw)
    logits_up = mm(logits.astype(bf16), upcls_ref[...])                    # (NUM_CLASS, h*w)
    mval = jnp.max(logits_up, axis=0, keepdims=True)
    e = jnp.exp(logits_up - mval)
    probs = e * pl.reciprocal(jnp.sum(e, axis=0, keepdims=True), approx=True)

    # ---- human_seg head: 3x3 conv over [image, probs] with split-K, 1x1 conv ----
    p_prob = patches(probs, mask_f, w)                              # (9*NUM_CLASS, h*w)
    hfeat = relu(mm(hwimg_ref[...], p_img) + mm(hwprob_ref[...], p_prob)
                 + h1b_ref[...])                                    # (BASE, h*w)
    h_logits = mm(h2w_ref[...], hfeat.astype(bf16)) + h2b_ref[...]  # (2, h*w)

    # 2-class softmax == sigmoid of the logit difference (exact)
    p_pos = 1.0 / (1.0 + jnp.exp(h_logits[0:1, :] - h_logits[1:2, :]))
    out_ref[0] = jnp.concatenate([1.0 - p_pos, p_pos], axis=0)      # (2, h*w) lane-dense


# ----------------------------------------------------------------------------
# Parameters + public forward (NCHW in, NCHW out)
# ----------------------------------------------------------------------------

def init_params(key):
    ks = jax.random.split(key, 8)

    def w(k, shape):
        return jax.random.normal(k, shape, jnp.float32) * 0.1

    def b(shape):
        return jnp.zeros(shape, jnp.float32)

    return {
        # encoder (resnet18dilated stand-in)
        'enc1_w': w(ks[0], (3, 3, IN_CH, BASE)), 'enc1_b': b((BASE,)),
        'enc2_w': w(ks[1], (3, 3, BASE, FC_DIM)), 'enc2_b': b((FC_DIM,)),
        # decoder (ppm_deepsup stand-in)
        'ppm_convs': [
            (w(ks[2], (1, 1, FC_DIM, PPM_DIM)), b((PPM_DIM,))),
            (w(ks[3], (1, 1, FC_DIM, PPM_DIM)), b((PPM_DIM,))),
        ],
        'dec_w': w(ks[4], (3, 3, CAT_DIM, FC_DIM)), 'dec_b': b((FC_DIM,)),
        'cls_w': w(ks[5], (1, 1, FC_DIM, NUM_CLASS)), 'cls_b': b((NUM_CLASS,)),
        # human_seg head
        # TODO(synk): the real `human_seg` architecture is injected externally;
        # a representative conv head over (inputs, backbone probs) is used.
        'hs1_w': w(ks[6], (3, 3, HS_IN, BASE)), 'hs1_b': b((BASE,)),
        'hs2_w': w(ks[7], (1, 1, BASE, HUMAN_CLASSES)), 'hs2_b': b((HUMAN_CLASSES,)),
    }


def core_seg_model_forward(x_nchw, params):
    x = x_nchw.astype(jnp.float32)
    n, cin, h, w = x.shape
    assert cin == IN_CH and h % 4 == 0 and w % 4 == 0, "toy model assumes H, W divisible by 4"
    fh, fw = h // 2, w // 2
    hwf, hwe = h * w, fh * fw

    # NCHW is already channels-first: only flatten the spatial dims (free reshape).
    x_flat = x.reshape(n, IN_CH, hwf)

    # small per-image constants (trace-time numpy); MXU-side ones in bf16
    mask_f = jnp.asarray(_shift_masks(h, w))
    mask_e = jnp.asarray(_shift_masks(fh, fw))
    dsel = jnp.asarray(_stride2_select(h, w), dtype=jnp.bfloat16)
    poolm = jnp.asarray(_pool_matrix(fh, fw), dtype=jnp.bfloat16)
    up2m = jnp.asarray(_up2_matrix(fh, fw), dtype=jnp.bfloat16)
    upcls = jnp.asarray(_cls_up_matrix(fh, fw, h, w), dtype=jnp.bfloat16)

    def w3(wk):   # (3,3,Cin,Cout) -> (Cout, 9*Cin) bf16, K ordered (tap, ci)
        return jnp.transpose(wk, (3, 0, 1, 2)).reshape(wk.shape[3], -1).astype(jnp.bfloat16)

    def w1(wk):   # (1,1,Cin,Cout) -> (Cout, Cin) bf16
        return jnp.transpose(wk.reshape(wk.shape[2], wk.shape[3])).astype(jnp.bfloat16)

    def cb(bk):   # (C,) -> (C, 1) f32 column bias
        return bk.reshape(-1, 1).astype(jnp.float32)

    ppmw = jnp.concatenate([w1(params['ppm_convs'][0][0]),
                            w1(params['ppm_convs'][1][0])], axis=0)       # (2*PPM_DIM, FC_DIM)
    ppmb = jnp.concatenate([cb(params['ppm_convs'][0][1]),
                            cb(params['ppm_convs'][1][1])], axis=0)       # (2*PPM_DIM, 1)

    hs_w = params['hs1_w']
    hwimg, hwprob = w3(hs_w[:, :, :IN_CH, :]), w3(hs_w[:, :, IN_CH:, :])  # split-K head weights

    operands = (
        x_flat, mask_f, mask_e, dsel,
        w3(params['enc1_w']), cb(params['enc1_b']),
        w3(params['enc2_w']), cb(params['enc2_b']),
        poolm, ppmw, ppmb, up2m, upcls,
        w3(params['dec_w']), cb(params['dec_b']),
        w1(params['cls_w']), cb(params['cls_b']),
        hwimg, hwprob, cb(params['hs1_b']),
        w1(params['hs2_w']), cb(params['hs2_b']),
    )

    def const_spec(a):
        assert a.ndim == 2
        return pl.BlockSpec(a.shape, lambda b: (0, 0))

    in_specs = [pl.BlockSpec((1, IN_CH, hwf), lambda b: (b, 0, 0))] + \
               [const_spec(a) for a in operands[1:]]
    out_spec = pl.BlockSpec((1, HUMAN_CLASSES, hwf), lambda b: (b, 0, 0))

    flops_per_image = 2 * (
        27 * hwf * hwe + BASE * 27 * hwe + FC_DIM * (9 * BASE) * hwe +
        FC_DIM * hwe * 5 + (2 * PPM_DIM) * FC_DIM * 5 + PPM_DIM * 4 * hwe +
        FC_DIM * (9 * CAT_DIM) * hwe + NUM_CLASS * FC_DIM * hwe +
        NUM_CLASS * hwe * hwf + BASE * (9 * HS_IN) * hwf + HUMAN_CLASSES * BASE * hwf)
    bytes_accessed = sum(int(np.prod(op.shape)) * op.dtype.itemsize for op in operands) \
        + n * HUMAN_CLASSES * hwf * 4
    cost = pl.CostEstimate(flops=int(n * flops_per_image),
                           transcendentals=int(n * hwf * (NUM_CLASS + 1)),
                           bytes_accessed=int(bytes_accessed))

    out_flat = pl.pallas_call(
        functools.partial(_core_seg_kernel, h=h, w=w),
        out_shape=jax.ShapeDtypeStruct((n, HUMAN_CLASSES, hwf), jnp.float32),
        grid=(n,),
        in_specs=in_specs,
        out_specs=out_spec,
        compiler_params=pltpu.CompilerParams(
            dimension_semantics=("parallel",),          # shard images across TCs on v7x
            vmem_limit_bytes=32 * 1024 * 1024),
        cost_estimate=cost,
    )(*operands)

    return out_flat.reshape(n, HUMAN_CLASSES, h, w)     # NCHW, pure reshape (no transpose)


if __name__ == "__main__":
    key = jax.random.PRNGKey(0)
    k_in, k_par = jax.random.split(key)
    x = jax.random.normal(k_in, (2, IN_CH, 16, 16), jnp.float32)
    params = init_params(k_par)

    fwd = jax.jit(core_seg_model_forward)
    out = fwd(x, params)
    jax.block_until_ready(out)

    assert out.shape == (2, HUMAN_CLASSES, 16, 16)
    assert bool(jnp.all(jnp.isfinite(out)))
    # human-seg head now uses an exact 2-class softmax (sigmoid form)
    sums = jnp.sum(out, axis=1)
    assert bool(jnp.all(jnp.abs(sums - 1.0) < 1e-3))
    print("KERNEL_OK")
</pallas_src>

<mosaic_0001>
module attributes {stable_mosaic.version = 11 : i64} {
  func.func @_core_seg_kernel(%arg0: i32, %arg1: memref<1x3x256xf32, #tpu.memory_space<vmem>>, %arg2: memref<9x256xf32, #tpu.memory_space<vmem>>, %arg3: memref<9x64xf32, #tpu.memory_space<vmem>>, %arg4: memref<256x64xbf16, #tpu.memory_space<vmem>>, %arg5: memref<16x27xbf16, #tpu.memory_space<vmem>>, %arg6: memref<16x1xf32, #tpu.memory_space<vmem>>, %arg7: memref<32x144xbf16, #tpu.memory_space<vmem>>, %arg8: memref<32x1xf32, #tpu.memory_space<vmem>>, %arg9: memref<64x5xbf16, #tpu.memory_space<vmem>>, %arg10: memref<32x32xbf16, #tpu.memory_space<vmem>>, %arg11: memref<32x1xf32, #tpu.memory_space<vmem>>, %arg12: memref<4x64xbf16, #tpu.memory_space<vmem>>, %arg13: memref<64x256xbf16, #tpu.memory_space<vmem>>, %arg14: memref<32x576xbf16, #tpu.memory_space<vmem>>, %arg15: memref<32x1xf32, #tpu.memory_space<vmem>>, %arg16: memref<8x32xbf16, #tpu.memory_space<vmem>>, %arg17: memref<8x1xf32, #tpu.memory_space<vmem>>, %arg18: memref<16x27xbf16, #tpu.memory_space<vmem>>, %arg19: memref<16x72xbf16, #tpu.memory_space<vmem>>, %arg20: memref<16x1xf32, #tpu.memory_space<vmem>>, %arg21: memref<2x16xbf16, #tpu.memory_space<vmem>>, %arg22: memref<2x1xf32, #tpu.memory_space<vmem>>, %arg23: memref<1x2x256xf32, #tpu.memory_space<vmem>>) attributes {dimension_semantics = [#tpu.dimension_semantics<parallel>], iteration_bounds = array<i64: 2>, scalar_prefetch = 0 : i64, scratch_operands = 0 : i64, tpu.core_type = #tpu.core_type<tc>, window_params = [{transform_indices = @transform_0, window_bounds = array<i64: 1, 3, 256>}, {pipeline_mode = #tpu.pipeline_mode<synchronous>, transform_indices = @transform_1, window_bounds = array<i64: 9, 256>}, {pipeline_mode = #tpu.pipeline_mode<synchronous>, transform_indices = @transform_2, window_bounds = array<i64: 9, 64>}, {pipeline_mode = #tpu.pipeline_mode<synchronous>, transform_indices = @transform_3, window_bounds = array<i64: 256, 64>}, {pipeline_mode = #tpu.pipeline_mode<synchronous>, transform_indices = @transform_4, window_bounds = array<i64: 16, 27>}, {pipeline_mode = #tpu.pipeline_mode<synchronous>, transform_indices = @transform_5, window_bounds = array<i64: 16, 1>}, {pipeline_mode = #tpu.pipeline_mode<synchronous>, transform_indices = @transform_6, window_bounds = array<i64: 32, 144>}, {pipeline_mode = #tpu.pipeline_mode<synchronous>, transform_indices = @transform_7, window_bounds = array<i64: 32, 1>}, {pipeline_mode = #tpu.pipeline_mode<synchronous>, transform_indices = @transform_8, window_bounds = array<i64: 64, 5>}, {pipeline_mode = #tpu.pipeline_mode<synchronous>, transform_indices = @transform_9, window_bounds = array<i64: 32, 32>}, {pipeline_mode = #tpu.pipeline_mode<synchronous>, transform_indices = @transform_10, window_bounds = array<i64: 32, 1>}, {pipeline_mode = #tpu.pipeline_mode<synchronous>, transform_indices = @transform_11, window_bounds = array<i64: 4, 64>}, {pipeline_mode = #tpu.pipeline_mode<synchronous>, transform_indices = @transform_12, window_bounds = array<i64: 64, 256>}, {pipeline_mode = #tpu.pipeline_mode<synchronous>, transform_indices = @transform_13, window_bounds = array<i64: 32, 576>}, {pipeline_mode = #tpu.pipeline_mode<synchronous>, transform_indices = @transform_14, window_bounds = array<i64: 32, 1>}, {pipeline_mode = #tpu.pipeline_mode<synchronous>, transform_indices = @transform_15, window_bounds = array<i64: 8, 32>}, {pipeline_mode = #tpu.pipeline_mode<synchronous>, transform_indices = @transform_16, window_bounds = array<i64: 8, 1>}, {pipeline_mode = #tpu.pipeline_mode<synchronous>, transform_indices = @transform_17, window_bounds = array<i64: 16, 27>}, {pipeline_mode = #tpu.pipeline_mode<synchronous>, transform_indices = @transform_18, window_bounds = array<i64: 16, 72>}, {pipeline_mode = #tpu.pipeline_mode<synchronous>, transform_indices = @transform_19, window_bounds = array<i64: 16, 1>}, {pipeline_mode = #tpu.pipeline_mode<synchronous>, transform_indices = @transform_20, window_bounds = array<i64: 2, 16>}, {pipeline_mode = #tpu.pipeline_mode<synchronous>, transform_indices = @transform_21, window_bounds = array<i64: 2, 1>}, {transform_indices = @transform_22, window_bounds = array<i64: 1, 2, 256>}]} {
    %c0 = arith.constant 0 : index
    %c0_0 = arith.constant 0 : index
    %c0_1 = arith.constant 0 : index
    %0 = vector.load %arg1[%c0, %c0_0, %c0_1] : memref<1x3x256xf32, #tpu.memory_space<vmem>>, vector<1x3x256xf32>
    %1 = vector.shape_cast %0 : vector<1x3x256xf32> to vector<3x256xf32>
    %c0_2 = arith.constant 0 : index
    %c0_3 = arith.constant 0 : index
    %2 = vector.load %arg2[%c0_2, %c0_3] : memref<9x256xf32, #tpu.memory_space<vmem>>, vector<9x256xf32>
    %c0_4 = arith.constant 0 : index
    %c0_5 = arith.constant 0 : index
    %3 = vector.load %arg3[%c0_4, %c0_5] : memref<9x64xf32, #tpu.memory_space<vmem>>, vector<9x64xf32>
    %4 = vector.extract_strided_slice %1 {offsets = [0, 239], sizes = [3, 17], strides = [1, 1]} : vector<3x256xf32> to vector<3x17xf32>
    %5 = vector.extract_strided_slice %1 {offsets = [0, 0], sizes = [3, 239], strides = [1, 1]} : vector<3x256xf32> to vector<3x239xf32>
    %6 = tpu.concatenate %4, %5 in 1 : vector<3x17xf32>, vector<3x239xf32> -> vector<3x256xf32>
    %7 = vector.extract_strided_slice %2 {offsets = [0, 0], sizes = [1, 256], strides = [1, 1]} : vector<9x256xf32> to vector<1x256xf32>
    %8 = vector.broadcast %7 : vector<1x256xf32> to vector<3x256xf32>
    %9 = arith.mulf %6, %8 : vector<3x256xf32>
    %10 = vector.extract_strided_slice %1 {offsets = [0, 240], sizes = [3, 16], strides = [1, 1]} : vector<3x256xf32> to vector<3x16xf32>
    %11 = vector.extract_strided_slice %1 {offsets = [0, 0], sizes = [3, 240], strides = [1, 1]} : vector<3x256xf32> to vector<3x240xf32>
    %12 = tpu.concatenate %10, %11 in 1 : vector<3x16xf32>, vector<3x240xf32> -> vector<3x256xf32>
    %13 = vector.extract_strided_slice %2 {offsets = [1, 0], sizes = [1, 256], strides = [1, 1]} : vector<9x256xf32> to vector<1x256xf32>
    %14 = vector.broadcast %13 : vector<1x256xf32> to vector<3x256xf32>
    %15 = arith.mulf %12, %14 : vector<3x256xf32>
    %16 = vector.extract_strided_slice %1 {offsets = [0, 241], sizes = [3, 15], strides = [1, 1]} : vector<3x256xf32> to vector<3x15xf32>
    %17 = vector.extract_strided_slice %1 {offsets = [0, 0], sizes = [3, 241], strides = [1, 1]} : vector<3x256xf32> to vector<3x241xf32>
    %18 = tpu.concatenate %16, %17 in 1 : vector<3x15xf32>, vector<3x241xf32> -> vector<3x256xf32>
    %19 = vector.extract_strided_slice %2 {offsets = [2, 0], sizes = [1, 256], strides = [1, 1]} : vector<9x256xf32> to vector<1x256xf32>
    %20 = vector.broadcast %19 : vector<1x256xf32> to vector<3x256xf32>
    %21 = arith.mulf %18, %20 : vector<3x256xf32>
    %22 = vector.extract_strided_slice %1 {offsets = [0, 255], sizes = [3, 1], strides = [1, 1]} : vector<3x256xf32> to vector<3x1xf32>
    %23 = vector.extract_strided_slice %1 {offsets = [0, 0], sizes = [3, 255], strides = [1, 1]} : vector<3x256xf32> to vector<3x255xf32>
    %24 = tpu.concatenate %22, %23 in 1 : vector<3x1xf32>, vector<3x255xf32> -> vector<3x256xf32>
    %25 = vector.extract_strided_slice %2 {offsets = [3, 0], sizes = [1, 256], strides = [1, 1]} : vector<9x256xf32> to vector<1x256xf32>
    %26 = vector.broadcast %25 : vector<1x256xf32> to vector<3x256xf32>
    %27 = arith.mulf %24, %26 : vector<3x256xf32>
    %28 = vector.extract_strided_slice %1 {offsets = [0, 1], sizes = [3, 255], strides = [1, 1]} : vector<3x256xf32> to vector<3x255xf32>
    %29 = vector.extract_strided_slice %1 {offsets = [0, 0], sizes = [3, 1], strides = [1, 1]} : vector<3x256xf32> to vector<3x1xf32>
    %30 = tpu.concatenate %28, %29 in 1 : vector<3x255xf32>, vector<3x1xf32> -> vector<3x256xf32>
    %31 = vector.extract_strided_slice %2 {offsets = [5, 0], sizes = [1, 256], strides = [1, 1]} : vector<9x256xf32> to vector<1x256xf32>
    %32 = vector.broadcast %31 : vector<1x256xf32> to vector<3x256xf32>
    %33 = arith.mulf %30, %32 : vector<3x256xf32>
    %34 = vector.extract_strided_slice %1 {offsets = [0, 15], sizes = [3, 241], strides = [1, 1]} : vector<3x256xf32> to vector<3x241xf32>
    %35 = vector.extract_strided_slice %1 {offsets = [0, 0], sizes = [3, 15], strides = [1, 1]} : vector<3x256xf32> to vector<3x15xf32>
    %36 = tpu.concatenate %34, %35 in 1 : vector<3x241xf32>, vector<3x15xf32> -> vector<3x256xf32>
    %37 = vector.extract_strided_slice %2 {offsets = [6, 0], sizes = [1, 256], strides = [1, 1]} : vector<9x256xf32> to vector<1x256xf32>
    %38 = vector.broadcast %37 : vector<1x256xf32> to vector<3x256xf32>
    %39 = arith.mulf %36, %38 : vector<3x256xf32>
    %40 = vector.extract_strided_slice %1 {offsets = [0, 16], sizes = [3, 240], strides = [1, 1]} : vector<3x256xf32> to vector<3x240xf32>
    %41 = vector.extract_strided_slice %1 {offsets = [0, 0], sizes = [3, 16], strides = [1, 1]} : vector<3x256xf32> to vector<3x16xf32>
    %42 = tpu.concatenate %40, %41 in 1 : vector<3x240xf32>, vector<3x16xf32> -> vector<3x256xf32>
    %43 = vector.extract_strided_slice %2 {offsets = [7, 0], sizes = [1, 256], strides = [1, 1]} : vector<9x256xf32> to vector<1x256xf32>
    %44 = vector.broadcast %43 : vector<1x256xf32> to vector<3x256xf32>
    %45 = arith.mulf %42, %44 : vector<3x256xf32>
    %46 = vector.extract_strided_slice %1 {offsets = [0, 17], sizes = [3, 239], strides = [1, 1]} : vector<3x256xf32> to vector<3x239xf32>
    %47 = vector.extract_strided_slice %1 {offsets = [0, 0], sizes = [3, 17], strides = [1, 1]} : vector<3x256xf32> to vector<3x17xf32>
    %48 = tpu.concatenate %46, %47 in 1 : vector<3x239xf32>, vector<3x17xf32> -> vector<3x256xf32>
    %49 = vector.extract_strided_slice %2 {offsets = [8, 0], sizes = [1, 256], strides = [1, 1]} : vector<9x256xf32> to vector<1x256xf32>
    %50 = vector.broadcast %49 : vector<1x256xf32> to vector<3x256xf32>
    %51 = arith.mulf %48, %50 : vector<3x256xf32>
    %52 = tpu.concatenate %9, %15, %21, %27, %1, %33, %39, %45, %51 in 0 : vector<3x256xf32>, vector<3x256xf32>, vector<3x256xf32>, vector<3x256xf32>, vector<3x256xf32>, vector<3x256xf32>, vector<3x256xf32>, vector<3x256xf32>, vector<3x256xf32> -> vector<27x256xf32>
    %53 = arith.truncf %52 : vector<27x256xf32> to vector<27x256xbf16>
    %c0_6 = arith.constant 0 : index
    %c0_7 = arith.constant 0 : index
    %54 = vector.load %arg4[%c0_6, %c0_7] : memref<256x64xbf16, #tpu.memory_space<vmem>>, vector<256x64xbf16>
    %cst = arith.constant dense<0.000000e+00> : vector<27x64xf32>
    %55 = tpu.matmul %53, %54, %cst {dimension_numbers = #tpu.dot_dimension_numbers<[1], [0], [0], [1], [0, 0, 1, 1], [], []>} : vector<27x256xbf16>, vector<256x64xbf16>, vector<27x64xf32> -> vector<27x64xf32>
    %56 = arith.truncf %55 : vector<27x64xf32> to vector<27x64xbf16>
    %c0_8 = arith.constant 0 : index
    %c0_9 = arith.constant 0 : index
    %57 = vector.load %arg5[%c0_8, %c0_9] : memref<16x27xbf16, #tpu.memory_space<vmem>>, vector<16x27xbf16>
    %cst_10 = arith.constant dense<0.000000e+00> : vector<16x64xf32>
    %58 = tpu.matmul %57, %56, %cst_10 {dimension_numbers = #tpu.dot_dimension_numbers<[1], [0], [0], [1], [0, 0, 1, 1], [], []>} : vector<16x27xbf16>, vector<27x64xbf16>, vector<16x64xf32> -> vector<16x64xf32>
    %c0_11 = arith.constant 0 : index
    %c0_12 = arith.constant 0 : index
    %59 = vector.load %arg6[%c0_11, %c0_12] : memref<16x1xf32, #tpu.memory_space<vmem>>, vector<16x1xf32>
    %60 = vector.broadcast %59 : vector<16x1xf32> to vector<16x64xf32>
    %61 = arith.addf %58, %60 : vector<16x64xf32>
    %cst_13 = arith.constant 0.000000e+00 : f32
    %62 = vector.broadcast %cst_13 : f32 to vector<16x64xf32>
    %63 = arith.maximumf %61, %62 : vector<16x64xf32>
    %c0_14 = arith.constant 0 : index
    %c0_15 = arith.constant 0 : index
    %64 = vector.load %arg7[%c0_14, %c0_15] : memref<32x144xbf16, #tpu.memory_space<vmem>>, vector<32x144xbf16>
    %65 = vector.extract_strided_slice %63 {offsets = [0, 55], sizes = [16, 9], strides = [1, 1]} : vector<16x64xf32> to vector<16x9xf32>
    %66 = vector.extract_strided_slice %63 {offsets = [0, 0], sizes = [16, 55], strides = [1, 1]} : vector<16x64xf32> to vector<16x55xf32>
    %67 = tpu.concatenate %65, %66 in 1 : vector<16x9xf32>, vector<16x55xf32> -> vector<16x64xf32>
    %68 = vector.extract_strided_slice %3 {offsets = [0, 0], sizes = [1, 64], strides = [1, 1]} : vector<9x64xf32> to vector<1x64xf32>
    %69 = vector.broadcast %68 : vector<1x64xf32> to vector<16x64xf32>
    %70 = arith.mulf %67, %69 : vector<16x64xf32>
    %71 = vector.extract_strided_slice %63 {offsets = [0, 56], sizes = [16, 8], strides = [1, 1]} : vector<16x64xf32> to vector<16x8xf32>
    %72 = vector.extract_strided_slice %63 {offsets = [0, 0], sizes = [16, 56], strides = [1, 1]} : vector<16x64xf32> to vector<16x56xf32>
    %73 = tpu.concatenate %71, %72 in 1 : vector<16x8xf32>, vector<16x56xf32> -> vector<16x64xf32>
    %74 = vector.extract_strided_slice %3 {offsets = [1, 0], sizes = [1, 64], strides = [1, 1]} : vector<9x64xf32> to vector<1x64xf32>
    %75 = vector.broadcast %74 : vector<1x64xf32> to vector<16x64xf32>
    %76 = arith.mulf %73, %75 : vector<16x64xf32>
    %77 = vector.extract_strided_slice %63 {offsets = [0, 57], sizes = [16, 7], strides = [1, 1]} : vector<16x64xf32> to vector<16x7xf32>
    %78 = vector.extract_strided_slice %63 {offsets = [0, 0], sizes = [16, 57], strides = [1, 1]} : vector<16x64xf32> to vector<16x57xf32>
    %79 = tpu.concatenate %77, %78 in 1 : vector<16x7xf32>, vector<16x57xf32> -> vector<16x64xf32>
    %80 = vector.extract_strided_slice %3 {offsets = [2, 0], sizes = [1, 64], strides = [1, 1]} : vector<9x64xf32> to vector<1x64xf32>
    %81 = vector.broadcast %80 : vector<1x64xf32> to vector<16x64xf32>
    %82 = arith.mulf %79, %81 : vector<16x64xf32>
    %83 = vector.extract_strided_slice %63 {offsets = [0, 63], sizes = [16, 1], strides = [1, 1]} : vector<16x64xf32> to vector<16x1xf32>
    %84 = vector.extract_strided_slice %63 {offsets = [0, 0], sizes = [16, 63], strides = [1, 1]} : vector<16x64xf32> to vector<16x63xf32>
    %85 = tpu.concatenate %83, %84 in 1 : vector<16x1xf32>, vector<16x63xf32> -> vector<16x64xf32>
    %86 = vector.extract_strided_slice %3 {offsets = [3, 0], sizes = [1, 64], strides = [1, 1]} : vector<9x64xf32> to vector<1x64xf32>
    %87 = vector.broadcast %86 : vector<1x64xf32> to vector<16x64xf32>
    %88 = arith.mulf %85, %87 : vector<16x64xf32>
    %89 = vector.extract_strided_slice %63 {offsets = [0, 1], sizes = [16, 63], strides = [1, 1]} : vector<16x64xf32> to vector<16x63xf32>
    %90 = vector.extract_strided_slice %63 {offsets = [0, 0], sizes = [16, 1], strides = [1, 1]} : vector<16x64xf32> to vector<16x1xf32>
    %91 = tpu.concatenate %89, %90 in 1 : vector<16x63xf32>, vector<16x1xf32> -> vector<16x64xf32>
    %92 = vector.extract_strided_slice %3 {offsets = [5, 0], sizes = [1, 64], strides = [1, 1]} : vector<9x64xf32> to vector<1x64xf32>
    %93 = vector.broadcast %92 : vector<1x64xf32> to vector<16x64xf32>
    %94 = arith.mulf %91, %93 : vector<16x64xf32>
    %95 = vector.extract_strided_slice %63 {offsets = [0, 7], sizes = [16, 57], strides = [1, 1]} : vector<16x64xf32> to vector<16x57xf32>
    %96 = vector.extract_strided_slice %63 {offsets = [0, 0], sizes = [16, 7], strides = [1, 1]} : vector<16x64xf32> to vector<16x7xf32>
    %97 = tpu.concatenate %95, %96 in 1 : vector<16x57xf32>, vector<16x7xf32> -> vector<16x64xf32>
    %98 = vector.extract_strided_slice %3 {offsets = [6, 0], sizes = [1, 64], strides = [1, 1]} : vector<9x64xf32> to vector<1x64xf32>
    %99 = vector.broadcast %98 : vector<1x64xf32> to vector<16x64xf32>
    %100 = arith.mulf %97, %99 : vector<16x64xf32>
    %101 = vector.extract_strided_slice %63 {offsets = [0, 8], sizes = [16, 56], strides = [1, 1]} : vector<16x64xf32> to vector<16x56xf32>
    %102 = vector.extract_strided_slice %63 {offsets = [0, 0], sizes = [16, 8], strides = [1, 1]} : vector<16x64xf32> to vector<16x8xf32>
    %103 = tpu.concatenate %101, %102 in 1 : vector<16x56xf32>, vector<16x8xf32> -> vector<16x64xf32>
    %104 = vector.extract_strided_slice %3 {offsets = [7, 0], sizes = [1, 64], strides = [1, 1]} : vector<9x64xf32> to vector<1x64xf32>
    %105 = vector.broadcast %104 : vector<1x64xf32> to vector<16x64xf32>
    %106 = arith.mulf %103, %105 : vector<16x64xf32>
    %107 = vector.extract_strided_slice %63 {offsets = [0, 9], sizes = [16, 55], strides = [1, 1]} : vector<16x64xf32> to vector<16x55xf32>
    %108 = vector.extract_strided_slice %63 {offsets = [0, 0], sizes = [16, 9], strides = [1, 1]} : vector<16x64xf32> to vector<16x9xf32>
    %109 = tpu.concatenate %107, %108 in 1 : vector<16x55xf32>, vector<16x9xf32> -> vector<16x64xf32>
    %110 = vector.extract_strided_slice %3 {offsets = [8, 0], sizes = [1, 64], strides = [1, 1]} : vector<9x64xf32> to vector<1x64xf32>
    %111 = vector.broadcast %110 : vector<1x64xf32> to vector<16x64xf32>
    %112 = arith.mulf %109, %111 : vector<16x64xf32>
    %113 = tpu.concatenate %70, %76, %82, %88, %63, %94, %100, %106, %112 in 0 : vector<16x64xf32>, vector<16x64xf32>, vector<16x64xf32>, vector<16x64xf32>, vector<16x64xf32>, vector<16x64xf32>, vector<16x64xf32>, vector<16x64xf32>, vector<16x64xf32> -> vector<144x64xf32>
    %114 = arith.truncf %113 : vector<144x64xf32> to vector<144x64xbf16>
    %cst_16 = arith.constant dense<0.000000e+00> : vector<32x64xf32>
    %115 = tpu.matmul %64, %114, %cst_16 {dimension_numbers = #tpu.dot_dimension_numbers<[1], [0], [0], [1], [0, 0, 1, 1], [], []>} : vector<32x144xbf16>, vector<144x64xbf16>, vector<32x64xf32> -> vector<32x64xf32>
    %c0_17 = arith.constant 0 : index
    %c0_18 = arith.constant 0 : index
    %116 = vector.load %arg8[%c0_17, %c0_18] : memref<32x1xf32, #tpu.memory_space<vmem>>, vector<32x1xf32>
    %117 = vector.broadcast %116 : vector<32x1xf32> to vector<32x64xf32>
    %118 = arith.addf %115, %117 : vector<32x64xf32>
    %cst_19 = arith.constant 0.000000e+00 : f32
    %119 = vector.broadcast %cst_19 : f32 to vector<32x64xf32>
    %120 = arith.maximumf %118, %119 : vector<32x64xf32>
    %121 = arith.truncf %120 : vector<32x64xf32> to vector<32x64xbf16>
    %c0_20 = arith.constant 0 : index
    %c0_21 = arith.constant 0 : index
    %122 = vector.load %arg9[%c0_20, %c0_21] : memref<64x5xbf16, #tpu.memory_space<vmem>>, vector<64x5xbf16>
    %cst_22 = arith.constant dense<0.000000e+00> : vector<32x5xf32>
    %123 = tpu.matmul %121, %122, %cst_22 {dimension_numbers = #tpu.dot_dimension_numbers<[1], [0], [0], [1], [0, 0, 1, 1], [], []>} : vector<32x64xbf16>, vector<64x5xbf16>, vector<32x5xf32> -> vector<32x5xf32>
    %c0_23 = arith.constant 0 : index
    %c0_24 = arith.constant 0 : index
    %124 = vector.load %arg10[%c0_23, %c0_24] : memref<32x32xbf16, #tpu.memory_space<vmem>>, vector<32x32xbf16>
    %125 = arith.truncf %123 : vector<32x5xf32> to vector<32x5xbf16>
    %cst_25 = arith.constant dense<0.000000e+00> : vector<32x5xf32>
    %126 = tpu.matmul %124, %125, %cst_25 {dimension_numbers = #tpu.dot_dimension_numbers<[1], [0], [0], [1], [0, 0, 1, 1], [], []>} : vector<32x32xbf16>, vector<32x5xbf16>, vector<32x5xf32> -> vector<32x5xf32>
    %c0_26 = arith.constant 0 : index
    %c0_27 = arith.constant 0 : index
    %127 = vector.load %arg11[%c0_26, %c0_27] : memref<32x1xf32, #tpu.memory_space<vmem>>, vector<32x1xf32>
    %128 = vector.broadcast %127 : vector<32x1xf32> to vector<32x5xf32>
    %129 = arith.addf %126, %128 : vector<32x5xf32>
    %cst_28 = arith.constant 0.000000e+00 : f32
    %130 = vector.broadcast %cst_28 : f32 to vector<32x5xf32>
    %131 = arith.maximumf %129, %130 : vector<32x5xf32>
    %132 = vector.extract_strided_slice %131 {offsets = [0, 0], sizes = [16, 1], strides = [1, 1]} : vector<32x5xf32> to vector<16x1xf32>
    %133 = vector.shape_cast %132 : vector<16x1xf32> to vector<16x1xf32>
    %134 = vector.broadcast %133 : vector<16x1xf32> to vector<16x64xf32>
    %135 = vector.extract_strided_slice %131 {offsets = [16, 1], sizes = [16, 4], strides = [1, 1]} : vector<32x5xf32> to vector<16x4xf32>
    %136 = arith.truncf %135 : vector<16x4xf32> to vector<16x4xbf16>
    %c0_29 = arith.constant 0 : index
    %c0_30 = arith.constant 0 : index
    %137 = vector.load %arg12[%c0_29, %c0_30] : memref<4x64xbf16, #tpu.memory_space<vmem>>, vector<4x64xbf16>
    %cst_31 = arith.constant dense<0.000000e+00> : vector<16x64xf32>
    %138 = tpu.matmul %136, %137, %cst_31 {dimension_numbers = #tpu.dot_dimension_numbers<[1], [0], [0], [1], [0, 0, 1, 1], [], []>} : vector<16x4xbf16>, vector<4x64xbf16>, vector<16x64xf32> -> vector<16x64xf32>
    %139 = tpu.concatenate %120, %134, %138 in 0 : vector<32x64xf32>, vector<16x64xf32>, vector<16x64xf32> -> vector<64x64xf32>
    %c0_32 = arith.constant 0 : index
    %c0_33 = arith.constant 0 : index
    %140 = vector.load %arg14[%c0_32, %c0_33] : memref<32x576xbf16, #tpu.memory_space<vmem>>, vector<32x576xbf16>
    %141 = vector.extract_strided_slice %139 {offsets = [0, 55], sizes = [64, 9], strides = [1, 1]} : vector<64x64xf32> to vector<64x9xf32>
    %142 = vector.extract_strided_slice %139 {offsets = [0, 0], sizes = [64, 55], strides = [1, 1]} : vector<64x64xf32> to vector<64x55xf32>
    %143 = tpu.concatenate %141, %142 in 1 : vector<64x9xf32>, vector<64x55xf32> -> vector<64x64xf32>
    %144 = vector.extract_strided_slice %3 {offsets = [0, 0], sizes = [1, 64], strides = [1, 1]} : vector<9x64xf32> to vector<1x64xf32>
    %145 = vector.broadcast %144 : vector<1x64xf32> to vector<64x64xf32>
    %146 = arith.mulf %143, %145 : vector<64x64xf32>
    %147 = vector.extract_strided_slice %139 {offsets = [0, 56], sizes = [64, 8], strides = [1, 1]} : vector<64x64xf32> to vector<64x8xf32>
    %148 = vector.extract_strided_slice %139 {offsets = [0, 0], sizes = [64, 56], strides = [1, 1]} : vector<64x64xf32> to vector<64x56xf32>
    %149 = tpu.concatenate %147, %148 in 1 : vector<64x8xf32>, vector<64x56xf32> -> vector<64x64xf32>
    %150 = vector.extract_strided_slice %3 {offsets = [1, 0], sizes = [1, 64], strides = [1, 1]} : vector<9x64xf32> to vector<1x64xf32>
    %151 = vector.broadcast %150 : vector<1x64xf32> to vector<64x64xf32>
    %152 = arith.mulf %149, %151 : vector<64x64xf32>
    %153 = vector.extract_strided_slice %139 {offsets = [0, 57], sizes = [64, 7], strides = [1, 1]} : vector<64x64xf32> to vector<64x7xf32>
    %154 = vector.extract_strided_slice %139 {offsets = [0, 0], sizes = [64, 57], strides = [1, 1]} : vector<64x64xf32> to vector<64x57xf32>
    %155 = tpu.concatenate %153, %154 in 1 : vector<64x7xf32>, vector<64x57xf32> -> vector<64x64xf32>
    %156 = vector.extract_strided_slice %3 {offsets = [2, 0], sizes = [1, 64], strides = [1, 1]} : vector<9x64xf32> to vector<1x64xf32>
    %157 = vector.broadcast %156 : vector<1x64xf32> to vector<64x64xf32>
    %158 = arith.mulf %155, %157 : vector<64x64xf32>
    %159 = vector.extract_strided_slice %139 {offsets = [0, 63], sizes = [64, 1], strides = [1, 1]} : vector<64x64xf32> to vector<64x1xf32>
    %160 = vector.extract_strided_slice %139 {offsets = [0, 0], sizes = [64, 63], strides = [1, 1]} : vector<64x64xf32> to vector<64x63xf32>
    %161 = tpu.concatenate %159, %160 in 1 : vector<64x1xf32>, vector<64x63xf32> -> vector<64x64xf32>
    %162 = vector.extract_strided_slice %3 {offsets = [3, 0], sizes = [1, 64], strides = [1, 1]} : vector<9x64xf32> to vector<1x64xf32>
    %163 = vector.broadcast %162 : vector<1x64xf32> to vector<64x64xf32>
    %164 = arith.mulf %161, %163 : vector<64x64xf32>
    %165 = vector.extract_strided_slice %139 {offsets = [0, 1], sizes = [64, 63], strides = [1, 1]} : vector<64x64xf32> to vector<64x63xf32>
    %166 = vector.extract_strided_slice %139 {offsets = [0, 0], sizes = [64, 1], strides = [1, 1]} : vector<64x64xf32> to vector<64x1xf32>
    %167 = tpu.concatenate %165, %166 in 1 : vector<64x63xf32>, vector<64x1xf32> -> vector<64x64xf32>
    %168 = vector.extract_strided_slice %3 {offsets = [5, 0], sizes = [1, 64], strides = [1, 1]} : vector<9x64xf32> to vector<1x64xf32>
    %169 = vector.broadcast %168 : vector<1x64xf32> to vector<64x64xf32>
    %170 = arith.mulf %167, %169 : vector<64x64xf32>
    %171 = vector.extract_strided_slice %139 {offsets = [0, 7], sizes = [64, 57], strides = [1, 1]} : vector<64x64xf32> to vector<64x57xf32>
    %172 = vector.extract_strided_slice %139 {offsets = [0, 0], sizes = [64, 7], strides = [1, 1]} : vector<64x64xf32> to vector<64x7xf32>
    %173 = tpu.concatenate %171, %172 in 1 : vector<64x57xf32>, vector<64x7xf32> -> vector<64x64xf32>
    %174 = vector.extract_strided_slice %3 {offsets = [6, 0], sizes = [1, 64], strides = [1, 1]} : vector<9x64xf32> to vector<1x64xf32>
    %175 = vector.broadcast %174 : vector<1x64xf32> to vector<64x64xf32>
    %176 = arith.mulf %173, %175 : vector<64x64xf32>
    %177 = vector.extract_strided_slice %139 {offsets = [0, 8], sizes = [64, 56], strides = [1, 1]} : vector<64x64xf32> to vector<64x56xf32>
    %178 = vector.extract_strided_slice %139 {offsets = [0, 0], sizes = [64, 8], strides = [1, 1]} : vector<64x64xf32> to vector<64x8xf32>
    %179 = tpu.concatenate %177, %178 in 1 : vector<64x56xf32>, vector<64x8xf32> -> vector<64x64xf32>
    %180 = vector.extract_strided_slice %3 {offsets = [7, 0], sizes = [1, 64], strides = [1, 1]} : vector<9x64xf32> to vector<1x64xf32>
    %181 = vector.broadcast %180 : vector<1x64xf32> to vector<64x64xf32>
    %182 = arith.mulf %179, %181 : vector<64x64xf32>
    %183 = vector.extract_strided_slice %139 {offsets = [0, 9], sizes = [64, 55], strides = [1, 1]} : vector<64x64xf32> to vector<64x55xf32>
    %184 = vector.extract_strided_slice %139 {offsets = [0, 0], sizes = [64, 9], strides = [1, 1]} : vector<64x64xf32> to vector<64x9xf32>
    %185 = tpu.concatenate %183, %184 in 1 : vector<64x55xf32>, vector<64x9xf32> -> vector<64x64xf32>
    %186 = vector.extract_strided_slice %3 {offsets = [8, 0], sizes = [1, 64], strides = [1, 1]} : vector<9x64xf32> to vector<1x64xf32>
    %187 = vector.broadcast %186 : vector<1x64xf32> to vector<64x64xf32>
    %188 = arith.mulf %185, %187 : vector<64x64xf32>
    %189 = tpu.concatenate %146, %152, %158, %164, %139, %170, %176, %182, %188 in 0 : vector<64x64xf32>, vector<64x64xf32>, vector<64x64xf32>, vector<64x64xf32>, vector<64x64xf32>, vector<64x64xf32>, vector<64x64xf32>, vector<64x64xf32>, vector<64x64xf32> -> vector<576x64xf32>
    %190 = arith.truncf %189 : vector<576x64xf32> to vector<576x64xbf16>
    %cst_34 = arith.constant dense<0.000000e+00> : vector<32x64xf32>
    %191 = tpu.matmul %140, %190, %cst_34 {dimension_numbers = #tpu.dot_dimension_numbers<[1], [0], [0], [1], [0, 0, 1, 1], [], []>} : vector<32x576xbf16>, vector<576x64xbf16>, vector<32x64xf32> -> vector<32x64xf32>
    %c0_35 = arith.constant 0 : index
    %c0_36 = arith.constant 0 : index
    %192 = vector.load %arg15[%c0_35, %c0_36] : memref<32x1xf32, #tpu.memory_space<vmem>>, vector<32x1xf32>
    %193 = vector.broadcast %192 : vector<32x1xf32> to vector<32x64xf32>
    %194 = arith.addf %191, %193 : vector<32x64xf32>
    %cst_37 = arith.constant 0.000000e+00 : f32
    %195 = vector.broadcast %cst_37 : f32 to vector<32x64xf32>
    %196 = arith.maximumf %194, %195 : vector<32x64xf32>
    %c0_38 = arith.constant 0 : index
    %c0_39 = arith.constant 0 : index
    %197 = vector.load %arg16[%c0_38, %c0_39] : memref<8x32xbf16, #tpu.memory_space<vmem>>, vector<8x32xbf16>
    %198 = arith.truncf %196 : vector<32x64xf32> to vector<32x64xbf16>
    %cst_40 = arith.constant dense<0.000000e+00> : vector<8x64xf32>
    %199 = tpu.matmul %197, %198, %cst_40 {dimension_numbers = #tpu.dot_dimension_numbers<[1], [0], [0], [1], [0, 0, 1, 1], [], []>} : vector<8x32xbf16>, vector<32x64xbf16>, vector<8x64xf32> -> vector<8x64xf32>
    %c0_41 = arith.constant 0 : index
    %c0_42 = arith.constant 0 : index
    %200 = vector.load %arg17[%c0_41, %c0_42] : memref<8x1xf32, #tpu.memory_space<vmem>>, vector<8x1xf32>
    %201 = vector.broadcast %200 : vector<8x1xf32> to vector<8x64xf32>
    %202 = arith.addf %199, %201 : vector<8x64xf32>
    %203 = arith.truncf %202 : vector<8x64xf32> to vector<8x64xbf16>
    %c0_43 = arith.constant 0 : index
    %c0_44 = arith.constant 0 : index
    %204 = vector.load %arg13[%c0_43, %c0_44] : memref<64x256xbf16, #tpu.memory_space<vmem>>, vector<64x256xbf16>
    %cst_45 = arith.constant dense<0.000000e+00> : vector<8x256xf32>
    %205 = tpu.matmul %203, %204, %cst_45 {dimension_numbers = #tpu.dot_dimension_numbers<[1], [0], [0], [1], [0, 0, 1, 1], [], []>} : vector<8x64xbf16>, vector<64x256xbf16>, vector<8x256xf32> -> vector<8x256xf32>
    %cst_46 = arith.constant dense<0xFF800000> : vector<256xf32>
    %206 = vector.multi_reduction <maximumf>, %205, %cst_46 [0] : vector<8x256xf32> to vector<256xf32>
    %207 = vector.shape_cast %206 : vector<256xf32> to vector<1x256xf32>
    %208 = vector.broadcast %207 : vector<1x256xf32> to vector<8x256xf32>
    %209 = arith.subf %205, %208 : vector<8x256xf32>
    %210 = math.exp %209 : vector<8x256xf32>
    %cst_47 = arith.constant dense<0.000000e+00> : vector<256xf32>
    %211 = vector.multi_reduction <add>, %210, %cst_47 [0] : vector<8x256xf32> to vector<256xf32>
    %212 = vector.shape_cast %211 : vector<256xf32> to vector<1x256xf32>
    %213 = tpu.reciprocal %212 {approx = true} : vector<1x256xf32> -> vector<1x256xf32>
    %214 = vector.broadcast %213 : vector<1x256xf32> to vector<8x256xf32>
    %215 = arith.mulf %210, %214 : vector<8x256xf32>
    %216 = vector.extract_strided_slice %215 {offsets = [0, 239], sizes = [8, 17], strides = [1, 1]} : vector<8x256xf32> to vector<8x17xf32>
    %217 = vector.extract_strided_slice %215 {offsets = [0, 0], sizes = [8, 239], strides = [1, 1]} : vector<8x256xf32> to vector<8x239xf32>
    %218 = tpu.concatenate %216, %217 in 1 : vector<8x17xf32>, vector<8x239xf32> -> vector<8x256xf32>
    %219 = vector.extract_strided_slice %2 {offsets = [0, 0], sizes = [1, 256], strides = [1, 1]} : vector<9x256xf32> to vector<1x256xf32>
    %220 = vector.broadcast %219 : vector<1x256xf32> to vector<8x256xf32>
    %221 = arith.mulf %218, %220 : vector<8x256xf32>
    %222 = vector.extract_strided_slice %215 {offsets = [0, 240], sizes = [8, 16], strides = [1, 1]} : vector<8x256xf32> to vector<8x16xf32>
    %223 = vector.extract_strided_slice %215 {offsets = [0, 0], sizes = [8, 240], strides = [1, 1]} : vector<8x256xf32> to vector<8x240xf32>
    %224 = tpu.concatenate %222, %223 in 1 : vector<8x16xf32>, vector<8x240xf32> -> vector<8x256xf32>
    %225 = vector.extract_strided_slice %2 {offsets = [1, 0], sizes = [1, 256], strides = [1, 1]} : vector<9x256xf32> to vector<1x256xf32>
    %226 = vector.broadcast %225 : vector<1x256xf32> to vector<8x256xf32>
    %227 = arith.mulf %224, %226 : vector<8x256xf32>
    %228 = vector.extract_strided_slice %215 {offsets = [0, 241], sizes = [8, 15], strides = [1, 1]} : vector<8x256xf32> to vector<8x15xf32>
    %229 = vector.extract_strided_slice %215 {offsets = [0, 0], sizes = [8, 241], strides = [1, 1]} : vector<8x256xf32> to vector<8x241xf32>
    %230 = tpu.concatenate %228, %229 in 1 : vector<8x15xf32>, vector<8x241xf32> -> vector<8x256xf32>
    %231 = vector.extract_strided_slice %2 {offsets = [2, 0], sizes = [1, 256], strides = [1, 1]} : vector<9x256xf32> to vector<1x256xf32>
    %232 = vector.broadcast %231 : vector<1x256xf32> to vector<8x256xf32>
    %233 = arith.mulf %230, %232 : vector<8x256xf32>
    %234 = vector.extract_strided_slice %215 {offsets = [0, 255], sizes = [8, 1], strides = [1, 1]} : vector<8x256xf32> to vector<8x1xf32>
    %235 = vector.extract_strided_slice %215 {offsets = [0, 0], sizes = [8, 255], strides = [1, 1]} : vector<8x256xf32> to vector<8x255xf32>
    %236 = tpu.concatenate %234, %235 in 1 : vector<8x1xf32>, vector<8x255xf32> -> vector<8x256xf32>
    %237 = vector.extract_strided_slice %2 {offsets = [3, 0], sizes = [1, 256], strides = [1, 1]} : vector<9x256xf32> to vector<1x256xf32>
    %238 = vector.broadcast %237 : vector<1x256xf32> to vector<8x256xf32>
    %239 = arith.mulf %236, %238 : vector<8x256xf32>
    %240 = vector.extract_strided_slice %215 {offsets = [0, 1], sizes = [8, 255], strides = [1, 1]} : vector<8x256xf32> to vector<8x255xf32>
    %241 = vector.extract_strided_slice %215 {offsets = [0, 0], sizes = [8, 1], strides = [1, 1]} : vector<8x256xf32> to vector<8x1xf32>
    %242 = tpu.concatenate %240, %241 in 1 : vector<8x255xf32>, vector<8x1xf32> -> vector<8x256xf32>
    %243 = vector.extract_strided_slice %2 {offsets = [5, 0], sizes = [1, 256], strides = [1, 1]} : vector<9x256xf32> to vector<1x256xf32>
    %244 = vector.broadcast %243 : vector<1x256xf32> to vector<8x256xf32>
    %245 = arith.mulf %242, %244 : vector<8x256xf32>
    %246 = vector.extract_strided_slice %215 {offsets = [0, 15], sizes = [8, 241], strides = [1, 1]} : vector<8x256xf32> to vector<8x241xf32>
    %247 = vector.extract_strided_slice %215 {offsets = [0, 0], sizes = [8, 15], strides = [1, 1]} : vector<8x256xf32> to vector<8x15xf32>
    %248 = tpu.concatenate %246, %247 in 1 : vector<8x241xf32>, vector<8x15xf32> -> vector<8x256xf32>
    %249 = vector.extract_strided_slice %2 {offsets = [6, 0], sizes = [1, 256], strides = [1, 1]} : vector<9x256xf32> to vector<1x256xf32>
    %250 = vector.broadcast %249 : vector<1x256xf32> to vector<8x256xf32>
    %251 = arith.mulf %248, %250 : vector<8x256xf32>
    %252 = vector.extract_strided_slice %215 {offsets = [0, 16], sizes = [8, 240], strides = [1, 1]} : vector<8x256xf32> to vector<8x240xf32>
    %253 = vector.extract_strided_slice %215 {offsets = [0, 0], sizes = [8, 16], strides = [1, 1]} : vector<8x256xf32> to vector<8x16xf32>
    %254 = tpu.concatenate %252, %253 in 1 : vector<8x240xf32>, vector<8x16xf32> -> vector<8x256xf32>
    %255 = vector.extract_strided_slice %2 {offsets = [7, 0], sizes = [1, 256], strides = [1, 1]} : vector<9x256xf32> to vector<1x256xf32>
    %256 = vector.broadcast %255 : vector<1x256xf32> to vector<8x256xf32>
    %257 = arith.mulf %254, %256 : vector<8x256xf32>
    %258 = vector.extract_strided_slice %215 {offsets = [0, 17], sizes = [8, 239], strides = [1, 1]} : vector<8x256xf32> to vector<8x239xf32>
    %259 = vector.extract_strided_slice %215 {offsets = [0, 0], sizes = [8, 17], strides = [1, 1]} : vector<8x256xf32> to vector<8x17xf32>
    %260 = tpu.concatenate %258, %259 in 1 : vector<8x239xf32>, vector<8x17xf32> -> vector<8x256xf32>
    %261 = vector.extract_strided_slice %2 {offsets = [8, 0], sizes = [1, 256], strides = [1, 1]} : vector<9x256xf32> to vector<1x256xf32>
    %262 = vector.broadcast %261 : vector<1x256xf32> to vector<8x256xf32>
    %263 = arith.mulf %260, %262 : vector<8x256xf32>
    %264 = tpu.concatenate %221, %227, %233, %239, %215, %245, %251, %257, %263 in 0 : vector<8x256xf32>, vector<8x256xf32>, vector<8x256xf32>, vector<8x256xf32>, vector<8x256xf32>, vector<8x256xf32>, vector<8x256xf32>, vector<8x256xf32>, vector<8x256xf32> -> vector<72x256xf32>
    %265 = arith.truncf %264 : vector<72x256xf32> to vector<72x256xbf16>
    %c0_48 = arith.constant 0 : index
    %c0_49 = arith.constant 0 : index
    %266 = vector.load %arg18[%c0_48, %c0_49] : memref<16x27xbf16, #tpu.memory_space<vmem>>, vector<16x27xbf16>
    %cst_50 = arith.constant dense<0.000000e+00> : vector<16x256xf32>
    %267 = tpu.matmul %266, %53, %cst_50 {dimension_numbers = #tpu.dot_dimension_numbers<[1], [0], [0], [1], [0, 0, 1, 1], [], []>} : vector<16x27xbf16>, vector<27x256xbf16>, vector<16x256xf32> -> vector<16x256xf32>
    %c0_51 = arith.constant 0 : index
    %c0_52 = arith.constant 0 : index
    %268 = vector.load %arg19[%c0_51, %c0_52] : memref<16x72xbf16, #tpu.memory_space<vmem>>, vector<16x72xbf16>
    %cst_53 = arith.constant dense<0.000000e+00> : vector<16x256xf32>
    %269 = tpu.matmul %268, %265, %cst_53 {dimension_numbers = #tpu.dot_dimension_numbers<[1], [0], [0], [1], [0, 0, 1, 1], [], []>} : vector<16x72xbf16>, vector<72x256xbf16>, vector<16x256xf32> -> vector<16x256xf32>
    %270 = arith.addf %267, %269 : vector<16x256xf32>
    %c0_54 = arith.constant 0 : index
    %c0_55 = arith.constant 0 : index
    %271 = vector.load %arg20[%c0_54, %c0_55] : memref<16x1xf32, #tpu.memory_space<vmem>>, vector<16x1xf32>
    %272 = vector.broadcast %271 : vector<16x1xf32> to vector<16x256xf32>
    %273 = arith.addf %270, %272 : vector<16x256xf32>
    %cst_56 = arith.constant 0.000000e+00 : f32
    %274 = vector.broadcast %cst_56 : f32 to vector<16x256xf32>
    %275 = arith.maximumf %273, %274 : vector<16x256xf32>
    %c0_57 = arith.constant 0 : index
    %c0_58 = arith.constant 0 : index
    %276 = vector.load %arg21[%c0_57, %c0_58] : memref<2x16xbf16, #tpu.memory_space<vmem>>, vector<2x16xbf16>
    %277 = arith.truncf %275 : vector<16x256xf32> to vector<16x256xbf16>
    %cst_59 = arith.constant dense<0.000000e+00> : vector<2x256xf32>
    %278 = tpu.matmul %276, %277, %cst_59 {dimension_numbers = #tpu.dot_dimension_numbers<[1], [0], [0], [1], [0, 0, 1, 1], [], []>} : vector<2x16xbf16>, vector<16x256xbf16>, vector<2x256xf32> -> vector<2x256xf32>
    %c0_60 = arith.constant 0 : index
    %c0_61 = arith.constant 0 : index
    %279 = vector.load %arg22[%c0_60, %c0_61] : memref<2x1xf32, #tpu.memory_space<vmem>>, vector<2x1xf32>
    %280 = vector.broadcast %279 : vector<2x1xf32> to vector<2x256xf32>
    %281 = arith.addf %278, %280 : vector<2x256xf32>
    %282 = vector.extract_strided_slice %281 {offsets = [0, 0], sizes = [1, 256], strides = [1, 1]} : vector<2x256xf32> to vector<1x256xf32>
    %283 = vector.extract_strided_slice %281 {offsets = [1, 0], sizes = [1, 256], strides = [1, 1]} : vector<2x256xf32> to vector<1x256xf32>
    %284 = arith.subf %282, %283 : vector<1x256xf32>
    %285 = math.exp %284 : vector<1x256xf32>
    %cst_62 = arith.constant 1.000000e+00 : f32
    %286 = vector.broadcast %cst_62 : f32 to vector<1x256xf32>
    %287 = arith.addf %286, %285 : vector<1x256xf32>
    %cst_63 = arith.constant 1.000000e+00 : f32
    %288 = vector.broadcast %cst_63 : f32 to vector<1x256xf32>
    %289 = arith.divf %288, %287 : vector<1x256xf32>
    %cst_64 = arith.constant 1.000000e+00 : f32
    %290 = vector.broadcast %cst_64 : f32 to vector<1x256xf32>
    %291 = arith.subf %290, %289 : vector<1x256xf32>
    %292 = tpu.concatenate %291, %289 in 0 : vector<1x256xf32>, vector<1x256xf32> -> vector<2x256xf32>
    %c0_65 = arith.constant 0 : index
    %c0_66 = arith.constant 0 : index
    %c0_67 = arith.constant 0 : index
    %293 = vector.load %arg23[%c0_65, %c0_66, %c0_67] : memref<1x2x256xf32, #tpu.memory_space<vmem>>, vector<1x2x256xf32>
    %294 = vector.shape_cast %293 : vector<1x2x256xf32> to vector<2x256xf32>
    %295 = vector.shape_cast %292 : vector<2x256xf32> to vector<1x2x256xf32>
    tpu.vector_store %arg23[%c0_65, %c0_66, %c0_67], %295 {strides = array<i32>} : memref<1x2x256xf32, #tpu.memory_space<vmem>>, vector<1x2x256xf32>,
    return
  }
  func.func @transform_0(%arg0: i32) -> (i32, i32, i32) {
    %c0_i32 = arith.constant 0 : i32
    %c0_i32_0 = arith.constant 0 : i32
    %c0_i32_1 = arith.constant 0 : i32
    return %arg0, %c0_i32, %c0_i32_0 : i32, i32, i32
  }
  func.func @transform_1(%arg0: i32) -> (i32, i32) {
    %c0_i32 = arith.constant 0 : i32
    %c0_i32_0 = arith.constant 0 : i32
    %c0_i32_1 = arith.constant 0 : i32
    return %c0_i32, %c0_i32_0 : i32, i32
  }
  func.func @transform_2(%arg0: i32) -> (i32, i32) {
    %c0_i32 = arith.constant 0 : i32
    %c0_i32_0 = arith.constant 0 : i32
    %c0_i32_1 = arith.constant 0 : i32
    return %c0_i32, %c0_i32_0 : i32, i32
  }
  func.func @transform_3(%arg0: i32) -> (i32, i32) {
    %c0_i32 = arith.constant 0 : i32
    %c0_i32_0 = arith.constant 0 : i32
    %c0_i32_1 = arith.constant 0 : i32
    return %c0_i32, %c0_i32_0 : i32, i32
  }
  func.func @transform_4(%arg0: i32) -> (i32, i32) {
    %c0_i32 = arith.constant 0 : i32
    %c0_i32_0 = arith.constant 0 : i32
    %c0_i32_1 = arith.constant 0 : i32
    return %c0_i32, %c0_i32_0 : i32, i32
  }
  func.func @transform_5(%arg0: i32) -> (i32, i32) {
    %c0_i32 = arith.constant 0 : i32
    %c0_i32_0 = arith.constant 0 : i32
    %c0_i32_1 = arith.constant 0 : i32
    return %c0_i32, %c0_i32_0 : i32, i32
  }
  func.func @transform_6(%arg0: i32) -> (i32, i32) {
    %c0_i32 = arith.constant 0 : i32
    %c0_i32_0 = arith.constant 0 : i32
    %c0_i32_1 = arith.constant 0 : i32
    return %c0_i32, %c0_i32_0 : i32, i32
  }
  func.func @transform_7(%arg0: i32) -> (i32, i32) {
    %c0_i32 = arith.constant 0 : i32
    %c0_i32_0 = arith.constant 0 : i32
    %c0_i32_1 = arith.constant 0 : i32
    return %c0_i32, %c0_i32_0 : i32, i32
  }
  func.func @transform_8(%arg0: i32) -> (i32, i32) {
    %c0_i32 = arith.constant 0 : i32
    %c0_i32_0 = arith.constant 0 : i32
    %c0_i32_1 = arith.constant 0 : i32
    return %c0_i32, %c0_i32_0 : i32, i32
  }
  func.func @transform_9(%arg0: i32) -> (i32, i32) {
    %c0_i32 = arith.constant 0 : i32
    %c0_i32_0 = arith.constant 0 : i32
    %c0_i32_1 = arith.constant 0 : i32
    return %c0_i32, %c0_i32_0 : i32, i32
  }
  func.func @transform_10(%arg0: i32) -> (i32, i32) {
    %c0_i32 = arith.constant 0 : i32
    %c0_i32_0 = arith.constant 0 : i32
    %c0_i32_1 = arith.constant 0 : i32
    return %c0_i32, %c0_i32_0 : i32, i32
  }
  func.func @transform_11(%arg0: i32) -> (i32, i32) {
    %c0_i32 = arith.constant 0 : i32
    %c0_i32_0 = arith.constant 0 : i32
    %c0_i32_1 = arith.constant 0 : i32
    return %c0_i32, %c0_i32_0 : i32, i32
  }
  func.func @transform_12(%arg0: i32) -> (i32, i32) {
    %c0_i32 = arith.constant 0 : i32
    %c0_i32_0 = arith.constant 0 : i32
    %c0_i32_1 = arith.constant 0 : i32
    return %c0_i32, %c0_i32_0 : i32, i32
  }
  func.func @transform_13(%arg0: i32) -> (i32, i32) {
    %c0_i32 = arith.constant 0 : i32
    %c0_i32_0 = arith.constant 0 : i32
    %c0_i32_1 = arith.constant 0 : i32
    return %c0_i32, %c0_i32_0 : i32, i32
  }
  func.func @transform_14(%arg0: i32) -> (i32, i32) {
    %c0_i32 = arith.constant 0 : i32
    %c0_i32_0 = arith.constant 0 : i32
    %c0_i32_1 = arith.constant 0 : i32
    return %c0_i32, %c0_i32_0 : i32, i32
  }
  func.func @transform_15(%arg0: i32) -> (i32, i32) {
    %c0_i32 = arith.constant 0 : i32
    %c0_i32_0 = arith.constant 0 : i32
    %c0_i32_1 = arith.constant 0 : i32
    return %c0_i32, %c0_i32_0 : i32, i32
  }
  func.func @transform_16(%arg0: i32) -> (i32, i32) {
    %c0_i32 = arith.constant 0 : i32
    %c0_i32_0 = arith.constant 0 : i32
    %c0_i32_1 = arith.constant 0 : i32
    return %c0_i32, %c0_i32_0 : i32, i32
  }
  func.func @transform_17(%arg0: i32) -> (i32, i32) {
    %c0_i32 = arith.constant 0 : i32
    %c0_i32_0 = arith.constant 0 : i32
    %c0_i32_1 = arith.constant 0 : i32
    return %c0_i32, %c0_i32_0 : i32, i32
  }
  func.func @transform_18(%arg0: i32) -> (i32, i32) {
    %c0_i32 = arith.constant 0 : i32
    %c0_i32_0 = arith.constant 0 : i32
    %c0_i32_1 = arith.constant 0 : i32
    return %c0_i32, %c0_i32_0 : i32, i32
  }
  func.func @transform_19(%arg0: i32) -> (i32, i32) {
    %c0_i32 = arith.constant 0 : i32
    %c0_i32_0 = arith.constant 0 : i32
    %c0_i32_1 = arith.constant 0 : i32
    return %c0_i32, %c0_i32_0 : i32, i32
  }
  func.func @transform_20(%arg0: i32) -> (i32, i32) {
    %c0_i32 = arith.constant 0 : i32
    %c0_i32_0 = arith.constant 0 : i32
    %c0_i32_1 = arith.constant 0 : i32
    return %c0_i32, %c0_i32_0 : i32, i32
  }
  func.func @transform_21(%arg0: i32) -> (i32, i32) {
    %c0_i32 = arith.constant 0 : i32
    %c0_i32_0 = arith.constant 0 : i32
    %c0_i32_1 = arith.constant 0 : i32
    return %c0_i32, %c0_i32_0 : i32, i32
  }
  func.func @transform_22(%arg0: i32) -> (i32, i32, i32) {
    %c0_i32 = arith.constant 0 : i32
    %c0_i32_0 = arith.constant 0 : i32
    %c0_i32_1 = arith.constant 0 : i32
    return %arg0, %c0_i32, %c0_i32_0 : i32, i32, i32
  }
}

</mosaic_0001>

<bundles_post_ra>
// kernel: core_seg_model_forward.1
= control target key start
LH: loop header
LB: loop body
LE: loop exit
PB: predicated region body
PF: predicated region fallthrough
CT: control target
= control target key end

     0   :  { %s4887_s0 = inlined_call_operand.vmem [shape: f32[2,3,256], index: 0, kind: input, shape index: {}]   ;;  %s4888_s1 = inlined_call_operand.vmem [shape: f32[9,256], index: 1, kind: input, shape index: {}]   ;;  %s4889_s2 = inlined_call_operand.vmem [shape: f32[9,64], index: 2, kind: input, shape index: {}]   ;;  %s4890_s3 = inlined_call_operand.vmem [shape: bf16[256,64], index: 3, kind: input, shape index: {}]   ;;  %s4891_s4 = inlined_call_operand.vmem [shape: bf16[16,27], index: 4, kind: input, shape index: {}]   ;;  %s4892_s5 = inlined_call_operand.vmem [shape: f32[16,1], index: 5, kind: input, shape index: {}]   ;;  %s4893_s6 = inlined_call_operand.vmem [shape: bf16[32,144], index: 6, kind: input, shape index: {}]   ;;  %s4894_s7 = inlined_call_operand.vmem [shape: f32[32,1], index: 7, kind: input, shape index: {}]   ;;  %s4895_s8 = inlined_call_operand.vmem [shape: bf16[64,5], index: 8, kind: input, shape index: {}]   ;;  %s4896_s9 = inlined_call_operand.vmem [shape: bf16[32,32], index: 9, kind: input, shape index: {}]   ;;  %s4897_s10 = inlined_call_operand.vmem [shape: f32[32,1], index: 10, kind: input, shape index: {}]   ;;  %s4898_s11 = inlined_call_operand.vmem [shape: bf16[4,64], index: 11, kind: input, shape index: {}]   ;;  %s4899_s12 = inlined_call_operand.vmem [shape: bf16[64,256], index: 12, kind: input, shape index: {}]   ;;  %s4900_s13 = inlined_call_operand.vmem [shape: bf16[32,576], index: 13, kind: input, shape index: {}]   ;;  %s4901_s14 = inlined_call_operand.vmem [shape: f32[32,1], index: 14, kind: input, shape index: {}]   ;;  %s4902_s15 = inlined_call_operand.vmem [shape: bf16[8,32], index: 15, kind: input, shape index: {}]   ;;  %s4903_s16 = inlined_call_operand.vmem [shape: f32[8,1], index: 16, kind: input, shape index: {}]   ;;  %s4904_s17 = inlined_call_operand.vmem [shape: bf16[16,27], index: 17, kind: input, shape index: {}]   ;;  %s4905_s18 = inlined_call_operand.vmem [shape: bf16[16,72], index: 18, kind: input, shape index: {}]   ;;  %s4906_s19 = inlined_call_operand.vmem [shape: f32[16,1], index: 19, kind: input, shape index: {}]   ;;  %s4907_s20 = inlined_call_operand.vmem [shape: bf16[2,16], index: 20, kind: input, shape index: {}]   ;;  %s4908_s21 = inlined_call_operand.vmem [shape: f32[2,1], index: 21, kind: input, shape index: {}]   ;;  %s4909_s22 = inlined_call_operand.vmem [shape: f32[2,2,256], index: 22, kind: output, shape index: {}]  }
   0x1   :  { %4996 = sst [smem:[#allocation35_spill]] %s4887_s0 }
   0x2   :  { %4997 = sst [smem:[#allocation36_spill]] %s4888_s1 }
   0x3   :  { %4998 = sst [smem:[#allocation37_spill]] %s4889_s2 }
   0x4   :  { %4999 = sst [smem:[#allocation38_spill]] %s4890_s3  ;;  %s3573_s3 = smov 0  }
   0x5   :  { %5000 = sst [smem:[#allocation39_spill]] %s4891_s4 }
   0x6   :  { %5001 = sst [smem:[#allocation40_spill]] %s4892_s5 }
   0x7   :  { %5002 = sst [smem:[#allocation41_spill]] %s4893_s6 }
   0x8   :  { %5003 = sst [smem:[#allocation42_spill]] %s4894_s7 }
   0x9   :  { %5004 = sst [smem:[#allocation43_spill]] %s4895_s8 }
   0xa   :  { %5005 = sst [smem:[#allocation44_spill]] %s4896_s9 }
   0xb   :  { %5006 = sst [smem:[#allocation45_spill]] %s4897_s10 }
   0xc   :  { %5007 = sst [smem:[#allocation46_spill]] %s4898_s11 }
   0xd LB: > { %s3064_s28 = sadd.s32 4294967295, %s3430_s3   ;;  %p3068_p0 = scmp.ge.s32.totalorder %s3430_s3, 1  ;;  %s3430_s3 = sphi %s3573_s3, %s32_s3  }
   0xe   : > { %p612_p1 = scmp.lt.s32.totalorder %s3430_s3, 3 }
  0x10   : > { %p613_p2 = pnand %p3068_p0, %p612_p1 }
  0x12   : > { %616 = sbr.rel (%p613_p2) target bundleno = 3359 (0xd1f), region = 108 }
  0x19   : > { %p674_p3 = scmp.lt.s32.totalorder %s3064_s28, 1  ;;  %s5008_s4 = sld [smem:[#allocation38_spill]]  ;;  %v704_v18 = vlaneseq  ;;  %vm739_vm0 = vcmask 121856   ;;  %vm759_vm1 = vcmask 7168   ;;  %vm719_vm2 = vcmask 130048  }
  0x1a   : > { %s5009_s27 = sld [smem:[#allocation35_spill]]  ;;  %s4931_s23 = smov 1   ;;  %vm778_vm3 = vcmask 1039360   ;;  %vm699_vm4 = vcmask 138240   ;;  %vm4965_vm5 = vcmask 924672   ;;  %vm892_vm6 = vcmask 1042432  }
  0x1b   : > { %s5124_s28 = smov (!%p674_p3, %s3064_s28), 1  ;;  %s4915_s1 = smov 15   ;;  %v705_v19 = vshrl.u32 %v704_v18, 7  ;;  %vm4960_vm7 = vcmask 1040384   ;;  %vm895_vm8 = vcmask 1045504   ;;  %vm4962_vm9 = vcmask 1043456  }
  0x1c   : > { %s3142_s24 = sshll.u32 %s5124_s28, 3  ;;  %s4923_s26 = smov 16   ;;  %vm904_vm10 = vcmask 1046528   ;;  %vm4964_vm11 = vcmask 916480   ;;  %vm4963_vm12 = vcmask 908288   ;;  %vm907_vm13 = vcmask 1041408  }
  0x1d   : > { %s4955_s25 = smov 127   ;;  %s4919_s30 = smov 112   ;;  %v3663_v22 = vsub.s32 2, %v705_v19  ;;  %v3665_v23 = vsub.s32 3, %v705_v19  ;;  %v3677_v26 = vsub.s32 1, %v705_v19  ;;  %v3679_v29 = vsub.s32 5, %v705_v19 }
  0x1e   : > { %s5010_s6 = sld [smem:[#allocation36_spill]]  ;;  %v3699_v36 = vsub.s32 0, %v705_v19  ;;  %v3719_v44 = vsub.s32 6, %v705_v19  ;;  %vm910_vm14 = vcmask 1044480   ;;  %vm3441_vm15 = vmmov 0   ;;  %s5029_s2 = sld [smem:[#allocation40_spill]] }
  0x1f   : > { %v3347_v0 = vld [vmem:[%s5008_s4 + $0x40] sm:$0xff]   ;;  %v3349_v2 = vld [vmem:[%s5008_s4 + $0x48] sm:$0xff]   ;;  %v3351_v4 = vld [vmem:[%s5008_s4 + $0x50] sm:$0xff]   ;;  %s5031_s5 = sld [smem:[#allocation39_spill]]  ;;  %s4929_s0 = smov 72  }
  0x20   : > { %v3348_v1 = vld [vmem:[%s5008_s4] sm:$0xff]   ;;  %3144 = vmatprep.subr.bf16.mxu0 %v3347_v0  ;;  %v3350_v3 = vld [vmem:[%s5008_s4 + $0x8] sm:$0xff]   ;;  %s678_s29 = scalar_lea.vmem %s5009_s27, %s3142_s24  ;;  %v3352_v7 = vld [vmem:[%s5008_s4 + $0x10] sm:$0xff]   ;;  %s4925_s24 = smov 17  }
  0x21   : > { %3145 = vmatpush3.bf16.msra.mxu0 %v3348_v1  ;;  %v3602_v5 = vld [vmem:[%s678_s29] sm:$0x77]  ;;  %v3353_v8 = vld [vmem:[%s5008_s4 + $0x58] sm:$0xff]   ;;  %v3357_v12 = vld [vmem:[%s5008_s4 + $0x68] sm:$0xff]   ;;  %s4921_s29 = smov 113   ;;  %s4941_s27 = smov 73  }
  0x22   : > { %3146 = vmatprep.subr.bf16.mxu0 %v3349_v2  ;;  %757 = vrot.lane.b32.xlu1 %v3602_v5, %s4931_s23  ;;  %v693_v6 = vcombine.high %v3602_v5, %v3602_v5  ;;  %v3354_v9 = vld [vmem:[%s5008_s4 + $0x18] sm:$0xff]   ;;  %v3355_v10 = vld [vmem:[%s5008_s4 + $0x60] sm:$0xff]   ;;  %v3358_v13 = vld [vmem:[%s5008_s4 + $0x28] sm:$0xff]   ;;  %v872_v39 = vcombine.low %v3602_v5, %v3602_v5  ;;  %s5033_s7 = sld [smem:[#allocation42_spill]]  ;;  %s5034_s10 = sld [smem:[#allocation45_spill]] }
  0x23   : > { %737 = vrot.lane.b32.xlu0 %v3602_v5, %s4915_s1  ;;  %v3356_v11 = vld [vmem:[%s5008_s4 + $0x20] sm:$0xff]   ;;  %v3359_v14 = vld [vmem:[%s5008_s4 + $0x70] sm:$0xff]   ;;  %v3361_v16 = vld [vmem:[%s5008_s4 + $0x78] sm:$0xff]   ;;  %s5036_s8 = sld [smem:[#allocation43_spill]]  ;;  %s5037_s9 = sld [smem:[#allocation44_spill]] }
  0x24   : > { %v3360_v15 = vld [vmem:[%s5008_s4 + $0x30] sm:$0xff]   ;;  %v3362_v17 = vld [vmem:[%s5008_s4 + $0x38] sm:$0xff]   ;;  %v3670_v24 = vld [vmem:[%s5010_s6] sm:$0xff]  ;;  %s5038_s11 = sld [smem:[#allocation46_spill]]  ;;  %s5049_s4 = smov 8  }
  0x25   : > { %3147 = vmatpush3.bf16.msra.mxu0 %v3350_v3  ;;  %v3675_v25 = vld [vmem:[%s5010_s6 + $0x8] sm:$0xff]  ;;  %v3683_v30 = vrot.slane %v3670_v24, %v3663_v22  ;;  %v3691_v32 = vrot.slane %v3670_v24, %v3665_v23  ;;  %v3703_v37 = vrot.slane %v3670_v24, %v3677_v26  ;;  %v3713_v42 = vrot.slane %v3670_v24, %v3679_v29 }
  0x26   : > { %3148 = vmatprep.subr.bf16.mxu0 %v3351_v4  ;;  %717 = vrot.lane.b32.xlu1 %v3602_v5, %s4923_s26  ;;  %v3687_v31 = vrot.slane %v3675_v25, %v3663_v22  ;;  %v3697_v35 = vrot.slane %v3675_v25, %v3665_v23  ;;  %v3707_v38 = vrot.slane %v3675_v25, %v3677_v26 }
  0x27   : > { %734 = vrot.lane.b32.xlu0 %v693_v6, %s4915_s1  ;;  %s4917_s1 = smov 111   ;;  %5011 = vst [vmem:[#allocation2_spill] sm:$0xff] %v3683_v30  ;;  %5013 = vst [vmem:[#allocation4_spill] sm:$0xff] %v3691_v32  ;;  %v3717_v43 = vrot.slane %v3675_v25, %v3679_v29  ;;  %v3729_v51 = vrot.slane %v3670_v24, %v3699_v36  ;;  %v3735_v54 = vrot.slane %v3675_v25, %v3699_v36 }
  0x28   : > { %5012 = vst [vmem:[#allocation3_spill] sm:$0xff] %v3687_v31  ;;  %5014 = vst [vmem:[#allocation5_spill] sm:$0xff] %v3697_v35  ;;  %v3739_v59 = vrot.slane %v3670_v24, %v3719_v44  ;;  %v3749_v4 = vrot.slane %v3675_v25, %v3719_v44 }
  0x29   : > { %3149 = vmatpush3.bf16.msra.mxu0 %v3352_v7  ;;  %5015 = vst [vmem:[#allocation6_spill] sm:$0xff] %v3703_v37  ;;  %5016 = vst [vmem:[#allocation7_spill] sm:$0xff] %v3707_v38 }
  0x2a   : > { %3150 = vmatprep.subr.bf16.mxu0 %v3353_v8  ;;  %754 = vrot.lane.b32.xlu1 %v693_v6, %s4931_s23  ;;  %5017 = vst [vmem:[#allocation8_spill] sm:$0xff] %v3713_v42  ;;  %5018 = vst [vmem:[#allocation9_spill] sm:$0xff] %v3717_v43 }
  0x2b   : > { %714 = vrot.lane.b32.xlu0 %v693_v6, %s4923_s26  ;;  %5019 = vst [vmem:[#allocation10_spill] sm:$0xff] %v3729_v51  ;;  %5020 = vst [vmem:[#allocation11_spill] sm:$0xff] %v3735_v54  ;;  %s4935_s26 = smov 65  }
  0x2c   : > { %5021 = vst [vmem:[#allocation12_spill] sm:$0xff] %v3739_v59  ;;  %5022 = vst [vmem:[#allocation13_spill] sm:$0xff] %v3749_v4 }
  0x2d   : > { %3151 = vmatpush3.bf16.msra.mxu0 %v3354_v9 }
  0x2e   : > { %3152 = vmatprep.subr.bf16.mxu0 %v3355_v10  ;;  %776 = vrot.lane.b32.xlu1 %v693_v6, %s4955_s25 }
  0x2f   : > { %774 = vrot.lane.b32.xlu0 %v3602_v5, %s4955_s25 }
  0x31   : > { %3153 = vmatpush3.bf16.msra.mxu0 %v3356_v11 }
  0x32   : > { %3154 = vmatprep.subr.bf16.mxu0 %v3357_v12  ;;  %697 = vrot.lane.b32.xlu1 %v3602_v5, %s4925_s24 }
  0x33   : > { %694 = vrot.lane.b32.xlu0 %v693_v6, %s4925_s24  ;;  %s4933_s24 = smov 63  }
  0x35   : > { %3155 = vmatpush3.bf16.msra.mxu0 %v3358_v13 }
  0x36   : > { %3156 = vmatprep.subr.bf16.mxu0 %v3359_v14  ;;  %796 = vrot.lane.b32.xlu1 %v693_v6, %s4921_s29 }
  0x37   : > { %794 = vrot.lane.b32.xlu0 %v3602_v5, %s4921_s29  ;;  %s4947_s29 = smov 7  }
  0x39   : > { %3157 = vmatpush3.bf16.msra.mxu0 %v3360_v15 }
  0x3a   : > { %3158 = vmatprep.subr.bf16.mxu0 %v3361_v16  ;;  %816 = vrot.lane.b32.xlu1 %v693_v6, %s4919_s30 }
  0x3b   : > { %814 = vrot.lane.b32.xlu0 %v3602_v5, %s4919_s30  ;;  %s4951_s30 = smov 71  }
  0x3d   : > { %3159 = vmatpush3.bf16.msra.mxu0 %v3362_v17 }
  0x3e   : > { %836 = vrot.lane.b32.xlu1 %v693_v6, %s4917_s1  ;;  %v3751_v6 = vsub.s32 7, %v705_v19 }
  0x3f   : > { %834 = vrot.lane.b32.xlu0 %v3602_v5, %s4917_s1  ;;  %s4939_s1 = smov 9  }
  0x94   : > { %v758_v20 = vpop.permute.xlu1 %757 }
  0x95   : > { %v738_v21 = vpop.permute.xlu0 %737 }
  0x98   : > { %v718_v27 = vpop.permute.xlu1 %717 }
  0x99   : > { %v735_v28 = vpop.permute.xlu0 %734 }
  0x9a   : > { %v740_v33 = vsel %vm739_vm0, %v738_v21, %v735_v28  ;;  %v743_v34 = vsel %vm739_vm0, %v735_v28, %v738_v21  ;;  %v3767_v21 = vrot.slane %v3675_v25, %v3751_v6 }
  0x9b   : > { %v752_v45 = vmul.f32 %v3683_v30, %v743_v34  ;;  %v753_v46 = vmul.f32 %v3687_v31, %v740_v33 }
  0x9c   : > { %v755_v40 = vpop.permute.xlu1 %754  ;;  %5024 = vst [vmem:[#allocation15_spill] sm:$0xff] %v3767_v21 }
  0x9d   : > { %v715_v41 = vpop.permute.xlu0 %714  ;;  %v760_v47 = vsel %vm759_vm1, %v758_v20, %v755_v40  ;;  %v763_v48 = vsel %vm759_vm1, %v755_v40, %v758_v20  ;;  %v862_v60 = vrot.slane %v752_v45, 2  ;;  %v863_v61 = vrot.slane %v753_v46, 2 }
  0x9e   : > { %v772_v49 = vmul.f32 %v3691_v32, %v763_v48  ;;  %v773_v50 = vmul.f32 %v3697_v35, %v760_v47  ;;  %v720_v52 = vsel %vm719_vm2, %v718_v27, %v715_v41  ;;  %v723_v53 = vsel %vm719_vm2, %v715_v41, %v718_v27 }
  0x9f   : > { %v732_v0 = vmul.f32 %v3703_v37, %v723_v53  ;;  %v733_v1 = vmul.f32 %v3707_v38, %v720_v52  ;;  %v3763_v20 = vrot.slane %v3670_v24, %v3751_v6  ;;  %v2268_v38 = vld [vmem:[%s4901_s14 + $0x8] sm:$0xff] }
  0xa0   : > { %v868_v55 = vrot.slane %v772_v49, 7  ;;  %v869_v56 = vrot.slane %v773_v50, 7  ;;  %v777_v57 = vpop.permute.xlu1 %776 }
  0xa1   : > { %v775_v58 = vpop.permute.xlu0 %774  ;;  %v856_v15 = vrot.slane %v732_v0, 5  ;;  %v857_v16 = vrot.slane %v733_v1, 5  ;;  %5023 = vst [vmem:[#allocation14_spill] sm:$0xff] %v3763_v20 }
  0xa2   : > { %v779_v62 = vsel %vm778_vm3, %v775_v58, %v777_v57  ;;  %v783_v63 = vsel %vm778_vm3, %v777_v57, %v775_v58  ;;  %v900_v11 = vsel %vm4960_vm7, %v863_v61, %v869_v56  ;;  %v899_v12 = vsel %vm4960_vm7, %v862_v60, %v868_v55 }
  0xa3   : > { %v792_v2 = vmul.f32 %v3713_v42, %v779_v62  ;;  %v793_v3 = vmul.f32 %v3717_v43, %v783_v63  ;;  %v903_v19 = vsel %vm4962_vm9, %v900_v11, %v3602_v5  ;;  %v902_v27 = vsel %vm4962_vm9, %v899_v12, %v872_v39  ;;  %v3074_v62 = vld [vmem:[%s5010_s6 + $0x18] ss:$0 sm:$0xff] }
  0xa4   : > { %v698_v9 = vpop.permute.xlu1 %697  ;;  %vm1268_vm7 = vcmask 515072   ;;  %vm1310_vm9 = vcmask 457728  }
  0xa5   : > { %v876_v7 = vrot.slane %v792_v2, 1  ;;  %v877_v8 = vrot.slane %v793_v3, 1  ;;  %v695_v10 = vpop.permute.xlu0 %694 }
  0xa6   : > { %v700_v13 = vsel %vm699_vm4, %v698_v9, %v695_v10  ;;  %v703_v14 = vsel %vm699_vm4, %v695_v10, %v698_v9 }
  0xa7   : > { %v712_v17 = vmul.f32 %v3729_v51, %v703_v14  ;;  %v713_v18 = vmul.f32 %v3735_v54, %v700_v13  ;;  %v906_v40 = vsel %vm904_vm10, %v903_v19, %v877_v8  ;;  %v905_v45 = vsel %vm904_vm10, %v902_v27, %v876_v7 }
  0xa8   : > { %v797_v28 = vpop.permute.xlu1 %796  ;;  %v4968_v19 = vmov 0   ;;  %vm1206_vm10 = vcmask 64512  }
  0xa9   : > { %v795_v33 = vpop.permute.xlu0 %794  ;;  %v894_v34 = vsel %vm892_vm6, %v713_v18, %v857_v16  ;;  %v893_v41 = vsel %vm892_vm6, %v712_v17, %v856_v15  ;;  %v4970_v18 = vmov 0.0   ;;  %3344 = vset.pattern.permute.xlu0 %v4968_v19  ;;  %3345 = vset.pattern.permute.xlu1 %v4968_v19  ;;  %vm4961_vm6 = vcmask 220160  }
  0xaa   : > { %v799_v5 = vsel %vm4965_vm5, %v795_v33, %v797_v28  ;;  %v803_v46 = vsel %vm4965_vm5, %v797_v28, %v795_v33  ;;  %v897_v24 = vsel %vm895_vm8, %v894_v34, %v863_v61  ;;  %v896_v47 = vsel %vm895_vm8, %v893_v41, %v862_v60  ;;  %v3073_v61 = vld [vmem:[%s5010_s6 + $0x10] ss:$0 sm:$0xff]  ;;  %3252 = vmatprep.subr.bf16.mxu1 %v4970_v18 }
  0xab   : > { %v812_v25 = vmul.f32 %v3739_v59, %v799_v5  ;;  %v813_v39 = vmul.f32 %v3749_v4, %v803_v46  ;;  %v3778_v48 = vpack.c.bf16 %v906_v40, %v897_v24  ;;  %v3780_v49 = vpack.c.bf16 %v905_v45, %v896_v47  ;;  %3256 = vmatprep.mubr.msk.bf16.mxu1 %vm3441_vm15, %v4970_v18 }
  0xac   : > { %v817_v50 = vpop.permute.xlu1 %816  ;;  %vm1580_vm5 = vcmask 261120  }
  0xad   : > { %5025 = vst [vmem:[#allocation16_spill] sm:$0xff] %v3778_v48  ;;  %5026 = vst [vmem:[#allocation17_spill] sm:$0xff] %v3780_v49  ;;  %1077 = vmatprep.mubr.bf16.mxu0 %v3778_v48  ;;  %v815_v52 = vpop.permute.xlu0 %814  ;;  %v882_v53 = vrot.slane %v812_v25, 6  ;;  %v883_v55 = vrot.slane %v813_v39, 6  ;;  %v3443_v39 = vmov 65535  }
  0xae   : > { %v819_v56 = vsel %vm4964_vm11, %v815_v52, %v817_v50  ;;  %v823_v57 = vsel %vm4964_vm11, %v817_v50, %v815_v52  ;;  %1078 = vmatmul.mubr.bf16.vlgmr.msra.gmra.mrb[0].mxu0 %v3780_v49  ;;  %v1119_v50 = vsel %vm910_vm14, 4294967295, %v3443_v39  ;;  %vm1484_vm11 = vcmask 523264  }
  0xaf   : > { %v832_v58 = vmul.f32 %v3763_v20, %v819_v56  ;;  %v833_v60 = vmul.f32 %v3767_v21, %v823_v57  ;;  %v909_v10 = vsel %vm907_vm13, %v877_v8, %v883_v55  ;;  %v908_v11 = vsel %vm907_vm13, %v876_v7, %v882_v53  ;;  %v1098_v7 = vld [vmem:[%s5029_s2] sm:$0xff]  ;;  %v1099_v8 = vld [vmem:[%s5029_s2 + $0x8] sm:$0xff]  ;;  %s5043_s2 = smov 9  }
  0xb0   : > { %v837_v1 = vpop.permute.xlu1 %836  ;;  %1102 = vperm.xlu0 %3344, %v1098_v7   ;;  %1107 = vperm.xlu1 %3345, %v1099_v8   ;;  %v3820_v55 = vsel %vm895_vm8, %v1119_v50, 0  ;;  %v3364_v57 = vld [vmem:[%s5031_s5] sm:$0xff]   ;;  %s4927_s5 = smov 8   ;;  %v1548_v7 = vld [vmem:[%s5034_s10 + $0x10] sm:$0xff]  ;;  %v1549_v8 = vld [vmem:[%s5034_s10 + $0x18] sm:$0xff]  ;;  %vm1185_vm8 = vcmask 72704  }
  0xb1   : > { %v888_v63 = vrot.slane %v832_v58, 3  ;;  %v889_v0 = vrot.slane %v833_v60, 3  ;;  %v835_v2 = vpop.permute.xlu0 %834  ;;  %5030 = vst [vmem:[#allocation20_spill] sm:$0xff] %v3820_v55  ;;  %v3379_v21 = vld [vmem:[%s4900_s13 + $0x4] ss:$20 sps:$4 sm:$0xff]  }
  0xb2   : > { %v839_v3 = vsel %vm4963_vm12, %v835_v2, %v837_v1  ;;  %v843_v9 = vsel %vm4963_vm12, %v837_v1, %v835_v2  ;;  %vm1331_vm12 = vcmask 449536  }
  0xb3   : > { %v852_v12 = vmul.f32 %v3073_v61, %v839_v3  ;;  %v853_v13 = vmul.f32 %v3074_v62, %v843_v9  ;;  %v912_v14 = vsel %vm910_vm14, %v909_v10, %v889_v0  ;;  %v911_v15 = vsel %vm910_vm14, %v908_v11, %v888_v63 }
  0xb4   : > { %vm1227_vm14 = vcmask 56320  }
  0xb5   : > { %v3800_v16 = vpack.c.bf16 %v853_v13, %v912_v14  ;;  %v3802_v17 = vpack.c.bf16 %v852_v12, %v911_v15  ;;  %v1349_v12 = vld [vmem:[%s5033_s7] sm:$0xff]  ;;  %v1350_v13 = vld [vmem:[%s5033_s7 + $0x8] sm:$0xff]  ;;  %v1351_v14 = vld [vmem:[%s5033_s7 + $0x10] sm:$0xff] }
  0xb6   : > { %v1352_v15 = vld [vmem:[%s5033_s7 + $0x18] sm:$0xff]  ;;  %s5050_s7 = smov 120  }
  0xb7   : > { %5027 = vst [vmem:[#allocation18_spill] sm:$0xff] %v3800_v16  ;;  %5028 = vst [vmem:[#allocation19_spill] sm:$0xff] %v3802_v17  ;;  %1085 = vmatprep.mubr.bf16.mxu0 %v3800_v16 }
  0xb8   : > { %1086 = vmatmul.mubr.bf16.gmra.mrb[4].mxu0 %v3802_v17 }
 0x12f   : > { %v1103_v58 = vpop.permute.xlu0 %1102  ;;  %v1108_v61 = vpop.permute.xlu1 %1107 }
 0x181   : > { %v3160_v27 = vpop.f32.mrb[0].mxu0 }
 0x182   : > { %v3161_v28 = vpop.f32.mrb[1].mxu0 }
 0x183   : > { %v3162_v33 = vadd.f32 %v3161_v28, %v3160_v27  ;;  %v3163_v34 = vpop.f32.mrb[2].mxu0  ;;  %v1546_v27 = vld [vmem:[%s5034_s10] sm:$0xff] }
 0x184   : > { %v3164_v40 = vpop.f32.mrb[3].mxu0 }
 0x185   : > { %v3165_v41 = vadd.f32 %v3164_v40, %v3163_v34 }
 0x187   : > { %v1094_v45 = vpack.c.bf16 %v3165_v41, %v3162_v33 }
 0x189   : > { %3253 = vmatpush3.bf16.msra.mxu1 %v1094_v45 }
 0x18a   : > { %3254 = vmatprep.subr.bf16.mxu1 %v4970_v18 }
 0x18b   : > { %v3166_v5 = vpop.f32.mrb[4].mxu0 }
 0x18c   : > { %v3167_v46 = vpop.f32.mrb[5].mxu0 }
 0x18d   : > { %v3168_v24 = vadd.f32 %v3167_v46, %v3166_v5  ;;  %v3169_v47 = vpop.f32.mrb[6].mxu0 }
 0x18e   : > { %v3170_v25 = vpop.f32.mrb[7].mxu0 }
 0x18f   : > { %v3171_v52 = vadd.f32 %v3170_v25, %v3169_v47 }
 0x191   : > { %v1095_v53 = vpack.c.bf16 %v3171_v52, %v3168_v24 }
 0x193   : > { %v1122_v56 = vand.u32 %v3820_v55, %v1095_v53 }
 0x195   : > { %3255 = vmatpush3.bf16.msra.mxu1 %v1122_v56 }
 0x196   : > { %1397 = vmatprep.subr.bf16.mxu1 %v4968_v19 }
 0x198   : > { %3257 = vmatmul.mubr.msk.bf16.vlgmr.msra.gmra.mrb[0].mxu1 %vm4961_vm6, %v3364_v57  ;;  %vm1289_vm6 = vcmask 465920  }
 0x26b   : > { %v1158_v60 = vpop.f32.mrb[0].mxu1 }
 0x26c   : > { %v1159_v62 = vadd.f32 %v1158_v60, %v1103_v58  ;;  %v3258_v63 = vpop.f32.mrb[1].mxu1 }
 0x26d   : > { %v1161_v0 = vpop.f32.mrb[2].mxu1 }
 0x26e   : > { %v3828_v1 = vmax.f32 %v1159_v62, 0.0  ;;  %v1162_v2 = vadd.f32 %v1161_v0, %v1108_v61  ;;  %v3259_v3 = vpop.f32.mrb[3].mxu1 }
 0x270   : > { %v3830_v9 = vmax.f32 %v1162_v2, 0.0  ;;  %1173 = vrot.lane.b32.xlu1 %v3828_v1, %s4941_s27 }
 0x272   : > { %1175 = vrot.lane.b32.xlu0 %v3830_v9, %s4941_s27  ;;  %v1344_v10 = vpack.c.bf16 %v3830_v9, %v3828_v1  ;;  %s4953_s27 = smov 119  }
 0x274   : > { %1179 = vrot.lane.b32.xlu1 %v3828_v1, %s4939_s1 }
 0x276   : > { %1181 = vrot.lane.b32.xlu0 %v3830_v9, %s4939_s1  ;;  %s5032_s1 = sld [smem:[#allocation41_spill]] }
 0x278   : > { %1194 = vrot.lane.b32.xlu1 %v3828_v1, %s4929_s0 }
 0x27a   : > { %1196 = vrot.lane.b32.xlu0 %v3830_v9, %s4929_s0  ;;  %s4945_s0 = smov 57  }
 0x27c   : > { %1200 = vrot.lane.b32.xlu1 %v3828_v1, %s4927_s5  ;;  %v3365_v11 = vld [vmem:[%s5032_s1 + $0x4] ss:$8 sps:$4 sm:$0xff]  }
 0x27d   : > { %3098 = vmatprep.mubr.msk.bf16.mxu1 %vm719_vm2, %v3365_v11 }
 0x27e   : > { %1202 = vrot.lane.b32.xlu0 %v3830_v9, %s4927_s5  ;;  %s4937_s5 = smov 121  }
 0x280   : > { %1215 = vrot.lane.b32.xlu1 %v3828_v1, %s4951_s30 }
 0x282   : > { %1217 = vrot.lane.b32.xlu0 %v3830_v9, %s4951_s30  ;;  %s5041_s30 = smov 7  }
 0x284   : > { %1221 = vrot.lane.b32.xlu1 %v3828_v1, %s4947_s29 }
 0x286   : > { %1223 = vrot.lane.b32.xlu0 %v3830_v9, %s4947_s29  ;;  %s5045_s29 = smov 57  }
 0x288   : > { %1236 = vrot.lane.b32.xlu1 %v3828_v1, %s4935_s26 }
 0x28a   : > { %1238 = vrot.lane.b32.xlu0 %v3830_v9, %s4935_s26  ;;  %s5040_s26 = smov 71  }
 0x28c   : > { %1242 = vrot.lane.b32.xlu1 %v3828_v1, %s4931_s23 }
 0x28e   : > { %1244 = vrot.lane.b32.xlu0 %v3830_v9, %s4931_s23  ;;  %s4943_s23 = smov 120  }
 0x290   : > { %1256 = vrot.lane.b32.xlu1 %v3828_v1, %s4955_s25 }
 0x292   : > { %1258 = vrot.lane.b32.xlu0 %v3830_v9, %s4955_s25  ;;  %s5047_s25 = smov 1  }
 0x294   : > { %1262 = vrot.lane.b32.xlu1 %v3828_v1, %s4933_s24 }
 0x296   : > { %1264 = vrot.lane.b32.xlu0 %v3830_v9, %s4933_s24  ;;  %s4949_s24 = smov 56  }
 0x298   : > { %1277 = vrot.lane.b32.xlu1 %v3828_v1, %s4937_s5 }
 0x29a   : > { %1279 = vrot.lane.b32.xlu0 %v3830_v9, %s4937_s5  ;;  %s5044_s5 = smov 121  }
 0x29c   : > { %1283 = vrot.lane.b32.xlu1 %v3828_v1, %s4945_s0 }
 0x29e   : > { %1285 = vrot.lane.b32.xlu0 %v3830_v9, %s4945_s0  ;;  %s5039_s0 = smov 127  }
 0x2a0   : > { %1298 = vrot.lane.b32.xlu1 %v3828_v1, %s4943_s23 }
 0x2a2   : > { %1300 = vrot.lane.b32.xlu0 %v3830_v9, %s4943_s23  ;;  %s4957_s23 = smov 55  }
 0x2a4   : > { %1304 = vrot.lane.b32.xlu1 %v3828_v1, %s4949_s24 }
 0x2a6   : > { %1306 = vrot.lane.b32.xlu0 %v3830_v9, %s4949_s24  ;;  %s5046_s24 = smov 65  }
 0x2a8   : > { %1319 = vrot.lane.b32.xlu1 %v3828_v1, %s4953_s27 }
 0x2aa   : > { %1321 = vrot.lane.b32.xlu0 %v3830_v9, %s4953_s27  ;;  %s5035_s27 = sld [smem:[#allocation37_spill]] }
 0x2ac   : > { %1325 = vrot.lane.b32.xlu1 %v3828_v1, %s4957_s23 }
 0x2ae   : > { %1327 = vrot.lane.b32.xlu0 %v3830_v9, %s4957_s23  ;;  %s5042_s23 = smov 73  }
 0x2b0   : > { %1355 = vperm.xlu1 %3345, %v1349_v12   ;;  %v3926_v33 = vld [vmem:[%s5035_s27] sm:$0xff] }
 0x2b1   : > { %v3930_v40 = vrot.slane %v3926_v33, %v3699_v36  ;;  %v3938_v52 = vrot.slane %v3926_v33, %v3677_v26  ;;  %v3947_v26 = vrot.slane %v3926_v33, %v3663_v22  ;;  %v3956_v22 = vrot.slane %v3926_v33, %v3665_v23 }
 0x2b2   : > { %1360 = vperm.xlu0 %3344, %v1350_v13   ;;  %v3965_v23 = vrot.slane %v3926_v33, %v3679_v29 }
 0x2b4   : > { %1365 = vperm.xlu1 %3345, %v1351_v14  }
 0x2b6   : > { %1370 = vperm.xlu0 %3344, %v1352_v15  }
 0x2b8   : > { %1562 = vperm.xlu1 %3345, %v1548_v7  }
 0x2ba   : > { %1567 = vperm.xlu0 %3344, %v1549_v8  }
 0x2be   : > { %1552 = vperm.xlu0 %3344, %v1546_v27  }
 0x2e2   : > { %v1174_v28 = vpop.permute.xlu1 %1173 }
 0x2e4   : > { %v1176_v34 = vpop.permute.xlu0 %1175 }
 0x2e6   : > { %v1180_v41 = vpop.permute.xlu1 %1179 }
 0x2e7   : > { %v1186_v45 = vsel %vm1185_vm8, %v1174_v28, %v1180_v41 }
 0x2e8   : > { %v1182_v5 = vpop.permute.xlu0 %1181  ;;  %v1192_v24 = vmul.f32 %v3930_v40, %v1186_v45 }
 0x2e9   : > { %v1187_v46 = vsel %vm1185_vm8, %v1176_v34, %v1182_v5 }
 0x2ea   : > { %v1193_v47 = vmul.f32 %v3930_v40, %v1187_v46  ;;  %v1195_v25 = vpop.permute.xlu1 %1194 }
 0x2ec   : > { %v1340_v39 = vpack.c.bf16 %v1193_v47, %v1192_v24  ;;  %v1197_v50 = vpop.permute.xlu0 %1196 }
 0x2ee   : > { %v1201_v36 = vpop.permute.xlu1 %1200  ;;  %1398 = vmatpush1.bf16.msra.mxu1 %v1340_v39 }
 0x2ef   : > { %v1207_v53 = vsel %vm1206_vm10, %v1195_v25, %v1201_v36  ;;  %1399 = vmatprep.subr.bf16.mxu1 %v4968_v19 }
 0x2f0   : > { %v1203_v56 = vpop.permute.xlu0 %1202  ;;  %v1213_v58 = vmul.f32 %v3938_v52, %v1207_v53 }
 0x2f1   : > { %v1208_v57 = vsel %vm1206_vm10, %v1197_v50, %v1203_v56 }
 0x2f2   : > { %v1214_v60 = vmul.f32 %v3938_v52, %v1208_v57  ;;  %v1216_v61 = vpop.permute.xlu1 %1215 }
 0x2f4   : > { %v1341_v62 = vpack.c.bf16 %v1214_v60, %v1213_v58  ;;  %v1218_v63 = vpop.permute.xlu0 %1217  ;;  %v3978_v58 = vrot.slane %v3926_v33, %v3719_v44  ;;  %v3987_v44 = vrot.slane %v3926_v33, %v3751_v6  ;;  %v3997_v6 = vld [vmem:[%s5035_s27 + $0x8] ss:$0 sm:$0xff] }
 0x2f6   : > { %v1222_v0 = vpop.permute.xlu1 %1221  ;;  %1400 = vmatpush1.bf16.msra.mxu1 %v1341_v62 }
 0x2f7   : > { %v1228_v2 = vsel %vm1227_vm14, %v1216_v61, %v1222_v0  ;;  %1401 = vmatprep.subr.bf16.mxu1 %v4968_v19 }
 0x2f8   : > { %v1224_v3 = vpop.permute.xlu0 %1223  ;;  %v1234_v12 = vmul.f32 %v3947_v26, %v1228_v2 }
 0x2f9   : > { %v1229_v11 = vsel %vm1227_vm14, %v1218_v63, %v1224_v3 }
 0x2fa   : > { %v1235_v13 = vmul.f32 %v3947_v26, %v1229_v11  ;;  %v1237_v14 = vpop.permute.xlu1 %1236 }
 0x2fc   : > { %v1342_v15 = vpack.c.bf16 %v1235_v13, %v1234_v12  ;;  %v1239_v7 = vpop.permute.xlu0 %1238 }
 0x2fe   : > { %v1243_v8 = vpop.permute.xlu1 %1242  ;;  %1402 = vmatpush1.bf16.msra.mxu1 %v1342_v15 }
 0x2ff   : > { %v1248_v27 = vsel %vm759_vm1, %v1237_v14, %v1243_v8  ;;  %1403 = vmatprep.subr.bf16.mxu1 %v4968_v19 }
 0x300   : > { %v1245_v28 = vpop.permute.xlu0 %1244  ;;  %v1254_v41 = vmul.f32 %v3956_v22, %v1248_v27 }
 0x301   : > { %v1249_v34 = vsel %vm759_vm1, %v1239_v7, %v1245_v28 }
 0x302   : > { %v1255_v45 = vmul.f32 %v3956_v22, %v1249_v34  ;;  %v1257_v5 = vpop.permute.xlu1 %1256 }
 0x304   : > { %v1343_v46 = vpack.c.bf16 %v1255_v45, %v1254_v41  ;;  %v1259_v24 = vpop.permute.xlu0 %1258 }
 0x306   : > { %v1263_v47 = vpop.permute.xlu1 %1262  ;;  %1404 = vmatpush1.bf16.msra.mxu1 %v1343_v46 }
 0x307   : > { %v1269_v25 = vsel %vm1268_vm7, %v1257_v5, %v1263_v47  ;;  %1405 = vmatprep.subr.bf16.mxu1 %v4968_v19  ;;  %v3368_v47 = vld [vmem:[%s5032_s1 + $0x14] ss:$8 sps:$4 sm:$0xff]  }
 0x308   : > { %v1265_v39 = vpop.permute.xlu0 %1264  ;;  %v1275_v36 = vmul.f32 %v3965_v23, %v1269_v25  ;;  %v3370_v25 = vld [vmem:[%s5032_s1 + $0x10] ss:$8 sps:$4 sm:$0xff]  }
 0x309   : > { %v1270_v50 = vsel %vm1268_vm7, %v1259_v24, %v1265_v39  ;;  %v3367_v24 = vld [vmem:[%s5032_s1] ss:$8 sps:$4 sm:$0xff]   ;;  %s5048_s1 = smov 72  }
 0x30a   : > { %v1276_v53 = vmul.f32 %v3965_v23, %v1270_v50  ;;  %v1278_v56 = vpop.permute.xlu1 %1277  ;;  %1406 = vmatpush1.bf16.msra.mxu1 %v1344_v10  ;;  %v3371_v39 = vld [vmem:[%s5036_s8] sm:$0xff]   ;;  %v3372_v50 = vld [vmem:[%s5036_s8 + $0x8] sm:$0xff]  }
 0x30b   : > { %1407 = vmatprep.subr.bf16.mxu1 %v4968_v19  ;;  %3260 = vmatprep.subr.bf16.mxu0 %v3371_v39 }
 0x30c   : > { %v1345_v29 = vpack.c.bf16 %v1276_v53, %v1275_v36  ;;  %v1280_v57 = vpop.permute.xlu0 %1279  ;;  %3261 = vmatpush3.bf16.msra.mxu0 %v3371_v39  ;;  %v3373_v36 = vld [vmem:[%s5036_s8 + $0x10] sm:$0xff]   ;;  %v3374_v53 = vld [vmem:[%s5036_s8 + $0x18] sm:$0xff]   ;;  %s5051_s8 = smov 56  }
 0x30d   : > { %3262 = vmatprep.subr.bf16.mxu0 %v3372_v50 }
 0x30e   : > { %v1284_v60 = vpop.permute.xlu1 %1283  ;;  %1408 = vmatpush1.bf16.msra.mxu1 %v1345_v29 }
 0x30f   : > { %v1290_v61 = vsel %vm1289_vm6, %v1278_v56, %v1284_v60  ;;  %1409 = vmatprep.subr.bf16.mxu1 %v4968_v19 }
 0x310   : > { %v1286_v62 = vpop.permute.xlu0 %1285  ;;  %v1296_v1 = vmul.f32 %v3978_v58, %v1290_v61  ;;  %3263 = vmatpush3.bf16.msra.mxu0 %v3372_v50 }
 0x311   : > { %v1291_v63 = vsel %vm1289_vm6, %v1280_v57, %v1286_v62  ;;  %3264 = vmatprep.subr.bf16.mxu0 %v3373_v36 }
 0x312   : > { %v1297_v9 = vmul.f32 %v3978_v58, %v1291_v63  ;;  %v1299_v10 = vpop.permute.xlu1 %1298 }
 0x314   : > { %v1346_v0 = vpack.c.bf16 %v1297_v9, %v1296_v1  ;;  %v1301_v2 = vpop.permute.xlu0 %1300  ;;  %3265 = vmatpush3.bf16.msra.mxu0 %v3373_v36 }
 0x315   : > { %3266 = vmatprep.subr.bf16.mxu0 %v3374_v53 }
 0x316   : > { %v1305_v3 = vpop.permute.xlu1 %1304  ;;  %1410 = vmatpush1.bf16.msra.mxu1 %v1346_v0 }
 0x317   : > { %v1311_v11 = vsel %vm1310_vm9, %v1299_v10, %v1305_v3  ;;  %1411 = vmatprep.subr.bf16.mxu1 %v4968_v19 }
 0x318   : > { %v1307_v12 = vpop.permute.xlu0 %1306  ;;  %v1317_v14 = vmul.f32 %v3987_v44, %v1311_v11  ;;  %3267 = vmatpush3.bf16.msra.mxu0 %v3374_v53 }
 0x319   : > { %v1312_v13 = vsel %vm1310_vm9, %v1301_v2, %v1307_v12 }
 0x31a   : > { %v1318_v15 = vmul.f32 %v3987_v44, %v1312_v13  ;;  %v1320_v7 = vpop.permute.xlu1 %1319 }
 0x31c   : > { %v1347_v8 = vpack.c.bf16 %v1318_v15, %v1317_v14  ;;  %v1322_v27 = vpop.permute.xlu0 %1321 }
 0x31e   : > { %v1326_v28 = vpop.permute.xlu1 %1325  ;;  %1412 = vmatpush1.bf16.msra.mxu1 %v1347_v8 }
 0x31f   : > { %v1332_v33 = vsel %vm1331_vm12, %v1320_v7, %v1326_v28  ;;  %1413 = vmatprep.subr.bf16.mxu1 %v4968_v19 }
 0x320   : > { %v1328_v34 = vpop.permute.xlu0 %1327  ;;  %v1338_v45 = vmul.f32 %v3997_v6, %v1332_v33  ;;  %v3375_v33 = vld [vmem:[%s5037_s9] sm:$0xff]  }
 0x321   : > { %v1333_v41 = vsel %vm1331_vm12, %v1322_v27, %v1328_v34 }
 0x322   : > { %v1339_v5 = vmul.f32 %v3997_v6, %v1333_v41 }
 0x324   : > { %v1348_v46 = vpack.c.bf16 %v1339_v5, %v1338_v45 }
 0x326   : > { %1414 = vmatpush1.bf16.msra.mxu1 %v1348_v46 }
 0x327   : > { %3280 = vmatprep.subr.bf16.mxu1 %v4970_v18 }
 0x329   : > { %1430 = vmatmul.mubr.bf16.vlgmr.msra.gmra.mrb[4].mxu1 %v3367_v24 }
 0x32a   : > { %3099 = vmatprep.mubr.msk.bf16.mxu1 %vm719_vm2, %v3368_v47  ;;  %v3376_v47 = vld [vmem:[%s5037_s9 + $0x8] sm:$0xff]   ;;  %s5052_s9 = smov 63  }
 0x32f   : > { %v1356_v56 = vpop.permute.xlu1 %1355 }
 0x331   : > { %1438 = vmatmul.mubr.bf16.gmra.mrb[8].mxu1 %v3370_v25  ;;  %v1361_v61 = vpop.permute.xlu0 %1360  ;;  %v1651_v25 = vld [vmem:[%s5038_s11] sm:$0x3]  ;;  %s5054_s11 = smov 55  }
 0x332   : > { %3282 = vmatprep.mubr.msk.bf16.mxu1 %vm3441_vm15, %v4970_v18  ;;  %v1660_v39 = vsel %vm907_vm13, %v1651_v25, 0  ;;  %vm1655_vm13 = vcmask 31744  }
 0x333   : > { %v1366_v2 = vpop.permute.xlu1 %1365  ;;  %3281 = vmatpush3.bf16.msra.mxu1 %v1660_v39 }
 0x335   : > { %v1371_v13 = vpop.permute.xlu0 %1370 }
 0x337   : > { %v1563_v36 = vpop.permute.xlu1 %1562 }
 0x339   : > { %v1568_v50 = vpop.permute.xlu0 %1567 }
 0x3fc   : > { %v1431_v29 = vpop.f32.mrb[4].mxu1 }
 0x3fd   : > { %v1432_v57 = vadd.f32 %v1431_v29, %v1356_v56  ;;  %v1433_v60 = vpop.f32.mrb[5].mxu1  ;;  %v1553_v56 = vpop.permute.xlu0 %1552 }
 0x3fe   : > { %v1434_v62 = vpop.f32.mrb[6].mxu1 }
 0x3ff   : > { %v1435_v63 = vadd.f32 %v1434_v62, %v1361_v61  ;;  %v1436_v1 = vpop.f32.mrb[7].mxu1  ;;  %v4029_v9 = vmax.f32 %v1432_v57, 0.0 }
 0x401   : > { %v4031_v10 = vmax.f32 %v1435_v63, 0.0 }
 0x403   : > { %v4035_v0 = vpack.c.bf16 %v4031_v10, %v4029_v9 }
 0x404   : > { %v1439_v3 = vpop.f32.mrb[8].mxu1 }
 0x405   : > { %v1440_v11 = vadd.f32 %v1439_v3, %v1366_v2  ;;  %v1441_v12 = vpop.f32.mrb[9].mxu1  ;;  %3268 = vmatprep.mubr.msk.bf16.mxu0 %vm1484_vm11, %v4035_v0 }
 0x406   : > { %v1442_v14 = vpop.f32.mrb[10].mxu1  ;;  %v1547_v12 = vld [vmem:[%s5034_s10 + $0x8] sm:$0xff]  ;;  %s5053_s10 = smov 119  }
 0x407   : > { %v1443_v15 = vadd.f32 %v1442_v14, %v1371_v13  ;;  %v1444_v7 = vpop.f32.mrb[11].mxu1  ;;  %v4039_v8 = vmax.f32 %v1440_v11, 0.0 }
 0x409   : > { %v4041_v27 = vmax.f32 %v1443_v15, 0.0 }
 0x40b   : > { %v4045_v28 = vpack.c.bf16 %v4041_v27, %v4039_v8 }
 0x40d   : > { %3269 = vmatmul.mubr.msk.bf16.vlgmr.msra.gmra.mrb[8].mxu0 %vm1484_vm11, %v4045_v28 }
 0x40e   : > { %3276 = vmatprep.mubr.msk.bf16.mxu0 %vm1580_vm5, %v3375_v33 }
 0x4e0   : > { %v3270_v34 = vpop.f32.mrb[8].mxu0 }
 0x4e1   : > { %v1525_v41 = vpop.f32.mrb[9].mxu0 }
 0x4e2   : > { %v3271_v45 = vpop.f32.mrb[10].mxu0 }
 0x4e3   : > { %v1545_v5 = vpack.c.bf16 %v3271_v45, %v3270_v34  ;;  %v1528_v46 = vpop.f32.mrb[11].mxu0 }
 0x4e4   : > { %v1544_v24 = vpack.c.bf16 %v1528_v46, %v1525_v41 }
 0x4e6   : > { %3272 = vmatprep.subr.bf16.mxu0 %v1544_v24 }
 0x4e7   : > { %3273 = vmatpush3.bf16.msra.mxu0 %v1544_v24 }
 0x4e8   : > { %3274 = vmatprep.subr.bf16.mxu0 %v1545_v5 }
 0x4eb   : > { %3275 = vmatpush3.bf16.msra.mxu0 %v1545_v5 }
 0x4ee   : > { %3277 = vmatmul.mubr.msk.bf16.vlgmr.msra.gmra.mrb[12].mxu0 %vm1580_vm5, %v3376_v47 }
 0x4ef   : > { %2379 = vmatprep.mubr.bf16.mxu0 %v3379_v21 }
 0x5c1   : > { %v3278_v53 = vpop.f32.mrb[12].mxu0 }
 0x5c2   : > { %v1630_v29 = vadd.f32 %v3278_v53, %v1563_v36  ;;  %v1621_v57 = vpop.f32.mrb[13].mxu0 }
 0x5c3   : > { %v1622_v60 = vadd.f32 %v1621_v57, %v1553_v56  ;;  %v3279_v61 = vpop.f32.mrb[14].mxu0 }
 0x5c4   : > { %v1633_v62 = vadd.f32 %v3279_v61, %v1568_v50  ;;  %v1624_v63 = vpop.f32.mrb[15].mxu0  ;;  %v1638_v2 = vmax.f32 %v1630_v29, 0.0 }
 0x5c5   : > { %v1636_v1 = vmax.f32 %v1622_v60, 0.0 }
 0x5c6   : > { %v1639_v3 = vmax.f32 %v1633_v62, 0.0 }
 0x5c7   : > { %1642 = vperm.xlu0 %3344, %v1636_v1  }
 0x5c8   : > { %v1650_v11 = vpack.c.bf16 %v1639_v3, %v1638_v2 }
 0x5ca   : > { %1653 = vrot.lane.b32.xlu1 %v1650_v11, %s5039_s0 }
 0x5cb   : > { %1849 = vrot.lane.b32.xlu0 %v4029_v9, %s5040_s26 }
 0x5ce   : > { %1557 = vperm.xlu1 %3345, %v1547_v12  }
 0x5cf   : > { %1873 = vrot.lane.b32.xlu0 %v4029_v9, %s5041_s30 }
 0x5d3   : > { %1721 = vrot.lane.b32.xlu0 %v4029_v9, %s5042_s23 }
 0x5d7   : > { %1745 = vrot.lane.b32.xlu0 %v4029_v9, %s5043_s2 }
 0x5db   : > { %1853 = vrot.lane.b32.xlu0 %v4039_v8, %s5040_s26 }
 0x5df   : > { %1877 = vrot.lane.b32.xlu0 %v4039_v8, %s5041_s30 }
 0x5e3   : > { %1725 = vrot.lane.b32.xlu0 %v4039_v8, %s5042_s23 }
 0x5e7   : > { %1749 = vrot.lane.b32.xlu0 %v4039_v8, %s5043_s2 }
 0x5eb   : > { %2041 = vrot.lane.b32.xlu0 %v4029_v9, %s5044_s5 }
 0x5ef   : > { %2065 = vrot.lane.b32.xlu0 %v4029_v9, %s5045_s29 }
 0x5f3   : > { %2045 = vrot.lane.b32.xlu0 %v4039_v8, %s5044_s5 }
 0x5f7   : > { %2069 = vrot.lane.b32.xlu0 %v4039_v8, %s5045_s29 }
 0x5fb   : > { %1913 = vrot.lane.b32.xlu0 %v4029_v9, %s5046_s24 }
 0x5ff   : > { %1937 = vrot.lane.b32.xlu0 %v4029_v9, %s5047_s25 }
 0x603   : > { %1785 = vrot.lane.b32.xlu0 %v4029_v9, %s5048_s1 }
 0x607   : > { %1809 = vrot.lane.b32.xlu0 %v4029_v9, %s5049_s4 }
 0x60b   : > { %1917 = vrot.lane.b32.xlu0 %v4039_v8, %s5046_s24 }
 0x60f   : > { %1941 = vrot.lane.b32.xlu0 %v4039_v8, %s5047_s25 }
 0x613   : > { %1789 = vrot.lane.b32.xlu0 %v4039_v8, %s5048_s1 }
 0x617   : > { %1813 = vrot.lane.b32.xlu0 %v4039_v8, %s5049_s4 }
 0x61b   : > { %2105 = vrot.lane.b32.xlu0 %v4029_v9, %s5050_s7 }
 0x61f   : > { %2129 = vrot.lane.b32.xlu0 %v4029_v9, %s5051_s8 }
 0x623   : > { %1977 = vrot.lane.b32.xlu0 %v4029_v9, %s5039_s0 }
 0x627   : > { %2001 = vrot.lane.b32.xlu0 %v4029_v9, %s5052_s9 }
 0x62b   : > { %2109 = vrot.lane.b32.xlu0 %v4039_v8, %s5050_s7 }
 0x62f   : > { %2133 = vrot.lane.b32.xlu0 %v4039_v8, %s5051_s8 }
 0x633   : > { %1981 = vrot.lane.b32.xlu0 %v4039_v8, %s5039_s0 }
 0x637   : > { %2005 = vrot.lane.b32.xlu0 %v4039_v8, %s5052_s9 }
 0x63b   : > { %2169 = vrot.lane.b32.xlu0 %v4029_v9, %s5053_s10 }
 0x63c   : > { %v1654_v13 = vpop.permute.xlu1 %1653 }
 0x63d   : > { %3283 = vmatmul.mubr.msk.bf16.vlgmr.msra.gmra.mrb[12].mxu1 %vm1655_vm13, %v1654_v13 }
 0x63f   : > { %2193 = vrot.lane.b32.xlu0 %v4029_v9, %s5054_s11 }
 0x643   : > { %2173 = vrot.lane.b32.xlu0 %v4039_v8, %s5053_s10 }
 0x646   : > { %v4127_v14 = vpop.permute.xlu0 %1642 }
 0x647   : > { %2197 = vrot.lane.b32.xlu0 %v4039_v8, %s5054_s11 }
 0x64a   : > { %v4131_v15 = vpop.permute.xlu0 %1849 }
 0x64b   : > { %1857 = vrot.lane.b32.xlu0 %v4127_v14, %s5040_s26 }
 0x64d   : > { %v1558_v7 = vpop.permute.xlu1 %1557 }
 0x64e   : > { %v1625_v33 = vadd.f32 %v1624_v63, %v1558_v7  ;;  %v4135_v34 = vpop.permute.xlu0 %1873 }
 0x64f   : > { %1881 = vrot.lane.b32.xlu0 %v4127_v14, %s5041_s30 }
 0x650   : > { %v1637_v9 = vmax.f32 %v1625_v33, 0.0 }
 0x652   : > { %1647 = vperm.xlu1 %3345, %v1637_v9   ;;  %v4139_v41 = vpop.permute.xlu0 %1721 }
 0x653   : > { %1729 = vrot.lane.b32.xlu0 %v4127_v14, %s5042_s23 }
 0x656   : > { %1851 = vrot.lane.b32.xlu1 %v4031_v10, %s5040_s26  ;;  %v4145_v8 = vpop.permute.xlu0 %1745 }
 0x657   : > { %1753 = vrot.lane.b32.xlu0 %v4127_v14, %s5043_s2 }
 0x65a   : > { %1875 = vrot.lane.b32.xlu1 %v4031_v10, %s5041_s30  ;;  %v4151_v45 = vpop.permute.xlu0 %1853 }
 0x65b   : > { %2049 = vrot.lane.b32.xlu0 %v4127_v14, %s5044_s5 }
 0x65e   : > { %1723 = vrot.lane.b32.xlu1 %v4031_v10, %s5042_s23  ;;  %v4157_v5 = vpop.permute.xlu0 %1877 }
 0x65f   : > { %2073 = vrot.lane.b32.xlu0 %v4127_v14, %s5045_s29 }
 0x662   : > { %1747 = vrot.lane.b32.xlu1 %v4031_v10, %s5043_s2  ;;  %v4163_v46 = vpop.permute.xlu0 %1725 }
 0x663   : > { %1921 = vrot.lane.b32.xlu0 %v4127_v14, %s5046_s24 }
 0x666   : > { %1855 = vrot.lane.b32.xlu1 %v4041_v27, %s5040_s26  ;;  %v4169_v24 = vpop.permute.xlu0 %1749 }
 0x667   : > { %1945 = vrot.lane.b32.xlu0 %v4127_v14, %s5047_s25 }
 0x66a   : > { %1879 = vrot.lane.b32.xlu1 %v4041_v27, %s5041_s30  ;;  %v4175_v47 = vpop.permute.xlu0 %2041 }
 0x66b   : > { %1793 = vrot.lane.b32.xlu0 %v4127_v14, %s5048_s1 }
 0x66e   : > { %1727 = vrot.lane.b32.xlu1 %v4041_v27, %s5042_s23  ;;  %v4181_v25 = vpop.permute.xlu0 %2065 }
 0x66f   : > { %1817 = vrot.lane.b32.xlu0 %v4127_v14, %s5049_s4 }
 0x672   : > { %1751 = vrot.lane.b32.xlu1 %v4041_v27, %s5043_s2  ;;  %v4187_v39 = vpop.permute.xlu0 %2045 }
 0x673   : > { %2113 = vrot.lane.b32.xlu0 %v4127_v14, %s5050_s7 }
 0x676   : > { %2043 = vrot.lane.b32.xlu1 %v4031_v10, %s5044_s5  ;;  %v4193_v50 = vpop.permute.xlu0 %2069 }
 0x677   : > { %2137 = vrot.lane.b32.xlu0 %v4127_v14, %s5051_s8 }
 0x67a   : > { %2067 = vrot.lane.b32.xlu1 %v4031_v10, %s5045_s29  ;;  %v4199_v36 = vpop.permute.xlu0 %1913 }
 0x67b   : > { %1985 = vrot.lane.b32.xlu0 %v4127_v14, %s5039_s0 }
 0x67e   : > { %2047 = vrot.lane.b32.xlu1 %v4041_v27, %s5044_s5  ;;  %v4205_v53 = vpop.permute.xlu0 %1937 }
 0x67f   : > { %2009 = vrot.lane.b32.xlu0 %v4127_v14, %s5052_s9 }
 0x682   : > { %2071 = vrot.lane.b32.xlu1 %v4041_v27, %s5045_s29  ;;  %v4211_v56 = vpop.permute.xlu0 %1785 }
 0x683   : > { %2177 = vrot.lane.b32.xlu0 %v4127_v14, %s5053_s10 }
 0x686   : > { %1915 = vrot.lane.b32.xlu1 %v4031_v10, %s5046_s24  ;;  %v4217_v29 = vpop.permute.xlu0 %1809 }
 0x687   : > { %2201 = vrot.lane.b32.xlu0 %v4127_v14, %s5054_s11 }
 0x68a   : > { %1939 = vrot.lane.b32.xlu1 %v4031_v10, %s5047_s25  ;;  %v4223_v57 = vpop.permute.xlu0 %1917 }
 0x68e   : > { %1787 = vrot.lane.b32.xlu1 %v4031_v10, %s5048_s1  ;;  %v4227_v60 = vpop.permute.xlu0 %1941 }
 0x692   : > { %1811 = vrot.lane.b32.xlu1 %v4031_v10, %s5049_s4  ;;  %v4231_v61 = vpop.permute.xlu0 %1789 }
 0x696   : > { %1919 = vrot.lane.b32.xlu1 %v4041_v27, %s5046_s24  ;;  %v4235_v62 = vpop.permute.xlu0 %1813 }
 0x69a   : > { %1943 = vrot.lane.b32.xlu1 %v4041_v27, %s5047_s25  ;;  %v4239_v63 = vpop.permute.xlu0 %2105 }
 0x69e   : > { %1791 = vrot.lane.b32.xlu1 %v4041_v27, %s5048_s1  ;;  %v4243_v1 = vpop.permute.xlu0 %2129 }
 0x6a2   : > { %1815 = vrot.lane.b32.xlu1 %v4041_v27, %s5049_s4  ;;  %v4247_v2 = vpop.permute.xlu0 %1977 }
 0x6a6   : > { %2107 = vrot.lane.b32.xlu1 %v4031_v10, %s5050_s7  ;;  %v4251_v3 = vpop.permute.xlu0 %2001 }
 0x6aa   : > { %2131 = vrot.lane.b32.xlu1 %v4031_v10, %s5051_s8  ;;  %v4255_v11 = vpop.permute.xlu0 %2109 }
 0x6ae   : > { %1979 = vrot.lane.b32.xlu1 %v4031_v10, %s5039_s0  ;;  %v4259_v12 = vpop.permute.xlu0 %2133 }
 0x6b2   : > { %2003 = vrot.lane.b32.xlu1 %v4031_v10, %s5052_s9  ;;  %v4263_v13 = vpop.permute.xlu0 %1981 }
 0x6b6   : > { %2111 = vrot.lane.b32.xlu1 %v4041_v27, %s5050_s7  ;;  %v4267_v7 = vpop.permute.xlu0 %2005 }
 0x6b7   : > { %v2027_v20 = vsel %vm1268_vm7, %v4263_v13, %v4267_v7 }
 0x6b8   : > { %v4463_v42 = vmul.f32 %v2027_v20, %v3965_v23 }
 0x6ba   : > { %2135 = vrot.lane.b32.xlu1 %v4041_v27, %s5051_s8  ;;  %v2170_v33 = vpop.permute.xlu0 %2169  ;;  %5055 = vst [vmem:[#allocation21_spill] sm:$0xff] %v4463_v42 }
 0x6be   : > { %1983 = vrot.lane.b32.xlu1 %v4041_v27, %s5039_s0  ;;  %v2194_v9 = vpop.permute.xlu0 %2193 }
 0x6bf   : > { %v4274_v19 = vsel %vm1331_vm12, %v2170_v33, %v2194_v9 }
 0x6c2   : > { %2007 = vrot.lane.b32.xlu1 %v4041_v27, %s5052_s9  ;;  %v2174_v18 = vpop.permute.xlu0 %2173 }
 0x6c6   : > { %2171 = vrot.lane.b32.xlu1 %v4031_v10, %s5053_s10  ;;  %v2198_v17 = vpop.permute.xlu0 %2197 }
 0x6c7   : > { %v4281_v49 = vsel %vm1331_vm12, %v2174_v18, %v2198_v17  ;;  %v1897_v17 = vsel %vm1227_vm14, %v4131_v15, %v4135_v34  ;;  %v1769_v15 = vsel %vm1185_vm8, %v4139_v41, %v4145_v8  ;;  %v1899_v41 = vsel %vm1227_vm14, %v4151_v45, %v4157_v5 }
 0x6c8   : > { %v1771_v45 = vsel %vm1185_vm8, %v4163_v46, %v4169_v24  ;;  %v2089_v46 = vsel %vm1289_vm6, %v4175_v47, %v4181_v25  ;;  %v2091_v47 = vsel %vm1289_vm6, %v4187_v39, %v4193_v50 }
 0x6ca   : > { %2195 = vrot.lane.b32.xlu1 %v4031_v10, %s5054_s11  ;;  %v1905_v10 = vmul.f32 %v1897_v17, %v3947_v26  ;;  %v1777_v17 = vmul.f32 %v1769_v15, %v3930_v40 }
 0x6ce   : > { %2175 = vrot.lane.b32.xlu1 %v4041_v27, %s5053_s10 }
 0x6d1   : > { %v4287_v55 = vpop.permute.xlu1 %1647 }
 0x6d2   : > { %2199 = vrot.lane.b32.xlu1 %v4041_v27, %s5054_s11 }
 0x6d5   : > { %v1852_v33 = vpop.permute.xlu1 %1851 }
 0x6d6   : > { %1859 = vrot.lane.b32.xlu1 %v4287_v55, %s5040_s26 }
 0x6d9   : > { %v1876_v18 = vpop.permute.xlu1 %1875 }
 0x6da   : > { %v1898_v9 = vsel %vm1227_vm14, %v1852_v33, %v1876_v18  ;;  %1883 = vrot.lane.b32.xlu1 %v4287_v55, %s5041_s30 }
 0x6db   : > { %v1906_v16 = vmul.f32 %v1898_v9, %v3947_v26 }
 0x6dd   : > { %v1724_v48 = vpop.permute.xlu1 %1723  ;;  %v2241_v27 = vpack.c.bf16 %v1906_v16, %v1905_v10  ;;  %v1907_v10 = vmul.f32 %v1899_v41, %v3947_v26 }
 0x6de   : > { %1731 = vrot.lane.b32.xlu1 %v4287_v55, %s5042_s23 }
 0x6df   : > { %3187 = vmatprep.subr.bf16.mxu0 %v2241_v27 }
 0x6e1   : > { %v1748_v34 = vpop.permute.xlu1 %1747 }
 0x6e2   : > { %v1770_v33 = vsel %vm1185_vm8, %v1724_v48, %v1748_v34  ;;  %1755 = vrot.lane.b32.xlu1 %v4287_v55, %s5043_s2 }
 0x6e3   : > { %v1778_v18 = vmul.f32 %v1770_v33, %v3930_v40 }
 0x6e5   : > { %v2233_v9 = vpack.c.bf16 %v1778_v18, %v1777_v17  ;;  %v1856_v16 = vpop.permute.xlu1 %1855  ;;  %v1779_v17 = vmul.f32 %v1771_v45, %v3930_v40 }
 0x6e6   : > { %2051 = vrot.lane.b32.xlu1 %v4287_v55, %s5044_s5 }
 0x6e7   : > { %3188 = vmatpush3.bf16.msra.mxu0 %v2233_v9 }
 0x6e9   : > { %v1880_v8 = vpop.permute.xlu1 %1879 }
 0x6ea   : > { %v1900_v48 = vsel %vm1227_vm14, %v1856_v16, %v1880_v8  ;;  %2075 = vrot.lane.b32.xlu1 %v4287_v55, %s5045_s29  ;;  %v2097_v8 = vmul.f32 %v2089_v46, %v3978_v58 }
 0x6eb   : > { %v1908_v27 = vmul.f32 %v1900_v48, %v3947_v26 }
 0x6ed   : > { %v1728_v15 = vpop.permute.xlu1 %1727  ;;  %v2242_v34 = vpack.c.bf16 %v1908_v27, %v1907_v10 }
 0x6ee   : > { %1923 = vrot.lane.b32.xlu1 %v4287_v55, %s5046_s24 }
 0x6ef   : > { %3189 = vmatprep.subr.bf16.mxu0 %v2242_v34  ;;  %v2099_v34 = vmul.f32 %v2091_v47, %v3978_v58 }
 0x6f1   : > { %v1752_v5 = vpop.permute.xlu1 %1751 }
 0x6f2   : > { %v1772_v33 = vsel %vm1185_vm8, %v1728_v15, %v1752_v5  ;;  %1947 = vrot.lane.b32.xlu1 %v4287_v55, %s5047_s25 }
 0x6f3   : > { %v1780_v18 = vmul.f32 %v1772_v33, %v3930_v40 }
 0x6f5   : > { %v2234_v9 = vpack.c.bf16 %v1780_v18, %v1779_v17  ;;  %v2044_v16 = vpop.permute.xlu1 %2043 }
 0x6f6   : > { %1795 = vrot.lane.b32.xlu1 %v4287_v55, %s5048_s1 }
 0x6f7   : > { %3190 = vmatpush3.bf16.msra.mxu0 %v2234_v9 }
 0x6f9   : > { %v2068_v24 = vpop.permute.xlu1 %2067 }
 0x6fa   : > { %v2090_v41 = vsel %vm1289_vm6, %v2044_v16, %v2068_v24  ;;  %1819 = vrot.lane.b32.xlu1 %v4287_v55, %s5049_s4 }
 0x6fb   : > { %v2098_v48 = vmul.f32 %v2090_v41, %v3978_v58 }
 0x6fd   : > { %v2048_v10 = vpop.permute.xlu1 %2047  ;;  %v2255_v27 = vpack.c.bf16 %v2098_v48, %v2097_v8  ;;  %v4401_v48 = vpop.permute.xlu0 %1857 }
 0x6fe   : > { %2115 = vrot.lane.b32.xlu1 %v4287_v55, %s5050_s7 }
 0x6ff   : > { %3215 = vmatprep.subr.bf16.mxu1 %v2255_v27 }
 0x700   : > { %3216 = vmatpush3.bf16.msra.mxu1 %v4035_v0 }
 0x701   : > { %v2072_v25 = vpop.permute.xlu1 %2071  ;;  %v4415_v47 = vpop.permute.xlu0 %1881 }
 0x702   : > { %v2092_v15 = vsel %vm1289_vm6, %v2048_v10, %v2072_v25  ;;  %2139 = vrot.lane.b32.xlu1 %v4287_v55, %s5051_s8 }
 0x703   : > { %v2100_v45 = vmul.f32 %v2092_v15, %v3978_v58 }
 0x705   : > { %v4352_v5 = vpop.permute.xlu1 %1915  ;;  %v2256_v33 = vpack.c.bf16 %v2100_v45, %v2099_v34  ;;  %v4423_v15 = vpop.permute.xlu0 %1729 }
 0x706   : > { %1987 = vrot.lane.b32.xlu1 %v4287_v55, %s5039_s0 }
 0x707   : > { %3217 = vmatprep.subr.bf16.mxu1 %v2256_v33 }
 0x708   : > { %3218 = vmatpush3.bf16.msra.mxu1 %v4045_v28 }
 0x709   : > { %v4357_v0 = vpop.permute.xlu1 %1939  ;;  %v4437_v33 = vpop.permute.xlu0 %1753 }
 0x70a   : > { %2011 = vrot.lane.b32.xlu1 %v4287_v55, %s5052_s9  ;;  %v1773_v51 = vsel %vm1185_vm8, %v4423_v15, %v4437_v33 }
 0x70d   : > { %v4361_v39 = vpop.permute.xlu1 %1787 }
 0x70e   : > { %2179 = vrot.lane.b32.xlu1 %v4287_v55, %s5053_s10 }
 0x710   : > { %v4365_v50 = vpop.f32.mrb[12].mxu1 }
 0x711   : > { %v3284_v17 = vpop.f32.mrb[13].mxu1  ;;  %v4367_v18 = vpop.permute.xlu1 %1811  ;;  %1861 = vrot.lane.b32.xlu0 %v4365_v50, %s5040_s26 }
 0x712   : > { %v4371_v9 = vpop.f32.mrb[14].mxu1  ;;  %2203 = vrot.lane.b32.xlu1 %v4287_v55, %s5054_s11 }
 0x713   : > { %v3285_v28 = vpop.f32.mrb[15].mxu1 }
 0x714   : > { %v4445_v28 = vpop.permute.xlu0 %2049 }
 0x715   : > { %v4377_v46 = vpop.permute.xlu1 %1919  ;;  %1885 = vrot.lane.b32.xlu0 %v4365_v50, %s5041_s30 }
 0x716   : > { %1863 = vrot.lane.b32.xlu1 %v4371_v9, %s5040_s26 }
 0x718   : > { %v2074_v35 = vpop.permute.xlu0 %2073 }
 0x719   : > { %v4383_v24 = vpop.permute.xlu1 %1943  ;;  %1733 = vrot.lane.b32.xlu0 %v4365_v50, %s5042_s23 }
 0x71a   : > { %1887 = vrot.lane.b32.xlu1 %v4371_v9, %s5041_s30 }
 0x71d   : > { %v4389_v41 = vpop.permute.xlu1 %1791  ;;  %1757 = vrot.lane.b32.xlu0 %v4365_v50, %s5043_s2 }
 0x71e   : > { %1735 = vrot.lane.b32.xlu1 %v4371_v9, %s5042_s23  ;;  %s5087_s23 = smov 17  }
 0x721   : > { %v4395_v8 = vpop.permute.xlu1 %1815  ;;  %2053 = vrot.lane.b32.xlu0 %v4365_v50, %s5044_s5 }
 0x722   : > { %1759 = vrot.lane.b32.xlu1 %v4371_v9, %s5043_s2  ;;  %s5088_s2 = smov 16  }
 0x725   : > { %v4403_v10 = vpop.permute.xlu1 %2107  ;;  %2077 = vrot.lane.b32.xlu0 %v4365_v50, %s5045_s29 }
 0x726   : > { %2055 = vrot.lane.b32.xlu1 %v4371_v9, %s5044_s5  ;;  %s5090_s5 = smov 113  }
 0x729   : > { %v4409_v27 = vpop.permute.xlu1 %2131  ;;  %1925 = vrot.lane.b32.xlu0 %v4365_v50, %s5046_s24 }
 0x72a   : > { %2079 = vrot.lane.b32.xlu1 %v4371_v9, %s5045_s29  ;;  %s5091_s29 = smov 112  }
 0x72d   : > { %v4417_v25 = vpop.permute.xlu1 %1979  ;;  %1949 = vrot.lane.b32.xlu0 %v4365_v50, %s5047_s25 }
 0x72e   : > { %1927 = vrot.lane.b32.xlu1 %v4371_v9, %s5046_s24  ;;  %s5092_s24 = smov 111  }
 0x731   : > { %v4425_v34 = vpop.permute.xlu1 %2003  ;;  %1797 = vrot.lane.b32.xlu0 %v4365_v50, %s5048_s1 }
 0x732   : > { %1951 = vrot.lane.b32.xlu1 %v4371_v9, %s5047_s25 }
 0x735   : > { %v4431_v45 = vpop.permute.xlu1 %2111  ;;  %1821 = vrot.lane.b32.xlu0 %v4365_v50, %s5049_s4 }
 0x736   : > { %1799 = vrot.lane.b32.xlu1 %v4371_v9, %s5048_s1 }
 0x739   : > { %v4439_v17 = vpop.permute.xlu1 %2135  ;;  %2117 = vrot.lane.b32.xlu0 %v4365_v50, %s5050_s7 }
 0x73a   : > { %1823 = vrot.lane.b32.xlu1 %v4371_v9, %s5049_s4 }
 0x73d   : > { %v1984_v16 = vpop.permute.xlu1 %1983  ;;  %2141 = vrot.lane.b32.xlu0 %v4365_v50, %s5051_s8 }
 0x73e   : > { %2119 = vrot.lane.b32.xlu1 %v4371_v9, %s5050_s7 }
 0x741   : > { %v2008_v4 = vpop.permute.xlu1 %2007  ;;  %1989 = vrot.lane.b32.xlu0 %v4365_v50, %s5039_s0 }
 0x742   : > { %v2028_v59 = vsel %vm1268_vm7, %v1984_v16, %v2008_v4  ;;  %2143 = vrot.lane.b32.xlu1 %v4371_v9, %s5051_s8  ;;  %v4474_v4 = vpop.permute.xlu0 %1921 }
 0x743   : > { %v4466_v32 = vmul.f32 %v2028_v59, %v3965_v23  ;;  %v2225_v59 = vmul.f32 %v3997_v6, %v4274_v19  ;;  %v3385_v19 = vld [vmem:[%s4900_s13 + $0xc] ss:$20 sps:$4 sm:$0xff]  }
 0x744   : > { %2428 = vmatprep.mubr.bf16.mxu1 %v3385_v19 }
 0x745   : > { %5056 = vst [vmem:[#allocation22_spill] sm:$0xff] %v4466_v32  ;;  %v2172_v7 = vpop.permute.xlu1 %2171  ;;  %2013 = vrot.lane.b32.xlu0 %v4365_v50, %s5052_s9 }
 0x746   : > { %1991 = vrot.lane.b32.xlu1 %v4371_v9, %s5039_s0 }
 0x749   : > { %v2196_v21 = vpop.permute.xlu1 %2195  ;;  %2181 = vrot.lane.b32.xlu0 %v4365_v50, %s5053_s10 }
 0x74a   : > { %v2218_v20 = vsel %vm1331_vm12, %v2172_v7, %v2196_v21  ;;  %2015 = vrot.lane.b32.xlu1 %v4371_v9, %s5052_s9  ;;  %v2267_v7 = vld [vmem:[%s4901_s14] sm:$0xff]  ;;  %v4493_v21 = vpop.permute.xlu0 %1945 }
 0x74b   : > { %v2226_v16 = vmul.f32 %v3997_v6, %v2218_v20 }
 0x74d   : > { %v2176_v13 = vpop.permute.xlu1 %2175  ;;  %2205 = vrot.lane.b32.xlu0 %v4365_v50, %s5054_s11  ;;  %v4486_v43 = vpack.c.bf16 %v2226_v16, %v2225_v59  ;;  %v2269_v59 = vld [vmem:[%s4901_s14 + $0x10] sm:$0xff]  ;;  %v2227_v16 = vmul.f32 %v3997_v6, %v4281_v49  ;;  %v2270_v49 = vld [vmem:[%s4901_s14 + $0x18] sm:$0xff] }
 0x74e   : > { %2183 = vrot.lane.b32.xlu1 %v4371_v9, %s5053_s10 }
 0x74f   : > { %5057 = vst [vmem:[#allocation23_spill] sm:$0xff] %v4486_v43 }
 0x751   : > { %v2200_v20 = vpop.permute.xlu1 %2199  ;;  %2273 = vperm.xlu0 %3344, %v2267_v7   ;;  %v4510_v7 = vpop.permute.xlu0 %1793 }
 0x752   : > { %v2220_v31 = vsel %vm1331_vm12, %v2176_v13, %v2200_v20  ;;  %2207 = vrot.lane.b32.xlu1 %v4371_v9, %s5054_s11  ;;  %v2501_v20 = vld [vmem:[%s4903_s16] sm:$0xff]  ;;  %s5089_s11 = smov 15  }
 0x753   : > { %v2228_v30 = vmul.f32 %v3997_v6, %v2220_v31  ;;  %v1901_v31 = vsel %vm1227_vm14, %v4401_v48, %v4415_v47 }
 0x755   : > { %v1860_v19 = vpop.permute.xlu1 %1859  ;;  %2283 = vperm.xlu0 %3344, %v2269_v59   ;;  %v4512_v13 = vpack.c.bf16 %v2228_v30, %v2227_v16  ;;  %v1909_v30 = vmul.f32 %v1901_v31, %v3947_v26 }
 0x756   : > { %2278 = vperm.xlu1 %3345, %v2268_v38   ;;  %v4525_v38 = vpop.permute.xlu0 %1817 }
 0x757   : > { %5058 = vst [vmem:[#allocation24_spill] sm:$0xff] %v4512_v13 }
 0x759   : > { %v1884_v6 = vpop.permute.xlu1 %1883  ;;  %2504 = vperm.xlu0 %3344, %v2501_v20  }
 0x75a   : > { %v1902_v37 = vsel %vm1227_vm14, %v1860_v19, %v1884_v6  ;;  %2288 = vperm.xlu1 %3345, %v2270_v49   ;;  %v4531_v13 = vpop.permute.xlu0 %2113  ;;  %v1781_v19 = vmul.f32 %v1773_v51, %v3930_v40 }
 0x75b   : > { %v1910_v59 = vmul.f32 %v1902_v37, %v3947_v26  ;;  %5059 = vst [vmem:[#allocation25_spill] sm:$0xff] %v4531_v13  ;;  %v2093_v37 = vsel %vm1289_vm6, %v4445_v28, %v2074_v35 }
 0x75c   : > { %v2101_v33 = vmul.f32 %v2093_v37, %v3978_v58 }
 0x75d   : > { %v1732_v16 = vpop.permute.xlu1 %1731  ;;  %v2243_v54 = vpack.c.bf16 %v1910_v59, %v1909_v30 }
 0x75e   : > { %v4536_v6 = vpop.permute.xlu0 %2137 }
 0x75f   : > { %3191 = vmatprep.subr.bf16.mxu0 %v2243_v54  ;;  %5060 = vst [vmem:[#allocation26_spill] sm:$0xff] %v4536_v6 }
 0x761   : > { %v1756_v48 = vpop.permute.xlu1 %1755 }
 0x762   : > { %v1774_v47 = vsel %vm1185_vm8, %v1732_v16, %v1756_v48  ;;  %v4543_v59 = vpop.permute.xlu0 %1985  ;;  %v2249_v48 = vpack.c.bf16 %v4287_v55, %v4127_v14 }
 0x763   : > { %v1782_v20 = vmul.f32 %v1774_v47, %v3930_v40  ;;  %5061 = vst [vmem:[#allocation27_spill] sm:$0xff] %v4543_v59 }
 0x765   : > { %v2235_v49 = vpack.c.bf16 %v1782_v20, %v1781_v19  ;;  %v2052_v31 = vpop.permute.xlu1 %2051 }
 0x766   : > { %v4547_v19 = vpop.permute.xlu0 %2009 }
 0x767   : > { %3192 = vmatpush3.bf16.msra.mxu0 %v2235_v49  ;;  %5062 = vst [vmem:[#allocation28_spill] sm:$0xff] %v4547_v19 }
 0x769   : > { %v2076_v54 = vpop.permute.xlu1 %2075 }
 0x76a   : > { %v2094_v15 = vsel %vm1289_vm6, %v2052_v31, %v2076_v54  ;;  %v4551_v28 = vpop.permute.xlu0 %2177 }
 0x76b   : > { %v2102_v30 = vmul.f32 %v2094_v15, %v3978_v58  ;;  %5063 = vst [vmem:[#allocation29_spill] sm:$0xff] %v4551_v28 }
 0x76d   : > { %v1924_v51 = vpop.permute.xlu1 %1923  ;;  %v2257_v16 = vpack.c.bf16 %v2102_v30, %v2101_v33 }
 0x76e   : > { %v4557_v31 = vpop.permute.xlu0 %2201 }
 0x76f   : > { %3219 = vmatprep.subr.bf16.mxu1 %v2257_v16  ;;  %5064 = vst [vmem:[#allocation30_spill] sm:$0xff] %v4557_v31 }
 0x770   : > { %3220 = vmatpush3.bf16.msra.mxu1 %v2249_v48 }
 0x771   : > { %v1948_v47 = vpop.permute.xlu1 %1947 }
 0x775   : > { %v4549_v35 = vpop.permute.xlu1 %1795 }
 0x779   : > { %v4553_v20 = vpop.permute.xlu1 %1819 }
 0x77d   : > { %v4555_v49 = vpop.permute.xlu1 %2115 }
 0x781   : > { %v4559_v37 = vpop.permute.xlu1 %2139 }
 0x783   : > { %v1862_v54 = vpop.permute.xlu0 %1861 }
 0x785   : > { %v4561_v15 = vpop.permute.xlu1 %1987 }
 0x786   : > { %5065 = vst [vmem:[#allocation31_spill] sm:$0xff] %v4561_v15 }
 0x787   : > { %v1886_v55 = vpop.permute.xlu0 %1885 }
 0x788   : > { %v1903_v32 = vsel %vm1227_vm14, %v1862_v54, %v1886_v55  ;;  %v1836_v55 = vsel %vm1206_vm10, %v4389_v41, %v4395_v8  ;;  %v1965_v8 = vsel %vm759_vm1, %v4474_v4, %v4493_v21  ;;  %v2156_v4 = vsel %vm1310_vm9, %v4431_v45, %v4439_v17 }
 0x789   : > { %v4563_v14 = vpop.permute.xlu1 %2011  ;;  %v1911_v19 = vmul.f32 %v1903_v32, %v3947_v26 }
 0x78a   : > { %5066 = vst [vmem:[#allocation32_spill] sm:$0xff] %v4563_v14 }
 0x78b   : > { %v1734_v33 = vpop.permute.xlu0 %1733 }
 0x78d   : > { %v4565_v30 = vpop.permute.xlu1 %2179 }
 0x78e   : > { %5067 = vst [vmem:[#allocation33_spill] sm:$0xff] %v4565_v30  ;;  %v1962_v30 = vsel %vm759_vm1, %v4352_v5, %v4357_v0  ;;  %v1964_v5 = vsel %vm759_vm1, %v4377_v46, %v4383_v24 }
 0x78f   : > { %v1758_v16 = vpop.permute.xlu0 %1757 }
 0x790   : > { %v1775_v54 = vsel %vm1185_vm8, %v1734_v33, %v1758_v16 }
 0x791   : > { %v4567_v48 = vpop.permute.xlu1 %2203 }
 0x792   : > { %5068 = vst [vmem:[#allocation34_spill] sm:$0xff] %v4567_v48 }
 0x793   : > { %v2054_v28 = vpop.permute.xlu0 %2053 }
 0x795   : > { %v1864_v43 = vpop.permute.xlu1 %1863 }
 0x797   : > { %v2078_v42 = vpop.permute.xlu0 %2077 }
 0x798   : > { %v2095_v41 = vsel %vm1289_vm6, %v2054_v28, %v2078_v42 }
 0x799   : > { %v1888_v31 = vpop.permute.xlu1 %1887  ;;  %v2103_v21 = vmul.f32 %v2095_v41, %v3978_v58  ;;  %v5076_v41 = vld [vmem:[#allocation22_spill] sm:$0xff] }
 0x79a   : > { %v1904_v59 = vsel %vm1227_vm14, %v1864_v43, %v1888_v31  ;;  %v1961_v43 = vsel %vm759_vm1, %v4199_v36, %v4205_v53  ;;  %v1833_v53 = vsel %vm1206_vm10, %v4211_v56, %v4217_v29 }
 0x79b   : > { %v1912_v15 = vmul.f32 %v1904_v59, %v3947_v26  ;;  %v4573_v13 = vpop.permute.xlu0 %1925  ;;  %v1970_v26 = vmul.f32 %v1962_v30, %v3956_v22  ;;  %v1834_v59 = vsel %vm1206_vm10, %v4361_v39, %v4367_v18  ;;  %v1969_v36 = vmul.f32 %v1961_v43, %v3956_v22 }
 0x79c   : > { %v1963_v39 = vsel %vm759_vm1, %v4223_v57, %v4227_v60  ;;  %v1835_v18 = vsel %vm1206_vm10, %v4231_v61, %v4235_v62  ;;  %v1842_v46 = vmul.f32 %v1834_v59, %v3938_v52  ;;  %v1841_v56 = vmul.f32 %v1833_v53, %v3938_v52  ;;  %v5071_v53 = vld [vmem:[#allocation25_spill] sm:$0xff] }
 0x79d   : > { %v1736_v14 = vpop.permute.xlu1 %1735  ;;  %v2244_v6 = vpack.c.bf16 %v1912_v15, %v1911_v19  ;;  %v1971_v29 = vmul.f32 %v1963_v39, %v3956_v22  ;;  %v2154_v57 = vsel %vm1310_vm9, %v4403_v10, %v4409_v27  ;;  %v1966_v60 = vsel %vm759_vm1, %v1924_v51, %v1948_v47 }
 0x79e   : > { %v1843_v61 = vmul.f32 %v1835_v18, %v3938_v52  ;;  %v2153_v62 = vsel %vm1310_vm9, %v4239_v63, %v4243_v1  ;;  %v2237_v33 = vpack.c.bf16 %v1842_v46, %v1841_v56  ;;  %v1844_v30 = vmul.f32 %v1836_v55, %v3938_v52  ;;  %v5075_v55 = vld [vmem:[#allocation27_spill] sm:$0xff] }
 0x79f   : > { %3193 = vmatprep.subr.bf16.mxu0 %v2244_v6  ;;  %v4578_v48 = vpop.permute.xlu0 %1949  ;;  %v1783_v6 = vmul.f32 %v1775_v54, %v3930_v40  ;;  %v2162_v47 = vmul.f32 %v2154_v57, %v3987_v44  ;;  %v1974_v16 = vmul.f32 %v1966_v60, %v3956_v22  ;;  %v1838_v63 = vsel %vm1206_vm10, %v4549_v35, %v4553_v20 }
 0x7a0   : > { %v2026_v1 = vsel %vm1268_vm7, %v4417_v25, %v4425_v34  ;;  %v2161_v54 = vmul.f32 %v2153_v62, %v3987_v44  ;;  %v2025_v35 = vsel %vm1268_vm7, %v4247_v2, %v4251_v3  ;;  %v1973_v20 = vmul.f32 %v1965_v8, %v3956_v22  ;;  %v5077_v8 = vld [vmem:[#allocation21_spill] sm:$0xff] }
 0x7a1   : > { %v1760_v32 = vpop.permute.xlu1 %1759  ;;  %v1837_v25 = vsel %vm1206_vm10, %v4510_v7, %v4525_v38  ;;  %v2155_v34 = vsel %vm1310_vm9, %v4255_v11, %v4259_v12  ;;  %v2238_v45 = vpack.c.bf16 %v1844_v30, %v1843_v61  ;;  %v2164_v2 = vmul.f32 %v2156_v4, %v3987_v44  ;;  %v5080_v4 = vld [vmem:[#allocation33_spill] sm:$0xff] }
 0x7a2   : > { %v1776_v0 = vsel %vm1185_vm8, %v1736_v14, %v1760_v32  ;;  %v2245_v14 = vpack.c.bf16 %v1970_v26, %v1969_v36  ;;  %v2034_v32 = vmul.f32 %v2026_v1, %v3965_v23  ;;  %v2247_v3 = vpack.c.bf16 %v1974_v16, %v1973_v20  ;;  %v5070_v36 = vld [vmem:[#allocation26_spill] sm:$0xff]  ;;  %v5083_v20 = vld [vmem:[#allocation29_spill] sm:$0xff] }
 0x7a3   : > { %v1784_v19 = vmul.f32 %v1776_v0, %v3930_v40  ;;  %v4594_v31 = vpop.permute.xlu0 %1797  ;;  %v1972_v40 = vmul.f32 %v1964_v5, %v3956_v22  ;;  %v2033_v26 = vmul.f32 %v2025_v35, %v3965_v23  ;;  %v1845_v59 = vmul.f32 %v1837_v25, %v3938_v52  ;;  %v5081_v35 = vld [vmem:[#allocation23_spill] sm:$0xff] }
 0x7a4   : > { %v2259_v38 = vpack.c.bf16 %v2162_v47, %v2161_v54  ;;  %v2163_v11 = vmul.f32 %v2155_v34, %v3987_v44  ;;  %v2158_v12 = vsel %vm1310_vm9, %v4555_v49, %v4559_v37  ;;  %v1967_v5 = vsel %vm759_vm1, %v4573_v13, %v4578_v48  ;;  %v5073_v13 = vld [vmem:[#allocation31_spill] sm:$0xff] }
 0x7a5   : > { %v2236_v24 = vpack.c.bf16 %v1784_v19, %v1783_v6  ;;  %v2056_v15 = vpop.permute.xlu1 %2055  ;;  %v2246_v51 = vpack.c.bf16 %v1972_v40, %v1971_v29  ;;  %v5069_v0 = vpack.c.bf16 %v4371_v9, %v4365_v50  ;;  %v2157_v39 = vsel %vm1310_vm9, %v5071_v53, %v5070_v36  ;;  %v5072_v40 = vld [vmem:[#allocation32_spill] sm:$0xff] }
 0x7a6   : > { %v2251_v18 = vpack.c.bf16 %v2034_v32, %v2033_v26  ;;  %v2260_v49 = vpack.c.bf16 %v2164_v2, %v2163_v11  ;;  %v2166_v37 = vmul.f32 %v2158_v12, %v3987_v44  ;;  %v2030_v48 = vsel %vm1268_vm7, %v5073_v13, %v5072_v40  ;;  %v5084_v26 = vld [vmem:[#allocation24_spill] sm:$0xff]  ;;  %v3382_v11 = vld [vmem:[%s4900_s13 + $0x28] ss:$20 sps:$4 sm:$0xff]  }
 0x7a7   : > { %3194 = vmatpush3.bf16.msra.mxu0 %v2236_v24  ;;  %v1822_v10 = vpop.permute.xlu0 %1821  ;;  %v1975_v50 = vmul.f32 %v1967_v5, %v3956_v22  ;;  %v2165_v24 = vmul.f32 %v2157_v39, %v3987_v44  ;;  %v2038_v60 = vmul.f32 %v2030_v48, %v3965_v23  ;;  %v5085_v40 = vmov 0.0  }
 0x7a8   : > { %3195 = vmatprep.subr.bf16.mxu0 %v2245_v14 }
 0x7a9   : > { %v2080_v27 = vpop.permute.xlu1 %2079  ;;  %v2261_v61 = vpack.c.bf16 %v2166_v37, %v2165_v24  ;;  %v3388_v24 = vld [vmem:[%s4900_s13 + $0x30] ss:$20 sps:$4 sm:$0xff]  }
 0x7aa   : > { %v2096_v42 = vsel %vm1289_vm6, %v2056_v15, %v2080_v27  ;;  %v5074_v15 = vld [vmem:[#allocation28_spill] sm:$0xff] }
 0x7ab   : > { %v2104_v28 = vmul.f32 %v2096_v42, %v3978_v58  ;;  %3196 = vmatpush3.bf16.msra.mxu0 %v2237_v33  ;;  %v1846_v58 = vmul.f32 %v1838_v63, %v3938_v52  ;;  %v2118_v7 = vpop.permute.xlu0 %2117  ;;  %v2029_v14 = vsel %vm1268_vm7, %v5075_v55, %v5074_v15  ;;  %v5078_v33 = vpack.c.bf16 %v5076_v41, %v5077_v8  ;;  %v3390_v15 = vld [vmem:[%s4900_s13 + $0x38] ss:$20 sps:$4 sm:$0xff]  }
 0x7ac   : > { %3197 = vmatprep.subr.bf16.mxu0 %v2246_v51  ;;  %v2037_v62 = vmul.f32 %v2029_v14, %v3965_v23  ;;  %v5086_v55 = vmov 0   ;;  %v3391_v14 = vld [vmem:[%s4899_s12] ss:$8 sps:$4 sm:$0xff]  }
 0x7ad   : > { %v1928_v17 = vpop.permute.xlu1 %1927  ;;  %v2258_v43 = vpack.c.bf16 %v2104_v28, %v2103_v21  ;;  %v2239_v6 = vpack.c.bf16 %v1846_v58, %v1845_v59  ;;  %v3380_v28 = vld [vmem:[%s4900_s13 + $0x2c] ss:$20 sps:$4 sm:$0xff]   ;;  %v3421_v58 = vld [vmem:[%s5035_s27 + $0x8] ss:$0 sm:$0xff] }
 0x7ae   : > { %v2253_v27 = vpack.c.bf16 %v2038_v60, %v2037_v62  ;;  %v3399_v60 = vld [vmem:[%s4899_s12 + $0x24] ss:$8 sps:$4 sm:$0xff]  }
 0x7af   : > { %3198 = vmatpush3.bf16.msra.mxu0 %v2238_v45  ;;  %3221 = vmatprep.subr.bf16.mxu1 %v2258_v43  ;;  %v2142_v56 = vpop.permute.xlu0 %2141 }
 0x7b0   : > { %3199 = vmatprep.subr.bf16.mxu0 %v2247_v3  ;;  %3222 = vmatpush3.bf16.msra.mxu1 %v5069_v0  ;;  %v2159_v54 = vsel %vm1310_vm9, %v2118_v7, %v2142_v56  ;;  %v3393_v56 = vld [vmem:[%s4899_s12 + $0x4] ss:$8 sps:$4 sm:$0xff]  }
 0x7b1   : > { %v1952_v19 = vpop.permute.xlu1 %1951  ;;  %3223 = vmatprep.subr.bf16.mxu1 %v2259_v38  ;;  %v2167_v32 = vmul.f32 %v2159_v54, %v3987_v44 }
 0x7b2   : > { %v1968_v46 = vsel %vm759_vm1, %v1928_v17, %v1952_v19 }
 0x7b3   : > { %v1976_v9 = vmul.f32 %v1968_v46, %v3956_v22  ;;  %3200 = vmatpush3.bf16.msra.mxu0 %v2239_v6  ;;  %v1839_v22 = vsel %vm1206_vm10, %v4594_v31, %v1822_v10  ;;  %v1990_v16 = vpop.permute.xlu0 %1989  ;;  %v3377_v31 = vld [vmem:[%s4900_s13] ss:$20 sps:$4 sm:$0xff]   ;;  %v3383_v46 = vld [vmem:[%s4900_s13 + $0x8] ss:$20 sps:$4 sm:$0xff]  }
 0x7b4   : > { %3224 = vmatpush3.bf16.msra.mxu1 %v2251_v18  ;;  %v1847_v47 = vmul.f32 %v1839_v22, %v3938_v52  ;;  %v5079_v10 = vld [vmem:[#allocation34_spill] sm:$0xff] }
 0x7b5   : > { %v1800_v29 = vpop.permute.xlu1 %1799  ;;  %3225 = vmatprep.subr.bf16.mxu1 %v2260_v49  ;;  %v2248_v57 = vpack.c.bf16 %v1976_v9, %v1975_v50  ;;  %v2222_v21 = vsel %vm1331_vm12, %v5080_v4, %v5079_v10  ;;  %v3386_v49 = vld [vmem:[%s4900_s13 + $0x34] ss:$20 sps:$4 sm:$0xff]  }
 0x7b6   : > { %v2230_v17 = vmul.f32 %v3421_v58, %v2222_v21 }
 0x7b7   : > { %3201 = vmatprep.subr.bf16.mxu0 %v2248_v57  ;;  %v2014_v34 = vpop.permute.xlu0 %2013  ;;  %v3394_v57 = vld [vmem:[%s4899_s12 + $0x10] ss:$8 sps:$4 sm:$0xff]  }
 0x7b8   : > { %3226 = vmatpush3.bf16.msra.mxu1 %v5078_v33  ;;  %v2031_v5 = vsel %vm1268_vm7, %v1990_v16, %v2014_v34 }
 0x7b9   : > { %v1824_v30 = vpop.permute.xlu1 %1823  ;;  %3227 = vmatprep.subr.bf16.mxu1 %v2261_v61  ;;  %v2039_v19 = vmul.f32 %v2031_v5, %v3965_v23  ;;  %v3397_v61 = vld [vmem:[%s4899_s12 + $0x20] ss:$8 sps:$4 sm:$0xff]  }
 0x7ba   : > { %v1840_v51 = vsel %vm1206_vm10, %v1800_v29, %v1824_v30  ;;  %v3396_v29 = vld [vmem:[%s4899_s12 + $0x14] ss:$8 sps:$4 sm:$0xff]  }
 0x7bb   : > { %v1848_v63 = vmul.f32 %v1840_v51, %v3938_v52  ;;  %v5082_v52 = vld [vmem:[#allocation30_spill] sm:$0xff]  ;;  %v2182_v12 = vpop.permute.xlu0 %2181 }
 0x7bc   : > { %3228 = vmatpush3.bf16.msra.mxu1 %v2253_v27  ;;  %v2221_v25 = vsel %vm1331_vm12, %v5083_v20, %v5082_v52 }
 0x7bd   : > { %v2240_v42 = vpack.c.bf16 %v1848_v63, %v1847_v47  ;;  %v2120_v1 = vpop.permute.xlu1 %2119  ;;  %v2229_v3 = vmul.f32 %v3421_v58, %v2221_v25 }
 0x7bf   : > { %3202 = vmatpush3.bf16.msra.mxu0 %v2240_v42  ;;  %v2265_v38 = vpack.c.bf16 %v2230_v17, %v2229_v3  ;;  %v2206_v53 = vpop.permute.xlu0 %2205 }
 0x7c0   : > { %3286 = vmatprep.subr.bf16.mxu0 %v5081_v35  ;;  %v2223_v37 = vsel %vm1331_vm12, %v2182_v12, %v2206_v53 }
 0x7c1   : > { %v2144_v45 = vpop.permute.xlu1 %2143  ;;  %v2231_v48 = vmul.f32 %v3421_v58, %v2223_v37 }
 0x7c2   : > { %v2160_v43 = vsel %vm1310_vm9, %v2120_v1, %v2144_v45  ;;  %2380 = vmatmul.mubr.bf16.vlgmr.msra.gmra.mrb[16].mxu0 %v3377_v31  ;;  %vm5113_vm9 = vcmask 1043456  }
 0x7c3   : > { %v2168_v2 = vmul.f32 %v2160_v43, %v3987_v44  ;;  %3287 = vmatpush3.bf16.msra.mxu0 %v5081_v35  ;;  %2387 = vmatprep.mubr.bf16.mxu0 %v3380_v28  ;;  %v3389_v44 = vld [vmem:[%s4900_s13 + $0x10] ss:$20 sps:$4 sm:$0xff]  }
 0x7c4   : > { %3288 = vmatprep.subr.bf16.mxu0 %v5084_v26 }
 0x7c5   : > { %v1992_v59 = vpop.permute.xlu1 %1991  ;;  %v2262_v7 = vpack.c.bf16 %v2168_v2, %v2167_v32 }
 0x7c7   : > { %3229 = vmatprep.subr.bf16.mxu1 %v2262_v7  ;;  %3289 = vmatpush3.bf16.msra.mxu0 %v5084_v26 }
 0x7c8   : > { %3290 = vmatprep.subr.bf16.mxu0 %v2265_v38 }
 0x7c9   : > { %v2016_v0 = vpop.permute.xlu1 %2015 }
 0x7ca   : > { %v2032_v6 = vsel %vm1268_vm7, %v1992_v59, %v2016_v0  ;;  %2388 = vmatmul.mubr.bf16.gmra.mrb[20].mxu0 %v3382_v11 }
 0x7cb   : > { %v2040_v36 = vmul.f32 %v2032_v6, %v3965_v23  ;;  %3291 = vmatpush3.bf16.msra.mxu0 %v2265_v38  ;;  %3294 = vmatprep.mubr.msk.bf16.mxu0 %vm1484_vm11, %v3389_v44 }
 0x7cd   : > { %v2254_v39 = vpack.c.bf16 %v2040_v36, %v2039_v19  ;;  %v2184_v18 = vpop.permute.xlu1 %2183 }
 0x7cf   : > { %3230 = vmatpush3.bf16.msra.mxu1 %v2254_v39 }
 0x7d0   : > { %3298 = vmatprep.subr.bf16.mxu1 %v5085_v40  ;;  %v2274_v31 = vpop.permute.xlu0 %2273 }
 0x7d1   : > { %v2208_v23 = vpop.permute.xlu1 %2207 }
 0x7d2   : > { %v2224_v13 = vsel %vm1331_vm12, %v2184_v18, %v2208_v23  ;;  %2429 = vmatmul.mubr.bf16.vlgmr.msra.gmra.mrb[16].mxu1 %v3383_v46  ;;  %vm2786_vm12 = vcmask 588800  }
 0x7d3   : > { %v2232_v50 = vmul.f32 %v3421_v58, %v2224_v13  ;;  %2436 = vmatprep.mubr.bf16.mxu1 %v3386_v49  ;;  %v2498_v13 = vld [vmem:[%s4902_s15] sm:$0xf] }
 0x7d4   : > { %v2284_v45 = vpop.permute.xlu0 %2283 }
 0x7d5   : > { %v2266_v9 = vpack.c.bf16 %v2232_v50, %v2231_v48  ;;  %v2279_v4 = vpop.permute.xlu1 %2278  ;;  %v3402_v48 = vld [vmem:[%s4899_s12 + $0x34] ss:$8 sps:$4 sm:$0xff]   ;;  %v3400_v50 = vld [vmem:[%s4899_s12 + $0x30] ss:$8 sps:$4 sm:$0xff]  }
 0x7d7   : > { %3292 = vmatprep.subr.bf16.mxu0 %v2266_v9 }
 0x7d8   : > { %3293 = vmatpush3.bf16.msra.mxu0 %v2266_v9 }
 0x7d9   : > { %2602 = vmatprep.subr.bf16.mxu0 %v3393_v56  ;;  %v2289_v58 = vpop.permute.xlu1 %2288 }
 0x7da   : > { %2437 = vmatmul.mubr.bf16.gmra.mrb[20].mxu1 %v3388_v24 }
 0x7db   : > { %3295 = vmatmul.mubr.msk.bf16.vlgmr.msra.gmra.mrb[24].mxu0 %vm1484_vm11, %v3390_v15  ;;  %3302 = vmatprep.mubr.msk.bf16.mxu1 %vm3441_vm15, %v5085_v40  ;;  %vm5120_vm15 = vcmask 220160  }
 0x7dc   : > { %2634 = vmatprep.mubr.bf16.mxu0 %v5086_v55  ;;  %2603 = vmatpush1.bf16.msra.mxu0 %v3391_v14 }
 0x7dd   : > { %2604 = vmatprep.subr.bf16.mxu0 %v3396_v29 }
 0x7e0   : > { %2605 = vmatpush1.bf16.msra.mxu0 %v3394_v57 }
 0x7e1   : > { %2606 = vmatprep.subr.bf16.mxu0 %v3399_v60 }
 0x7e4   : > { %2607 = vmatpush1.bf16.msra.mxu0 %v3397_v61 }
 0x7e5   : > { %2608 = vmatprep.subr.bf16.mxu0 %v3402_v48 }
 0x7e8   : > { %2609 = vmatpush1.bf16.msra.mxu0 %v3400_v50  ;;  %v5095_v50 = vld [vmem:[#allocation6_spill] sm:$0xff] }
 0x895   : > { %v3203_v62 = vpop.f32.mrb[16].mxu0 }
 0x896   : > { %v3204_v22 = vpop.f32.mrb[17].mxu0 }
 0x897   : > { %v3205_v41 = vadd.f32 %v3204_v22, %v3203_v62  ;;  %v3206_v8 = vpop.f32.mrb[18].mxu0 }
 0x898   : > { %v3207_v33 = vpop.f32.mrb[19].mxu0 }
 0x899   : > { %v3208_v30 = vadd.f32 %v3207_v33, %v3206_v8  ;;  %v2382_v21 = vadd.f32 %v3205_v41, %v2274_v31 }
 0x89b   : > { %v2385_v52 = vadd.f32 %v3208_v30, %v2279_v4 }
 0x89d   : > { %v3209_v27 = vpop.f32.mrb[20].mxu0 }
 0x89e   : > { %v3210_v51 = vpop.f32.mrb[21].mxu0 }
 0x89f   : > { %v3211_v47 = vadd.f32 %v3210_v51, %v3209_v27  ;;  %v3212_v16 = vpop.f32.mrb[22].mxu0 }
 0x8a0   : > { %v3213_v63 = vpop.f32.mrb[23].mxu0 }
 0x8a1   : > { %v3214_v42 = vadd.f32 %v3213_v63, %v3212_v16  ;;  %v2390_v2 = vadd.f32 %v3211_v47, %v2284_v45 }
 0x8a3   : > { %v2393_v12 = vadd.f32 %v3214_v42, %v2289_v58 }
 0x8a5   : > { %v3231_v1 = vpop.f32.mrb[16].mxu1 }
 0x8a6   : > { %v3232_v10 = vpop.f32.mrb[17].mxu1 }
 0x8a7   : > { %v3233_v28 = vadd.f32 %v3232_v10, %v3231_v1  ;;  %v3234_v54 = vpop.f32.mrb[18].mxu1 }
 0x8a8   : > { %v3235_v35 = vpop.f32.mrb[19].mxu1 }
 0x8a9   : > { %v3236_v20 = vadd.f32 %v3235_v35, %v3234_v54  ;;  %v2431_v25 = vadd.f32 %v3233_v28, %v2382_v21 }
 0x8ab   : > { %v2434_v34 = vadd.f32 %v3236_v20, %v2385_v52 }
 0x8ad   : > { %v3237_v17 = vpop.f32.mrb[20].mxu1 }
 0x8ae   : > { %v3238_v43 = vpop.f32.mrb[21].mxu1  ;;  %v3296_v32 = vpop.f32.mrb[24].mxu0 }
 0x8af   : > { %v3239_v3 = vadd.f32 %v3238_v43, %v3237_v17  ;;  %v3240_v26 = vpop.f32.mrb[22].mxu1  ;;  %v2479_v59 = vpop.f32.mrb[25].mxu0 }
 0x8b0   : > { %v2480_v7 = vadd.f32 %v2479_v59, %v2431_v25  ;;  %v3241_v38 = vpop.f32.mrb[23].mxu1  ;;  %v3297_v11 = vpop.f32.mrb[26].mxu0 }
 0x8b1   : > { %v2439_v44 = vadd.f32 %v3239_v3, %v2390_v2  ;;  %v3242_v5 = vadd.f32 %v3241_v38, %v3240_v26  ;;  %v2482_v0 = vpop.f32.mrb[27].mxu0 }
 0x8b2   : > { %v2483_v6 = vadd.f32 %v2482_v0, %v2434_v34  ;;  %v2494_v53 = vmax.f32 %v2480_v7, 0.0 }
 0x8b3   : > { %v2488_v19 = vadd.f32 %v3296_v32, %v2439_v44  ;;  %v2442_v36 = vadd.f32 %v3242_v5, %v2393_v12  ;;  %v2896_v12 = vld [vmem:[%s4906_s19] sm:$0xff] }
 0x8b4   : > { %v2495_v39 = vmax.f32 %v2483_v6, 0.0  ;;  %v2919_v44 = vld [vmem:[%s4908_s21] sm:$0x3] }
 0x8b5   : > { %v2491_v18 = vadd.f32 %v3297_v11, %v2442_v36  ;;  %v2496_v49 = vmax.f32 %v2488_v19, 0.0  ;;  %v2897_v11 = vld [vmem:[%s4906_s19 + $0x8] sm:$0xff] }
 0x8b6   : > { %v2499_v46 = vpack.c.bf16 %v2495_v39, %v2494_v53 }
 0x8b7   : > { %v2497_v37 = vmax.f32 %v2491_v18, 0.0 }
 0x8b8   : > { %3299 = vmatpush3.bf16.msra.mxu1 %v2499_v46 }
 0x8b9   : > { %v2500_v23 = vpack.c.bf16 %v2497_v37, %v2496_v49  ;;  %3300 = vmatprep.subr.bf16.mxu1 %v5085_v40  ;;  %v2505_v40 = vpop.permute.xlu0 %2504  ;;  %v5093_v37 = vld [vmem:[#allocation10_spill] sm:$0xff] }
 0x8bc   : > { %3301 = vmatpush3.bf16.msra.mxu1 %v2500_v23 }
 0x8bf   : > { %3303 = vmatmul.mubr.msk.bf16.vlgmr.msra.gmra.mrb[24].mxu1 %vm1580_vm5, %v2498_v13  ;;  %v5094_v13 = vld [vmem:[#allocation11_spill] sm:$0xff]  ;;  %vm5111_vm5 = vcmask 908288  }
 0x8c0   : > { %2828 = vmatprep.mubr.bf16.mxu1 %v5086_v55  ;;  %vm5112_vm7 = vmmov %vm5111_vm5 }
 0x992   : > { %v2544_v9 = vpop.f32.mrb[24].mxu1 }
 0x993   : > { %v2545_v24 = vadd.f32 %v2544_v9, %v2505_v40  ;;  %v3304_v15 = vpop.f32.mrb[25].mxu1  ;;  %v5096_v9 = vld [vmem:[#allocation7_spill] sm:$0xff] }
 0x994   : > { %v2547_v14 = vpop.f32.mrb[26].mxu1 }
 0x995   : > { %v2550_v56 = vpack.c.bf16 %v2545_v24, %v2545_v24  ;;  %v3305_v29 = vpop.f32.mrb[27].mxu1 }
 0x997   : > { %3132 = vmatmul.mubr.msk.bf16.vlgmr.msra.gmra.mrb[28].mxu0 %vm1484_vm11, %v2550_v56  ;;  %vm5114_vm11 = vmmov %vm5113_vm9 }
 0x998   : > { %2960 = vmatprep.mubr.bf16.mxu0 %v5086_v55 }
 0xa6a   : > { %v2636_v57 = vpop.f32.mrb[28].mxu0 }
 0xa6b   : > { %v2643_v60 = vrot.slane %v2636_v57, 4  ;;  %v2638_v61 = vpop.f32.mrb[29].mxu0 }
 0xa6c   : > { %v2649_v62 = vrot.slane %v2638_v61, 4  ;;  %v2640_v22 = vpop.f32.mrb[30].mxu0 }
 0xa6d   : > { %v2644_v41 = vmax.f32 %v2636_v57, %v2643_v60  ;;  %v2641_v8 = vpop.f32.mrb[31].mxu0 }
 0xa6e   : > { %v2650_v33 = vmax.f32 %v2638_v61, %v2649_v62  ;;  %v5098_v8 = vld [vmem:[#allocation3_spill] sm:$0xff] }
 0xa6f   : > { %v2645_v30 = vrot.slane %v2644_v41, 2 }
 0xa70   : > { %v2651_v27 = vrot.slane %v2650_v33, 2 }
 0xa71   : > { %v2646_v51 = vmax.f32 %v2644_v41, %v2645_v30 }
 0xa72   : > { %v2652_v47 = vmax.f32 %v2650_v33, %v2651_v27 }
 0xa73   : > { %v2647_v16 = vrot.slane %v2646_v51, 1 }
 0xa74   : > { %v2653_v63 = vrot.slane %v2652_v47, 1 }
 0xa75   : > { %v2648_v42 = vmax.f32 %v2646_v51, %v2647_v16  ;;  %v5099_v16 = vld [vmem:[#allocation9_spill] sm:$0xff] }
 0xa76   : > { %v2654_v1 = vmax.f32 %v2652_v47, %v2653_v63 }
 0xa77   : > { %v2655_v31 = vsub.f32 %v2636_v57, %v2648_v42  ;;  %v5100_v42 = vld [vmem:[#allocation4_spill] sm:$0xff] }
 0xa78   : > { %v2656_v10 = vsub.f32 %v2638_v61, %v2654_v1  ;;  %v5097_v61 = vld [vmem:[#allocation2_spill] sm:$0xff] }
 0xa79   : > { %v2657_v4 = vmul.f32 1.442695, %v2655_v31  ;;  %v5101_v31 = vld [vmem:[#allocation5_spill] sm:$0xff] }
 0xa7a   : > { %v2659_v21 = vmul.f32 1.442695, %v2656_v10 }
 0xa7b   : > { %3405 = vpow2.f32 %v2657_v4 }
 0xa7c   : > { %3407 = vpow2.f32 %v2659_v21 }
 0xa85   : > { %v3406_v28 = vpop.eup %3405 }
 0xa86   : > { %v3408_v54 = vpop.eup %3407  ;;  %v2661_v35 = vrot.slane %v3406_v28, 4 }
 0xa87   : > { %v2667_v52 = vrot.slane %v3408_v54, 4 }
 0xa88   : > { %v2662_v20 = vadd.f32 %v3406_v28, %v2661_v35  ;;  %v5102_v35 = vld [vmem:[#allocation8_spill] sm:$0xff] }
 0xa89   : > { %v2668_v25 = vadd.f32 %v3408_v54, %v2667_v52 }
 0xa8a   : > { %v2663_v34 = vrot.slane %v2662_v20, 2 }
 0xa8b   : > { %v2669_v45 = vrot.slane %v2668_v25, 2 }
 0xa8c   : > { %v2664_v58 = vadd.f32 %v2663_v34, %v2662_v20 }
 0xa8d   : > { %v2670_v17 = vadd.f32 %v2669_v45, %v2668_v25 }
 0xa8e   : > { %v2665_v43 = vrot.slane %v2664_v58, 1 }
 0xa8f   : > { %v2671_v32 = vrot.slane %v2670_v17, 1 }
 0xa90   : > { %v2666_v2 = vadd.f32 %v2665_v43, %v2664_v58 }
 0xa91   : > { %v2672_v3 = vadd.f32 %v2671_v32, %v2670_v17 }
 0xa92   : > { %3409 = vrcp.f32 %v2666_v2  ;;  %v5107_v2 = vld [vmem:[#allocation12_spill] sm:$0xff] }
 0xa93   : > { %3411 = vrcp.f32 %v2672_v3 }
 0xa9c   : > { %v3410_v26 = vpop.eup %3409 }
 0xa9d   : > { %v4775_v59 = vmul.f32 %v3410_v26, %v3406_v28  ;;  %v3412_v7 = vpop.eup %3411  ;;  %v5108_v26 = vld [vmem:[#allocation13_spill] sm:$0xff] }
 0xa9e   : > { %v4781_v38 = vmul.f32 %v3412_v7, %v3408_v54 }
 0xa9f   : > { %2723 = vrot.lane.b32.xlu1 %v4775_v59, %s5039_s0  ;;  %2682 = vrot.lane.b32.xlu0 %v4775_v59, %s5087_s23 }
 0xaa3   : > { %2693 = vrot.lane.b32.xlu0 %v4775_v59, %s5088_s2  ;;  %2678 = vrot.lane.b32.xlu1 %v4781_v38, %s5087_s23 }
 0xaa7   : > { %2704 = vrot.lane.b32.xlu0 %v4775_v59, %s5089_s11  ;;  %2690 = vrot.lane.b32.xlu1 %v4781_v38, %s5088_s2 }
 0xaab   : > { %2715 = vrot.lane.b32.xlu0 %v4775_v59, %s5047_s25  ;;  %2701 = vrot.lane.b32.xlu1 %v4781_v38, %s5089_s11 }
 0xaaf   : > { %2725 = vrot.lane.b32.xlu0 %v4781_v38, %s5039_s0  ;;  %2712 = vrot.lane.b32.xlu1 %v4781_v38, %s5047_s25  ;;  %s3143_s0 = sshll.u32 %s5124_s28, 2 }
 0xab0   : > { %s683_s26 = scalar_lea.vmem %s4909_s22, %s3143_s0 }
 0xab3   : > { %2736 = vrot.lane.b32.xlu0 %v4781_v38, %s5090_s5  ;;  %2734 = vrot.lane.b32.xlu1 %v4775_v59, %s5090_s5 }
 0xab7   : > { %2747 = vrot.lane.b32.xlu0 %v4781_v38, %s5091_s29  ;;  %2745 = vrot.lane.b32.xlu1 %v4775_v59, %s5091_s29 }
 0xabb   : > { %2758 = vrot.lane.b32.xlu0 %v4781_v38, %s5092_s24  ;;  %2756 = vrot.lane.b32.xlu1 %v4775_v59, %s5092_s24 }
 0xabf   : > { %2905 = vperm.xlu0 %3344, %v2897_v11   ;;  %2900 = vperm.xlu1 %3345, %v2896_v12   ;;  %v5109_v11 = vld [vmem:[#allocation14_spill] sm:$0xff]  ;;  %v5110_v12 = vld [vmem:[#allocation15_spill] sm:$0xff] }
 0xac3   : > { %2922 = vperm.xlu1 %3345, %v2919_v44  }
 0xb11   : > { %v2724_v5 = vpop.permute.xlu1 %2723  ;;  %v2683_v0 = vpop.permute.xlu0 %2682 }
 0xb15   : > { %v2694_v6 = vpop.permute.xlu0 %2693  ;;  %v2679_v19 = vpop.permute.xlu1 %2678 }
 0xb16   : > { %v2684_v36 = vsel %vm699_vm4, %v2683_v0, %v2679_v19  ;;  %v2687_v53 = vsel %vm699_vm4, %v2679_v19, %v2683_v0 }
 0xb17   : > { %v2688_v23 = vmul.f32 %v2687_v53, %v5093_v37  ;;  %v2689_v48 = vmul.f32 %v2684_v36, %v5094_v13  ;;  %v3422_v53 = vld [vmem:[%s5010_s6 + $0x10] ss:$0 sm:$0xff]  ;;  %v3403_v13 = vld [vmem:[%s4905_s18] sm:$0xff]  }
 0xb19   : > { %v2705_v39 = vpop.permute.xlu0 %2704  ;;  %v2691_v18 = vpop.permute.xlu1 %2690 }
 0xb1a   : > { %v2695_v46 = vsel %vm719_vm2, %v2694_v6, %v2691_v18  ;;  %v2698_v49 = vsel %vm719_vm2, %v2691_v18, %v2694_v6  ;;  %v3423_v18 = vld [vmem:[%s5010_s6 + $0x18] ss:$0 sm:$0xff] }
 0xb1b   : > { %v2699_v40 = vmul.f32 %v2698_v49, %v5095_v50  ;;  %v2700_v24 = vmul.f32 %v2695_v46, %v5096_v9  ;;  %v5116_v50 = vld [vmem:[#allocation18_spill] sm:$0xff] }
 0xb1d   : > { %v2767_v15 = vpack.c.bf16 %v2699_v40, %v2688_v23  ;;  %v2716_v14 = vpop.permute.xlu0 %2715  ;;  %v2702_v56 = vpop.permute.xlu1 %2701  ;;  %v2768_v29 = vpack.c.bf16 %v2700_v24, %v2689_v48  ;;  %v5115_v48 = vld [vmem:[#allocation16_spill] sm:$0xff]  ;;  %v5118_v24 = vld [vmem:[#allocation17_spill] sm:$0xff] }
 0xb1e   : > { %v2709_v57 = vsel %vm739_vm0, %v2702_v56, %v2705_v39  ;;  %v2706_v60 = vsel %vm739_vm0, %v2705_v39, %v2702_v56  ;;  %vm5103_vm0 = vcmask 924672   ;;  %v5117_v40 = vld [vmem:[#allocation20_spill] sm:$0xff]  ;;  %v3404_v56 = vld [vmem:[%s4904_s17] sm:$0xff]  }
 0xb1f   : > { %2796 = vmatprep.subr.bf16.mxu1 %v2768_v29  ;;  %v2710_v62 = vmul.f32 %v2709_v57, %v5097_v61  ;;  %v2711_v33 = vmul.f32 %v2706_v60, %v5098_v8  ;;  %v2851_v9 = vand.u32 %v5117_v40, %v5116_v50 }
 0xb20   : > { %2797 = vmatpush1.bf16.msra.mxu1 %v2767_v15  ;;  %v5119_v15 = vld [vmem:[#allocation19_spill] sm:$0xff] }
 0xb21   : > { %v2726_v22 = vpop.permute.xlu0 %2725  ;;  %v2713_v41 = vpop.permute.xlu1 %2712 }
 0xb22   : > { %v2731_v30 = vsel %vm778_vm3, %v2726_v22, %v2724_v5  ;;  %v2717_v27 = vsel %vm759_vm1, %v2716_v14, %v2713_v41  ;;  %v2720_v51 = vsel %vm759_vm1, %v2713_v41, %v2716_v14  ;;  %v2727_v47 = vsel %vm778_vm3, %v2724_v5, %v2726_v22  ;;  %vm5104_vm1 = vmmov %vm5103_vm0 }
 0xb23   : > { %v2733_v63 = vmul.f32 %v2731_v30, %v5099_v16  ;;  %v2721_v1 = vmul.f32 %v2720_v51, %v5100_v42  ;;  %v2722_v10 = vmul.f32 %v2717_v27, %v5101_v31  ;;  %v2732_v52 = vmul.f32 %v2727_v47, %v5102_v35  ;;  %v2916_v42 = vld [vmem:[%s4907_s20] sm:$0x1] }
 0xb24   : > { %vm5105_vm3 = vcmask 916480   ;;  %v2848_v14 = vand.u32 %v5117_v40, %v5119_v15 }
 0xb25   : > { %v2769_v4 = vpack.c.bf16 %v2721_v1, %v2710_v62  ;;  %v2737_v21 = vpop.permute.xlu0 %2736  ;;  %v2735_v28 = vpop.permute.xlu1 %2734  ;;  %v2770_v54 = vpack.c.bf16 %v2722_v10, %v2711_v33  ;;  %v2772_v20 = vpack.c.bf16 %v2733_v63, %v4781_v38  ;;  %v2771_v17 = vpack.c.bf16 %v2732_v52, %v4775_v59  ;;  %vm5106_vm4 = vmmov %vm5105_vm3 }
 0xb26   : > { %v2738_v25 = vsel %vm5103_vm0, %v2735_v28, %v2737_v21  ;;  %v2742_v34 = vsel %vm5104_vm1, %v2737_v21, %v2735_v28 }
 0xb27   : > { %2798 = vmatprep.subr.bf16.mxu1 %v2770_v54  ;;  %v2743_v3 = vmul.f32 %v2738_v25, %v5107_v2  ;;  %v2744_v7 = vmul.f32 %v2742_v34, %v5108_v26 }
 0xb28   : > { %2799 = vmatpush1.bf16.msra.mxu1 %v2769_v4 }
 0xb29   : > { %v2748_v45 = vpop.permute.xlu0 %2747  ;;  %2800 = vmatprep.subr.bf16.mxu1 %v2772_v20  ;;  %v2746_v58 = vpop.permute.xlu1 %2745 }
 0xb2a   : > { %v2749_v43 = vsel %vm5105_vm3, %v2746_v58, %v2748_v45  ;;  %v2753_v32 = vsel %vm5106_vm4, %v2748_v45, %v2746_v58 }
 0xb2b   : > { %v2754_v38 = vmul.f32 %v2749_v43, %v5109_v11  ;;  %v2755_v44 = vmul.f32 %v2753_v32, %v5110_v12 }
 0xb2c   : > { %2801 = vmatpush1.bf16.msra.mxu1 %v2771_v17 }
 0xb2d   : > { %v2773_v5 = vpack.c.bf16 %v2754_v38, %v2743_v3  ;;  %v2759_v0 = vpop.permute.xlu0 %2758  ;;  %v2757_v6 = vpop.permute.xlu1 %2756  ;;  %v2774_v19 = vpack.c.bf16 %v2755_v44, %v2744_v7 }
 0xb2e   : > { %v2760_v36 = vsel %vm5111_vm5, %v2757_v6, %v2759_v0  ;;  %v2764_v59 = vsel %vm5112_vm7, %v2759_v0, %v2757_v6 }
 0xb2f   : > { %v2765_v39 = vmul.f32 %v3422_v53, %v2760_v36  ;;  %v2766_v46 = vmul.f32 %v3423_v18, %v2764_v59  ;;  %2802 = vmatprep.subr.bf16.mxu1 %v2774_v19 }
 0xb30   : > { %2803 = vmatpush1.bf16.msra.mxu1 %v2773_v5 }
 0xb31   : > { %v2775_v49 = vpack.c.bf16 %v2765_v39, %v2765_v39  ;;  %v2776_v37 = vpack.c.bf16 %v2766_v46, %v2766_v46 }
 0xb33   : > { %3134 = vmatprep.subr.msk.bf16.mxu1 %vm5113_vm9, %v2776_v37  ;;  %v2791_v23 = vsel %vm5114_vm11, %v2775_v49, 0 }
 0xb34   : > { %2805 = vmatpush1.bf16.msra.mxu1 %v2791_v23 }
 0xb35   : > { %2853 = vmatprep.subr.bf16.mxu1 %v5115_v48 }
 0xb37   : > { %3135 = vmatmul.mubr.msk.bf16.vlgmr.msra.gmra.mrb[28].mxu1 %vm2786_vm12, %v3403_v13 }
 0xb38   : > { %2854 = vmatpush1.bf16.msra.mxu1 %v5118_v24  ;;  %2885 = vmatprep.mubr.bf16.mxu1 %v5086_v55 }
 0xb39   : > { %2855 = vmatprep.subr.bf16.mxu1 %v2851_v9 }
 0xb3c   : > { %2856 = vmatpush1.bf16.msra.mxu1 %v2848_v14 }
 0xb3e   : > { %v2901_v29 = vpop.permute.xlu1 %2900  ;;  %v2906_v62 = vpop.permute.xlu0 %2905 }
 0xb42   : > { %v2923_v1 = vpop.permute.xlu1 %2922 }
 0xb43   : > { %3137 = vmatmul.mubr.msk.bf16.vlgmr.msra.gmra.mrb[28].mxu1 %vm5120_vm15, %v3404_v56 }
 0xc16   : > { %v2887_v57 = vpop.f32.mrb[28].mxu1 }
 0xc17   : > { %v2908_v60 = vadd.f32 %v2901_v29, %v2887_v57  ;;  %v2889_v61 = vpop.f32.mrb[29].mxu1 }
 0xc18   : > { %v2909_v22 = vadd.f32 %v2901_v29, %v2889_v61  ;;  %v2891_v41 = vpop.f32.mrb[30].mxu1 }
 0xc19   : > { %v2910_v8 = vadd.f32 %v2906_v62, %v2891_v41  ;;  %v2893_v55 = vpop.f32.mrb[31].mxu1  ;;  %v2912_v30 = vmax.f32 %v2908_v60, 0.0 }
 0xc1a   : > { %v2911_v33 = vadd.f32 %v2906_v62, %v2893_v55  ;;  %v2913_v51 = vmax.f32 %v2909_v22, 0.0 }
 0xc1b   : > { %v2914_v27 = vmax.f32 %v2910_v8, 0.0 }
 0xc1c   : > { %v2915_v47 = vmax.f32 %v2911_v33, 0.0 }
 0xc1d   : > { %v2917_v16 = vpack.c.bf16 %v2914_v27, %v2912_v30 }
 0xc1e   : > { %v2918_v63 = vpack.c.bf16 %v2915_v47, %v2913_v51 }
 0xc20   : > { %2928 = vmatprep.subr.bf16.mxu0 %v2918_v63 }
 0xc21   : > { %2929 = vmatpush1.bf16.msra.mxu0 %v2917_v16 }
 0xc24   : > { %3138 = vmatmul.mubr.msk.bf16.vlgmr.msra.gmra.mrb[32].mxu0 %vm719_vm2, %v2916_v42  ;;  %vm5121_vm2 = vcmask 1040384  }
 0xc25   : > { %vm5122_vm6 = vmmov %vm5121_vm2 }
 0xcf7   : > { %v2962_v31 = vpop.f32.mrb[32].mxu0 }
 0xcf8   : > { %v2963_v10 = vadd.f32 %v2962_v31, %v2923_v1  ;;  %v2964_v4 = vpop.f32.mrb[33].mxu0 }
 0xcf9   : > { %v2965_v21 = vadd.f32 %v2964_v4, %v2923_v1  ;;  %v2966_v28 = vpop.f32.mrb[34].mxu0 }
 0xcfa   : > { %v2971_v54 = vrot.slane %v2963_v10, 1  ;;  %v2967_v35 = vpop.f32.mrb[35].mxu0 }
 0xcfb   : > { %v2972_v52 = vrot.slane %v2965_v21, 1 }
 0xcfc   : > { %v2975_v20 = vsub.f32 %v2963_v10, %v2971_v54 }
 0xcfd   : > { %v2976_v25 = vsub.f32 %v2965_v21, %v2972_v52 }
 0xcfe   : > { %v2977_v34 = vmul.f32 1.442695, %v2975_v20 }
 0xcff   : > { %v2979_v45 = vmul.f32 1.442695, %v2976_v25 }
 0xd00   : > { %3413 = vpow2.f32 %v2977_v34 }
 0xd01   : > { %3415 = vpow2.f32 %v2979_v45 }
 0xd0a   : > { %v3414_v58 = vpop.eup %3413 }
 0xd0b   : > { %v3416_v17 = vpop.eup %3415  ;;  %v2981_v43 = vadd.f32 1.0, %v3414_v58 }
 0xd0c   : > { %v2982_v32 = vadd.f32 1.0, %v3416_v17 }
 0xd0d   : > { %3417 = vrcp.f32 %v2981_v43 }
 0xd0e   : > { %3419 = vrcp.f32 %v2982_v32 }
 0xd17   : > { %v3418_v2 = vpop.eup %3417 }
 0xd18   : > { %v3420_v3 = vpop.eup %3419  ;;  %v2987_v26 = vsub.f32 1.0, %v3418_v2  ;;  %v2991_v7 = vrot.slane %v3418_v2, 7 }
 0xd19   : > { %v2988_v11 = vsub.f32 1.0, %v3420_v3  ;;  %v2992_v38 = vrot.slane %v3420_v3, 7 }
 0xd1a   : > { %v2995_v12 = vsel %vm5121_vm2, %v2987_v26, %v2991_v7 }
 0xd1b   : > { %v2996_v44 = vsel %vm5122_vm6, %v2988_v11, %v2992_v38 }
 0xd1c   : > { %v2999_v5 = vcombine.low %v2995_v12, %v2996_v44 }
 0xd1e   : > { %3139 = vst.sshfl [vmem:[%s683_s26] sm:$0x33 pattern:$0x76325410] %v2999_v5 }
 0xd1f PF: > { %s32_s3 = sadd.s32 1, %s3430_s3  }
 0xd20   : > { %p29_p4 = scmp.ge.s32.totalorder %s32_s3, 4  }
 0xd22   :  { %31 = sbr.rel (!%p29_p4) target bundleno = 13 (0xd), region = 138 }

</bundles_post_ra>
